<compile_context>
chip_gen: v7x
topology: tpu7x:2x2x1
jax: 0.10.0
libtpu: 0.0.40
codegen_flags: <defaults>
</compile_context>

<pallas_src>
import functools

import jax
import jax.numpy as jnp
from jax.experimental import pallas as pl
from jax.experimental.pallas import tpu as pltpu


_VMEM_LIMIT = 32 * 1024 * 1024  # safe ceiling on v5e/v6e/v7x (v7x: 64 MiB physical)


def _detect_num_cores():
    """v7x has 2 TensorCores per chip; v5e/v6e have 1."""
    try:
        kind = jax.devices()[0].device_kind.lower()
    except Exception:
        return 1
    return 2 if "7" in kind else 1


_NUM_TC = _detect_num_cores()


def _round_up(x, m):
    return ((x + m - 1) // m) * m


def _pick_tm(m, cap=512, mult=16, split_for_cores=True):
    """Row tile for the (parallel) M grid axis.

    Single-TC chips get grid=1 full tiles whenever m <= cap (a multi-block grid
    is just a serial loop there); v7x gets a balanced multi-way split.  Tiles
    are multiples of `mult` rows (16 for bf16 sublane packing, 32 when an int8
    array shares the tiling).
    """
    nb = pl.cdiv(m, cap)
    if split_for_cores:
        nb = max(nb, _NUM_TC)
    if nb <= 1 or m <= mult:
        return m
    tm = _round_up(pl.cdiv(m, nb), mult)
    return min(tm, m)


def _cparams(dims):
    # NOTE(v7x): "parallel" is kept here; if a profile shows only one core busy,
    # switch the M axis to pltpu.CORE_PARALLEL.
    return pltpu.CompilerParams(dimension_semantics=dims,
                                vmem_limit_bytes=_VMEM_LIMIT)


# ---------------------------------------------------------------------------
# Pallas kernels
# ---------------------------------------------------------------------------

def _matmul_bias_act_kernel(p_ref, w_ref, b_ref, o_ref, *, act):
    """(TM, K) @ (K, Cout) -> f32 acc on the MXU, + bias, fused activation."""
    acc = jnp.dot(p_ref[...], w_ref[...], preferred_element_type=jnp.float32)
    acc = acc + b_ref[...]
    if act == "leaky_relu":
        acc = jnp.where(acc >= 0.0, acc, 0.01 * acc)
    elif act == "relu":
        acc = jnp.maximum(acc, 0.0)
    elif act == "tanh":
        acc = jnp.tanh(acc)
    o_ref[...] = acc.astype(o_ref.dtype)


def _masknet_conv2_kernel(p_ref, w_ref, b_ref, x_ref, o_ref, m_ref):
    """MaskNet tail: conv2(y) + |x| -> relu(sign(.)) -> x * mask, fused.

    Kept in f32 (operands and accumulation): the hard threshold (pre > 0) is
    sensitive to bf16 rounding of near-zero pre-activations.
    """
    pre = jnp.dot(p_ref[...], w_ref[...], preferred_element_type=jnp.float32)
    pre = pre + b_ref[...]
    x = x_ref[...].astype(jnp.float32)
    pre = pre + jnp.abs(x)
    mask = jnp.where(pre > 0.0, 1.0, 0.0)  # relu(sign(pre)) == (pre > 0)
    o_ref[...] = (x * mask).astype(o_ref.dtype)
    m_ref[...] = mask.astype(m_ref.dtype)


def _maxpool_kernel(a_ref, b_ref, c_ref, d_ref, o_ref, idx_ref):
    """2x2/stride-2 max pool on 2D (rows, C) taps.

    Emits the max value plus a compact int8 tap offset in {0,1,2,3} encoding
    (dy, dx) = (off // 2, off % 2); first-max tie-breaking matches PyTorch.
    Compares run in f32 (no bf16 VPU on v5e).
    """
    best = a_ref[...].astype(jnp.float32)
    off = jnp.zeros(best.shape, jnp.int32)
    for cand_ref, o in ((b_ref, 1), (c_ref, 2), (d_ref, 3)):
        cand = cand_ref[...].astype(jnp.float32)
        take = cand > best
        best = jnp.where(take, cand, best)
        off = jnp.where(take, o, off)
    o_ref[...] = best.astype(o_ref.dtype)
    idx_ref[...] = off.astype(idx_ref.dtype)


def _maxunpool_kernel(v_ref, i_ref, o_ref):
    """MaxUnpool2d(2,2): one pooled row -> 4 output positions, laid out
    lane-dense as (rows, 4*C); position selected by the int8 tap offset."""
    v = v_ref[...].astype(jnp.float32)
    idx = i_ref[...].astype(jnp.int32)
    parts = [jnp.where(idx == t, v, 0.0) for t in range(4)]
    o_ref[...] = jnp.concatenate(parts, axis=-1).astype(o_ref.dtype)


# ---------------------------------------------------------------------------
# Pallas call wrappers
# ---------------------------------------------------------------------------

def _matmul_bias_act(patches, w_mat, bias, act, out_dtype):
    m, k = patches.shape
    cout = w_mat.shape[1]
    tm = _pick_tm(m)
    grid = (pl.cdiv(m, tm),)
    return pl.pallas_call(
        functools.partial(_matmul_bias_act_kernel, act=act),
        out_shape=jax.ShapeDtypeStruct((m, cout), out_dtype),
        grid=grid,
        in_specs=[
            pl.BlockSpec((tm, k), lambda i: (i, 0)),
            pl.BlockSpec((k, cout), lambda i: (0, 0)),
            pl.BlockSpec((1, cout), lambda i: (0, 0)),
        ],
        out_specs=pl.BlockSpec((tm, cout), lambda i: (i, 0)),
        compiler_params=_cparams(("parallel",)),
    )(patches, w_mat, bias.reshape(1, -1))


def _masknet_conv2_call(patches, w_mat, bias, x_rows):
    m, k = patches.shape
    cout = w_mat.shape[1]
    tm = _pick_tm(m)
    grid = (pl.cdiv(m, tm),)
    return pl.pallas_call(
        _masknet_conv2_kernel,
        out_shape=(jax.ShapeDtypeStruct((m, cout), jnp.float32),
                   jax.ShapeDtypeStruct((m, cout), jnp.float32)),
        grid=grid,
        in_specs=[
            pl.BlockSpec((tm, k), lambda i: (i, 0)),
            pl.BlockSpec((k, cout), lambda i: (0, 0)),
            pl.BlockSpec((1, cout), lambda i: (0, 0)),
            pl.BlockSpec((tm, cout), lambda i: (i, 0)),
        ],
        out_specs=(pl.BlockSpec((tm, cout), lambda i: (i, 0)),
                   pl.BlockSpec((tm, cout), lambda i: (i, 0))),
        compiler_params=_cparams(("parallel",)),
    )(patches, w_mat, bias.reshape(1, -1), x_rows)


def _im2col(x_nhwc, ksize, pad_k_to=None):
    """Unroll valid kxk patches: (N,H,W,C) -> (N*OH*OW, K[, padded]).

    The optional K zero-pad (conv1: 75 -> 128 for full MXU passes) is folded
    into the single concat instead of a separate jnp.pad HBM pass.
    TODO(synk): fuse this into the matmul kernel as a k*k tap reduction grid
    axis to avoid the k*k HBM patch blow-up at large spatial sizes.
    """
    n, h, w, c = x_nhwc.shape
    oh, ow = h - ksize + 1, w - ksize + 1
    cols = [x_nhwc[:, ky:ky + oh, kx:kx + ow, :]
            for ky in range(ksize) for kx in range(ksize)]
    k = ksize * ksize * c
    if pad_k_to is not None and pad_k_to > k:
        cols.append(jnp.zeros((n, oh, ow, pad_k_to - k), x_nhwc.dtype))
        k = pad_k_to
    patches = jnp.concatenate(cols, axis=-1).reshape(n * oh * ow, k)
    return patches, (n, oh, ow)


def conv2d_nhwc(x, w_mat, bias, ksize, pad, act, out_dtype=jnp.bfloat16):
    """Conv2d (stride 1) via im2col + Pallas matmul with fused bias/activation."""
    if pad:
        x = jnp.pad(x, ((0, 0), (pad, pad), (pad, pad), (0, 0)))
    k_in = ksize * ksize * x.shape[-1]
    pad_k_to = w_mat.shape[0] if w_mat.shape[0] > k_in else None
    patches, (n, oh, ow) = _im2col(x, ksize, pad_k_to=pad_k_to)
    out = _matmul_bias_act(patches.astype(w_mat.dtype), w_mat, bias, act, out_dtype)
    return out.reshape(n, oh, ow, w_mat.shape[1])


def maxpool2x2_with_indices(x):
    """MaxPool2d((2,2)) on an NHWC tensor; indices are compact int8 tap offsets
    (module-internal replacement for PyTorch flat indices)."""
    n, h, w, c = x.shape
    ho, wo = h // 2, w // 2
    m = n * ho * wo
    a = x[:, 0::2, 0::2, :].reshape(m, c)
    b = x[:, 0::2, 1::2, :].reshape(m, c)
    cc = x[:, 1::2, 0::2, :].reshape(m, c)
    d = x[:, 1::2, 1::2, :].reshape(m, c)
    tm = _pick_tm(m, cap=4096, mult=32, split_for_cores=False)
    grid = (pl.cdiv(m, tm),)
    vals, idx = pl.pallas_call(
        _maxpool_kernel,
        out_shape=(jax.ShapeDtypeStruct((m, c), x.dtype),
                   jax.ShapeDtypeStruct((m, c), jnp.int8)),
        grid=grid,
        in_specs=[pl.BlockSpec((tm, c), lambda i: (i, 0))] * 4,
        out_specs=(pl.BlockSpec((tm, c), lambda i: (i, 0)),
                   pl.BlockSpec((tm, c), lambda i: (i, 0))),
        compiler_params=_cparams(("parallel",)),
    )(a, b, cc, d)
    return vals.reshape(n, ho, wo, c), idx.reshape(n, ho, wo, c)


def maxunpool2x2(vals, idx):
    """MaxUnpool2d(2, 2) on NHWC tensors from int8 tap offsets."""
    n, ho, wo, c = vals.shape
    h, w = 2 * ho, 2 * wo
    m = n * ho * wo
    v2 = vals.reshape(m, c)
    i2 = idx.reshape(m, c)
    tm = _pick_tm(m, cap=4096, mult=32, split_for_cores=False)
    grid = (pl.cdiv(m, tm),)
    out = pl.pallas_call(
        _maxunpool_kernel,
        out_shape=jax.ShapeDtypeStruct((m, 4 * c), vals.dtype),
        grid=grid,
        in_specs=[pl.BlockSpec((tm, c), lambda i: (i, 0)),
                  pl.BlockSpec((tm, c), lambda i: (i, 0))],
        out_specs=pl.BlockSpec((tm, 4 * c), lambda i: (i, 0)),
        compiler_params=_cparams(("parallel",)),
    )(v2, i2)
    # lane blocks are ordered (dy, dx) = (0,0),(0,1),(1,0),(1,1)
    out = out.reshape(n, ho, wo, 2, 2, c)
    out = jnp.transpose(out, (0, 1, 3, 2, 4, 5))  # (n, ho, dy, wo, dx, c)
    return out.reshape(n, h, w, c)


# ---------------------------------------------------------------------------
# Weight layout helpers + deterministic parameter init
# ---------------------------------------------------------------------------

def conv_w_to_mat(w):
    """PyTorch Conv2d weight (Cout, Cin, kh, kw) -> matmul weight (kh*kw*Cin, Cout)."""
    cout, cin, kh, kw = w.shape
    return jnp.transpose(w, (2, 3, 1, 0)).reshape(kh * kw * cin, cout)


def convt_w_to_mat(w):
    """ConvTranspose2d weight (Cin, Cout, kh, kw) -> equivalent direct-conv matmul
    weight: spatial flip + channel swap (stride=1, pad=0 transpose conv)."""
    w_eq = jnp.transpose(jnp.flip(w, axis=(2, 3)), (1, 0, 2, 3))  # (Cout, Cin, kh, kw)
    return conv_w_to_mat(w_eq)


def _prep_weight(w_mat, pad_k_to=None, pad_cout_to=None, dtype=jnp.bfloat16):
    """Optionally zero-pad K / Cout and cast (MXU-native bf16 by default)."""
    if pad_k_to is not None and pad_k_to > w_mat.shape[0]:
        w_mat = jnp.pad(w_mat, ((0, pad_k_to - w_mat.shape[0]), (0, 0)))
    if pad_cout_to is not None and pad_cout_to > w_mat.shape[1]:
        w_mat = jnp.pad(w_mat, ((0, 0), (0, pad_cout_to - w_mat.shape[1])))
    return w_mat.astype(dtype)


def init_params(key, input_dim=3):
    ks = jax.random.split(key, 10)

    def w(k, shape, scale=0.05):
        return jax.random.normal(k, shape, jnp.float32) * scale

    return {
        # semantic_net convs (bias=False)
        "conv1_w": w(ks[0], (128, input_dim, 5, 5)),
        "conv2_w": w(ks[1], (32, 128, 5, 5)),
        # MaskNet(32)
        "mask_conv1_w": w(ks[2], (128, 32, 3, 3)),
        "mask_conv1_b": w(ks[3], (128,), 0.01),
        "mask_conv2_w": w(ks[4], (32, 128, 3, 3)),
        "mask_conv2_b": w(ks[5], (32,), 0.01),
        # ConvTranspose2d weights are (Cin, Cout, kh, kw), bias=True
        "convt1_w": w(ks[6], (32, 128, 5, 5)),
        "convt1_b": w(ks[7], (128,), 0.01),
        "convt2_w": w(ks[8], (128, input_dim, 5, 5)),
        "convt2_b": w(ks[9], (input_dim,), 0.01),
    }


# ---------------------------------------------------------------------------
# Pure (jittable) forward functions
# ---------------------------------------------------------------------------

def _masknet(w, x):
    """MaskNet.forward on NHWC x (f32 path); returns (masked x, zeroed fraction)."""
    x = x.astype(jnp.float32)
    y = conv2d_nhwc(x, w["mw1"], w["mb1"], 3, 1, "relu", out_dtype=jnp.float32)
    yp = jnp.pad(y, ((0, 0), (1, 1), (1, 1), (0, 0)))
    patches, (n, oh, ow) = _im2col(yp, 3)
    x_rows = x.reshape(n * oh * ow, x.shape[-1])
    out, mask = _masknet_conv2_call(patches, w["mw2"], w["mb2"], x_rows)
    mask_frac = jnp.mean((mask == 0.0).astype(jnp.float32))
    return out.reshape(x.shape), mask_frac


def _encode(w, x_nchw, *, use_mask):
    x = jnp.transpose(x_nchw, (0, 2, 3, 1)).astype(jnp.bfloat16)   # NHWC, bf16
    x = conv2d_nhwc(x, w["w1"], w["b0_128"], 5, 0, "leaky_relu")   # bf16 intermediates
    x, idx1 = maxpool2x2_with_indices(x)
    x = conv2d_nhwc(x, w["w2"], w["b0_32"], 5, 0, "leaky_relu")
    x, idx2 = maxpool2x2_with_indices(x)
    mask_frac = jnp.zeros((), jnp.float32)
    if use_mask:
        x, mask_frac = _masknet(w, x)          # f32 out
    else:
        x = x.astype(jnp.float32)
    # torch's .view(N, -1) flattens NCHW order
    latent = jnp.transpose(x, (0, 3, 1, 2)).reshape(x.shape[0], -1)
    return latent, idx1, idx2, mask_frac


def _decode(w, latent, idx1, idx2, x_shape_nhwc, out_channels):
    n, h2, w2, c = x_shape_nhwc
    x = latent.reshape(n, c, h2, w2)
    x = jnp.transpose(x, (0, 2, 3, 1)).astype(jnp.bfloat16)  # NHWC, bf16
    x = maxunpool2x2(x, idx2)
    x = conv2d_nhwc(x, w["wt1"], w["tb1"], 5, 4, "leaky_relu")
    x = maxunpool2x2(x, idx1)
    # wt2 / tb2 are Cout-padded to 128 (lane-dense stores); tanh(0)=0 in the
    # padded lanes, sliced off here.
    x = conv2d_nhwc(x, w["wt2"], w["tb2"], 5, 4, "tanh", out_dtype=jnp.float32)
    x = x[..., :out_channels]
    return jnp.transpose(x, (0, 3, 1, 2))  # back to NCHW


# ---------------------------------------------------------------------------
# semantic_net wrapper (matches PyTorch forward semantics)
# ---------------------------------------------------------------------------

class SemanticNetPallas:
    def __init__(self, params, use_mask=True):
        self.use_mask = use_mask
        self.total_mask_percentage = 0.0
        self._pending_mask_fracs = []
        self.out_channels = int(params["convt2_w"].shape[1])   # = input_dim
        w1 = conv_w_to_mat(params["conv1_w"])
        wt2 = convt_w_to_mat(params["convt2_w"])
        cout_pad = _round_up(wt2.shape[1], 128)                 # 3 -> 128 lane-dense
        self.w = {
            "w1": _prep_weight(w1, pad_k_to=_round_up(w1.shape[0], 128)),
            "w2": _prep_weight(conv_w_to_mat(params["conv2_w"])),
            # MaskNet kept in f32 (hard-threshold correctness concern)
            "mw1": conv_w_to_mat(params["mask_conv1_w"]).astype(jnp.float32),
            "mw2": conv_w_to_mat(params["mask_conv2_w"]).astype(jnp.float32),
            "wt1": _prep_weight(convt_w_to_mat(params["convt1_w"])),
            "wt2": _prep_weight(wt2, pad_cout_to=cout_pad),
            "mb1": params["mask_conv1_b"].astype(jnp.float32),
            "mb2": params["mask_conv2_b"].astype(jnp.float32),
            "tb1": params["convt1_b"].astype(jnp.float32),
            "tb2": jnp.pad(params["convt2_b"],
                           (0, cout_pad - params["convt2_b"].shape[0])
                           ).astype(jnp.float32),
            "b0_128": jnp.zeros((128,), jnp.float32),
            "b0_32": jnp.zeros((32,), jnp.float32),
        }
        self._encode_jit = jax.jit(functools.partial(_encode, use_mask=use_mask))
        self._decode_jit = jax.jit(
            _decode, static_argnames=("x_shape_nhwc", "out_channels"))

    def forward(self, x=None, latent=None):
        if latent is None:
            # encoder: x is NCHW (PyTorch convention)
            n, _, h, wd = x.shape
            h1, w1 = (h - 4) // 2, (wd - 4) // 2       # conv5(valid) -> pool
            h2, w2 = (h1 - 4) // 2, (w1 - 4) // 2      # conv5(valid) -> pool
            self.x_shape_nhwc = (n, h2, w2, 32)
            latent, self.indices1, self.indices2, mask_frac = self._encode_jit(
                self.w, x)
            if self.use_mask:
                # device scalar only; host sync / print deferred to
                # report_mask_stats() outside the hot path.
                self._pending_mask_fracs.append(mask_frac)
            return latent
        else:
            return self._decode_jit(self.w, latent, self.indices1, self.indices2,
                                    x_shape_nhwc=self.x_shape_nhwc,
                                    out_channels=self.out_channels)

    def report_mask_stats(self):
        """Deferred host-side reporting of MaskNet mask percentages."""
        for frac in self._pending_mask_fracs:
            pct = float(frac) * 100.0
            print(f"Proportion of masking area:: {pct:.2f}%")
            self.total_mask_percentage += pct
        self._pending_mask_fracs = []


# TODO(synk): checkpoint loading (masknet_path) is replaced by deterministic
# in-script initialization; the PyTorch module prints the mask percentage
# eagerly inside forward, here it is reported after the jitted forward returns.

if __name__ == "__main__":
    key = jax.random.PRNGKey(0)
    k_params, k_x = jax.random.split(key)
    params = init_params(k_params, input_dim=3)
    net = SemanticNetPallas(params, use_mask=True)

    # NCHW input, 16x16 spatial: 16 -conv5-> 12 -pool-> 6 -conv5-> 2 -pool-> 1
    x = jax.random.normal(k_x, (2, 3, 16, 16), jnp.float32)

    latent = net.forward(x=x)              # encoder branch (jitted)
    recon = net.forward(latent=latent)     # decoder branch (jitted)

    jax.block_until_ready(latent)
    jax.block_until_ready(recon)
    net.report_mask_stats()                # host sync + print, outside hot path

    assert latent.shape == (2, 32)
    assert recon.shape == (2, 3, 16, 16)
    print("KERNEL_OK")
</pallas_src>

<mosaic_0001>
module attributes {stable_mosaic.version = 11 : i64} {
  func.func @_matmul_bias_act_kernel(%arg0: i32, %arg1: memref<288x128xbf16, #tpu.memory_space<vmem>>, %arg2: memref<128x128xbf16, #tpu.memory_space<vmem>>, %arg3: memref<1x128xf32, #tpu.memory_space<vmem>>, %arg4: memref<288x128xbf16, #tpu.memory_space<vmem>>) attributes {dimension_semantics = [#tpu.dimension_semantics<parallel>], iteration_bounds = array<i64: 1>, scalar_prefetch = 0 : i64, scratch_operands = 0 : i64, tpu.core_type = #tpu.core_type<tc>, window_params = [{transform_indices = @transform_0, window_bounds = array<i64: 288, 128>}, {pipeline_mode = #tpu.pipeline_mode<synchronous>, transform_indices = @transform_1, window_bounds = array<i64: 128, 128>}, {pipeline_mode = #tpu.pipeline_mode<synchronous>, transform_indices = @transform_2, window_bounds = array<i64: 1, 128>}, {transform_indices = @transform_3, window_bounds = array<i64: 288, 128>}]} {
    %c0 = arith.constant 0 : index
    %c0_0 = arith.constant 0 : index
    %0 = vector.load %arg1[%c0, %c0_0] : memref<288x128xbf16, #tpu.memory_space<vmem>>, vector<288x128xbf16>
    %c0_1 = arith.constant 0 : index
    %c0_2 = arith.constant 0 : index
    %1 = vector.load %arg2[%c0_1, %c0_2] : memref<128x128xbf16, #tpu.memory_space<vmem>>, vector<128x128xbf16>
    %cst = arith.constant dense<0.000000e+00> : vector<288x128xf32>
    %2 = tpu.matmul %0, %1, %cst {dimension_numbers = #tpu.dot_dimension_numbers<[1], [0], [0], [1], [0, 0, 1, 1], [], []>} : vector<288x128xbf16>, vector<128x128xbf16>, vector<288x128xf32> -> vector<288x128xf32>
    %c0_3 = arith.constant 0 : index
    %c0_4 = arith.constant 0 : index
    %3 = vector.load %arg3[%c0_3, %c0_4] : memref<1x128xf32, #tpu.memory_space<vmem>>, vector<1x128xf32>
    %4 = vector.broadcast %3 : vector<1x128xf32> to vector<288x128xf32>
    %5 = arith.addf %2, %4 : vector<288x128xf32>
    %cst_5 = arith.constant 0.000000e+00 : f32
    %6 = vector.broadcast %cst_5 : f32 to vector<288x128xf32>
    %7 = arith.cmpf oge, %5, %6 : vector<288x128xf32>
    %cst_6 = arith.constant 0.00999999977 : f32
    %8 = vector.broadcast %cst_6 : f32 to vector<288x128xf32>
    %9 = arith.mulf %8, %5 : vector<288x128xf32>
    %10 = arith.select %7, %5, %9 : vector<288x128xi1>, vector<288x128xf32>
    %11 = arith.truncf %10 : vector<288x128xf32> to vector<288x128xbf16>
    %c0_7 = arith.constant 0 : index
    %c0_8 = arith.constant 0 : index
    %12 = vector.load %arg4[%c0_7, %c0_8] : memref<288x128xbf16, #tpu.memory_space<vmem>>, vector<288x128xbf16>
    tpu.vector_store %arg4[%c0_7, %c0_8], %11 {strides = array<i32>} : memref<288x128xbf16, #tpu.memory_space<vmem>>, vector<288x128xbf16>,
    return
  }
  func.func @transform_0(%arg0: i32) -> (i32, i32) {
    %c0_i32 = arith.constant 0 : i32
    %c0_i32_0 = arith.constant 0 : i32
    return %arg0, %c0_i32 : i32, i32
  }
  func.func @transform_1(%arg0: i32) -> (i32, i32) {
    %c0_i32 = arith.constant 0 : i32
    %c0_i32_0 = arith.constant 0 : i32
    %c0_i32_1 = arith.constant 0 : i32
    return %c0_i32, %c0_i32_0 : i32, i32
  }
  func.func @transform_2(%arg0: i32) -> (i32, i32) {
    %c0_i32 = arith.constant 0 : i32
    %c0_i32_0 = arith.constant 0 : i32
    %c0_i32_1 = arith.constant 0 : i32
    return %c0_i32, %c0_i32_0 : i32, i32
  }
  func.func @transform_3(%arg0: i32) -> (i32, i32) {
    %c0_i32 = arith.constant 0 : i32
    %c0_i32_0 = arith.constant 0 : i32
    return %arg0, %c0_i32 : i32, i32
  }
}

module attributes {stable_mosaic.version = 11 : i64} {
  func.func @_maxpool_kernel(%arg0: i32, %arg1: memref<72x128xbf16, #tpu.memory_space<vmem>>, %arg2: memref<72x128xbf16, #tpu.memory_space<vmem>>, %arg3: memref<72x128xbf16, #tpu.memory_space<vmem>>, %arg4: memref<72x128xbf16, #tpu.memory_space<vmem>>, %arg5: memref<72x128xbf16, #tpu.memory_space<vmem>>, %arg6: memref<72x128xi8, #tpu.memory_space<vmem>>) attributes {dimension_semantics = [#tpu.dimension_semantics<parallel>], iteration_bounds = array<i64: 1>, scalar_prefetch = 0 : i64, scratch_operands = 0 : i64, tpu.core_type = #tpu.core_type<tc>, window_params = [{transform_indices = @transform_0, window_bounds = array<i64: 72, 128>}, {transform_indices = @transform_1, window_bounds = array<i64: 72, 128>}, {transform_indices = @transform_2, window_bounds = array<i64: 72, 128>}, {transform_indices = @transform_3, window_bounds = array<i64: 72, 128>}, {transform_indices = @transform_4, window_bounds = array<i64: 72, 128>}, {transform_indices = @transform_5, window_bounds = array<i64: 72, 128>}]} {
    %c0 = arith.constant 0 : index
    %c0_0 = arith.constant 0 : index
    %0 = vector.load %arg1[%c0, %c0_0] : memref<72x128xbf16, #tpu.memory_space<vmem>>, vector<72x128xbf16>
    %1 = arith.extf %0 : vector<72x128xbf16> to vector<72x128xf32>
    %c0_i32 = arith.constant 0 : i32
    %2 = vector.broadcast %c0_i32 : i32 to vector<72x128xi32>
    %c0_1 = arith.constant 0 : index
    %c0_2 = arith.constant 0 : index
    %3 = vector.load %arg2[%c0_1, %c0_2] : memref<72x128xbf16, #tpu.memory_space<vmem>>, vector<72x128xbf16>
    %4 = arith.extf %3 : vector<72x128xbf16> to vector<72x128xf32>
    %5 = arith.cmpf ogt, %4, %1 : vector<72x128xf32>
    %6 = arith.select %5, %4, %1 : vector<72x128xi1>, vector<72x128xf32>
    %c1_i32 = arith.constant 1 : i32
    %7 = vector.broadcast %c1_i32 : i32 to vector<72x128xi32>
    %8 = arith.select %5, %7, %2 : vector<72x128xi1>, vector<72x128xi32>
    %c0_3 = arith.constant 0 : index
    %c0_4 = arith.constant 0 : index
    %9 = vector.load %arg3[%c0_3, %c0_4] : memref<72x128xbf16, #tpu.memory_space<vmem>>, vector<72x128xbf16>
    %10 = arith.extf %9 : vector<72x128xbf16> to vector<72x128xf32>
    %11 = arith.cmpf ogt, %10, %6 : vector<72x128xf32>
    %12 = arith.select %11, %10, %6 : vector<72x128xi1>, vector<72x128xf32>
    %c2_i32 = arith.constant 2 : i32
    %13 = vector.broadcast %c2_i32 : i32 to vector<72x128xi32>
    %14 = arith.select %11, %13, %8 : vector<72x128xi1>, vector<72x128xi32>
    %c0_5 = arith.constant 0 : index
    %c0_6 = arith.constant 0 : index
    %15 = vector.load %arg4[%c0_5, %c0_6] : memref<72x128xbf16, #tpu.memory_space<vmem>>, vector<72x128xbf16>
    %16 = arith.extf %15 : vector<72x128xbf16> to vector<72x128xf32>
    %17 = arith.cmpf ogt, %16, %12 : vector<72x128xf32>
    %18 = arith.select %17, %16, %12 : vector<72x128xi1>, vector<72x128xf32>
    %c3_i32 = arith.constant 3 : i32
    %19 = vector.broadcast %c3_i32 : i32 to vector<72x128xi32>
    %20 = arith.select %17, %19, %14 : vector<72x128xi1>, vector<72x128xi32>
    %21 = arith.truncf %18 : vector<72x128xf32> to vector<72x128xbf16>
    %c0_7 = arith.constant 0 : index
    %c0_8 = arith.constant 0 : index
    %22 = vector.load %arg5[%c0_7, %c0_8] : memref<72x128xbf16, #tpu.memory_space<vmem>>, vector<72x128xbf16>
    tpu.vector_store %arg5[%c0_7, %c0_8], %21 {strides = array<i32>} : memref<72x128xbf16, #tpu.memory_space<vmem>>, vector<72x128xbf16>,
    %23 = arith.trunci %20 : vector<72x128xi32> to vector<72x128xi8>
    %c0_9 = arith.constant 0 : index
    %c0_10 = arith.constant 0 : index
    %24 = vector.load %arg6[%c0_9, %c0_10] : memref<72x128xi8, #tpu.memory_space<vmem>>, vector<72x128xi8>
    tpu.vector_store %arg6[%c0_9, %c0_10], %23 {strides = array<i32>} : memref<72x128xi8, #tpu.memory_space<vmem>>, vector<72x128xi8>,
    return
  }
  func.func @transform_0(%arg0: i32) -> (i32, i32) {
    %c0_i32 = arith.constant 0 : i32
    %c0_i32_0 = arith.constant 0 : i32
    return %arg0, %c0_i32 : i32, i32
  }
  func.func @transform_1(%arg0: i32) -> (i32, i32) {
    %c0_i32 = arith.constant 0 : i32
    %c0_i32_0 = arith.constant 0 : i32
    return %arg0, %c0_i32 : i32, i32
  }
  func.func @transform_2(%arg0: i32) -> (i32, i32) {
    %c0_i32 = arith.constant 0 : i32
    %c0_i32_0 = arith.constant 0 : i32
    return %arg0, %c0_i32 : i32, i32
  }
  func.func @transform_3(%arg0: i32) -> (i32, i32) {
    %c0_i32 = arith.constant 0 : i32
    %c0_i32_0 = arith.constant 0 : i32
    return %arg0, %c0_i32 : i32, i32
  }
  func.func @transform_4(%arg0: i32) -> (i32, i32) {
    %c0_i32 = arith.constant 0 : i32
    %c0_i32_0 = arith.constant 0 : i32
    return %arg0, %c0_i32 : i32, i32
  }
  func.func @transform_5(%arg0: i32) -> (i32, i32) {
    %c0_i32 = arith.constant 0 : i32
    %c0_i32_0 = arith.constant 0 : i32
    return %arg0, %c0_i32 : i32, i32
  }
}

module attributes {stable_mosaic.version = 11 : i64} {
  func.func @_matmul_bias_act_kernel(%arg0: i32, %arg1: memref<8x3200xbf16, #tpu.memory_space<vmem>>, %arg2: memref<3200x32xbf16, #tpu.memory_space<vmem>>, %arg3: memref<1x32xf32, #tpu.memory_space<vmem>>, %arg4: memref<8x32xbf16, #tpu.memory_space<vmem>>) attributes {dimension_semantics = [#tpu.dimension_semantics<parallel>], iteration_bounds = array<i64: 1>, scalar_prefetch = 0 : i64, scratch_operands = 0 : i64, tpu.core_type = #tpu.core_type<tc>, window_params = [{transform_indices = @transform_0, window_bounds = array<i64: 8, 3200>}, {pipeline_mode = #tpu.pipeline_mode<synchronous>, transform_indices = @transform_1, window_bounds = array<i64: 3200, 32>}, {pipeline_mode = #tpu.pipeline_mode<synchronous>, transform_indices = @transform_2, window_bounds = array<i64: 1, 32>}, {transform_indices = @transform_3, window_bounds = array<i64: 8, 32>}]} {
    %c0 = arith.constant 0 : index
    %c0_0 = arith.constant 0 : index
    %0 = vector.load %arg1[%c0, %c0_0] : memref<8x3200xbf16, #tpu.memory_space<vmem>>, vector<8x3200xbf16>
    %c0_1 = arith.constant 0 : index
    %c0_2 = arith.constant 0 : index
    %1 = vector.load %arg2[%c0_1, %c0_2] : memref<3200x32xbf16, #tpu.memory_space<vmem>>, vector<3200x32xbf16>
    %cst = arith.constant dense<0.000000e+00> : vector<8x32xf32>
    %2 = tpu.matmul %0, %1, %cst {dimension_numbers = #tpu.dot_dimension_numbers<[1], [0], [0], [1], [0, 0, 1, 1], [], []>} : vector<8x3200xbf16>, vector<3200x32xbf16>, vector<8x32xf32> -> vector<8x32xf32>
    %c0_3 = arith.constant 0 : index
    %c0_4 = arith.constant 0 : index
    %3 = vector.load %arg3[%c0_3, %c0_4] : memref<1x32xf32, #tpu.memory_space<vmem>>, vector<1x32xf32>
    %4 = vector.broadcast %3 : vector<1x32xf32> to vector<8x32xf32>
    %5 = arith.addf %2, %4 : vector<8x32xf32>
    %cst_5 = arith.constant 0.000000e+00 : f32
    %6 = vector.broadcast %cst_5 : f32 to vector<8x32xf32>
    %7 = arith.cmpf oge, %5, %6 : vector<8x32xf32>
    %cst_6 = arith.constant 0.00999999977 : f32
    %8 = vector.broadcast %cst_6 : f32 to vector<8x32xf32>
    %9 = arith.mulf %8, %5 : vector<8x32xf32>
    %10 = arith.select %7, %5, %9 : vector<8x32xi1>, vector<8x32xf32>
    %11 = arith.truncf %10 : vector<8x32xf32> to vector<8x32xbf16>
    %c0_7 = arith.constant 0 : index
    %c0_8 = arith.constant 0 : index
    %12 = vector.load %arg4[%c0_7, %c0_8] : memref<8x32xbf16, #tpu.memory_space<vmem>>, vector<8x32xbf16>
    tpu.vector_store %arg4[%c0_7, %c0_8], %11 {strides = array<i32>} : memref<8x32xbf16, #tpu.memory_space<vmem>>, vector<8x32xbf16>,
    return
  }
  func.func @transform_0(%arg0: i32) -> (i32, i32) {
    %c0_i32 = arith.constant 0 : i32
    %c0_i32_0 = arith.constant 0 : i32
    return %arg0, %c0_i32 : i32, i32
  }
  func.func @transform_1(%arg0: i32) -> (i32, i32) {
    %c0_i32 = arith.constant 0 : i32
    %c0_i32_0 = arith.constant 0 : i32
    %c0_i32_1 = arith.constant 0 : i32
    return %c0_i32, %c0_i32_0 : i32, i32
  }
  func.func @transform_2(%arg0: i32) -> (i32, i32) {
    %c0_i32 = arith.constant 0 : i32
    %c0_i32_0 = arith.constant 0 : i32
    %c0_i32_1 = arith.constant 0 : i32
    return %c0_i32, %c0_i32_0 : i32, i32
  }
  func.func @transform_3(%arg0: i32) -> (i32, i32) {
    %c0_i32 = arith.constant 0 : i32
    %c0_i32_0 = arith.constant 0 : i32
    return %arg0, %c0_i32 : i32, i32
  }
}

module attributes {stable_mosaic.version = 11 : i64} {
  func.func @_maxpool_kernel(%arg0: i32, %arg1: memref<2x32xbf16, #tpu.memory_space<vmem>>, %arg2: memref<2x32xbf16, #tpu.memory_space<vmem>>, %arg3: memref<2x32xbf16, #tpu.memory_space<vmem>>, %arg4: memref<2x32xbf16, #tpu.memory_space<vmem>>, %arg5: memref<2x32xbf16, #tpu.memory_space<vmem>>, %arg6: memref<2x32xi8, #tpu.memory_space<vmem>>) attributes {dimension_semantics = [#tpu.dimension_semantics<parallel>], iteration_bounds = array<i64: 1>, scalar_prefetch = 0 : i64, scratch_operands = 0 : i64, tpu.core_type = #tpu.core_type<tc>, window_params = [{transform_indices = @transform_0, window_bounds = array<i64: 2, 32>}, {transform_indices = @transform_1, window_bounds = array<i64: 2, 32>}, {transform_indices = @transform_2, window_bounds = array<i64: 2, 32>}, {transform_indices = @transform_3, window_bounds = array<i64: 2, 32>}, {transform_indices = @transform_4, window_bounds = array<i64: 2, 32>}, {transform_indices = @transform_5, window_bounds = array<i64: 2, 32>}]} {
    %c0 = arith.constant 0 : index
    %c0_0 = arith.constant 0 : index
    %0 = vector.load %arg1[%c0, %c0_0] : memref<2x32xbf16, #tpu.memory_space<vmem>>, vector<2x32xbf16>
    %1 = arith.extf %0 : vector<2x32xbf16> to vector<2x32xf32>
    %c0_i32 = arith.constant 0 : i32
    %2 = vector.broadcast %c0_i32 : i32 to vector<2x32xi32>
    %c0_1 = arith.constant 0 : index
    %c0_2 = arith.constant 0 : index
    %3 = vector.load %arg2[%c0_1, %c0_2] : memref<2x32xbf16, #tpu.memory_space<vmem>>, vector<2x32xbf16>
    %4 = arith.extf %3 : vector<2x32xbf16> to vector<2x32xf32>
    %5 = arith.cmpf ogt, %4, %1 : vector<2x32xf32>
    %6 = arith.select %5, %4, %1 : vector<2x32xi1>, vector<2x32xf32>
    %c1_i32 = arith.constant 1 : i32
    %7 = vector.broadcast %c1_i32 : i32 to vector<2x32xi32>
    %8 = arith.select %5, %7, %2 : vector<2x32xi1>, vector<2x32xi32>
    %c0_3 = arith.constant 0 : index
    %c0_4 = arith.constant 0 : index
    %9 = vector.load %arg3[%c0_3, %c0_4] : memref<2x32xbf16, #tpu.memory_space<vmem>>, vector<2x32xbf16>
    %10 = arith.extf %9 : vector<2x32xbf16> to vector<2x32xf32>
    %11 = arith.cmpf ogt, %10, %6 : vector<2x32xf32>
    %12 = arith.select %11, %10, %6 : vector<2x32xi1>, vector<2x32xf32>
    %c2_i32 = arith.constant 2 : i32
    %13 = vector.broadcast %c2_i32 : i32 to vector<2x32xi32>
    %14 = arith.select %11, %13, %8 : vector<2x32xi1>, vector<2x32xi32>
    %c0_5 = arith.constant 0 : index
    %c0_6 = arith.constant 0 : index
    %15 = vector.load %arg4[%c0_5, %c0_6] : memref<2x32xbf16, #tpu.memory_space<vmem>>, vector<2x32xbf16>
    %16 = arith.extf %15 : vector<2x32xbf16> to vector<2x32xf32>
    %17 = arith.cmpf ogt, %16, %12 : vector<2x32xf32>
    %18 = arith.select %17, %16, %12 : vector<2x32xi1>, vector<2x32xf32>
    %c3_i32 = arith.constant 3 : i32
    %19 = vector.broadcast %c3_i32 : i32 to vector<2x32xi32>
    %20 = arith.select %17, %19, %14 : vector<2x32xi1>, vector<2x32xi32>
    %21 = arith.truncf %18 : vector<2x32xf32> to vector<2x32xbf16>
    %c0_7 = arith.constant 0 : index
    %c0_8 = arith.constant 0 : index
    %22 = vector.load %arg5[%c0_7, %c0_8] : memref<2x32xbf16, #tpu.memory_space<vmem>>, vector<2x32xbf16>
    tpu.vector_store %arg5[%c0_7, %c0_8], %21 {strides = array<i32>} : memref<2x32xbf16, #tpu.memory_space<vmem>>, vector<2x32xbf16>,
    %23 = arith.trunci %20 : vector<2x32xi32> to vector<2x32xi8>
    %c0_9 = arith.constant 0 : index
    %c0_10 = arith.constant 0 : index
    %24 = vector.load %arg6[%c0_9, %c0_10] : memref<2x32xi8, #tpu.memory_space<vmem>>, vector<2x32xi8>
    tpu.vector_store %arg6[%c0_9, %c0_10], %23 {strides = array<i32>} : memref<2x32xi8, #tpu.memory_space<vmem>>, vector<2x32xi8>,
    return
  }
  func.func @transform_0(%arg0: i32) -> (i32, i32) {
    %c0_i32 = arith.constant 0 : i32
    %c0_i32_0 = arith.constant 0 : i32
    return %arg0, %c0_i32 : i32, i32
  }
  func.func @transform_1(%arg0: i32) -> (i32, i32) {
    %c0_i32 = arith.constant 0 : i32
    %c0_i32_0 = arith.constant 0 : i32
    return %arg0, %c0_i32 : i32, i32
  }
  func.func @transform_2(%arg0: i32) -> (i32, i32) {
    %c0_i32 = arith.constant 0 : i32
    %c0_i32_0 = arith.constant 0 : i32
    return %arg0, %c0_i32 : i32, i32
  }
  func.func @transform_3(%arg0: i32) -> (i32, i32) {
    %c0_i32 = arith.constant 0 : i32
    %c0_i32_0 = arith.constant 0 : i32
    return %arg0, %c0_i32 : i32, i32
  }
  func.func @transform_4(%arg0: i32) -> (i32, i32) {
    %c0_i32 = arith.constant 0 : i32
    %c0_i32_0 = arith.constant 0 : i32
    return %arg0, %c0_i32 : i32, i32
  }
  func.func @transform_5(%arg0: i32) -> (i32, i32) {
    %c0_i32 = arith.constant 0 : i32
    %c0_i32_0 = arith.constant 0 : i32
    return %arg0, %c0_i32 : i32, i32
  }
}

module attributes {stable_mosaic.version = 11 : i64} {
  func.func @_matmul_bias_act_kernel(%arg0: i32, %arg1: memref<2x288xf32, #tpu.memory_space<vmem>>, %arg2: memref<288x128xf32, #tpu.memory_space<vmem>>, %arg3: memref<1x128xf32, #tpu.memory_space<vmem>>, %arg4: memref<2x128xf32, #tpu.memory_space<vmem>>) attributes {dimension_semantics = [#tpu.dimension_semantics<parallel>], iteration_bounds = array<i64: 1>, scalar_prefetch = 0 : i64, scratch_operands = 0 : i64, tpu.core_type = #tpu.core_type<tc>, window_params = [{transform_indices = @transform_0, window_bounds = array<i64: 2, 288>}, {pipeline_mode = #tpu.pipeline_mode<synchronous>, transform_indices = @transform_1, window_bounds = array<i64: 288, 128>}, {pipeline_mode = #tpu.pipeline_mode<synchronous>, transform_indices = @transform_2, window_bounds = array<i64: 1, 128>}, {transform_indices = @transform_3, window_bounds = array<i64: 2, 128>}]} {
    %c0 = arith.constant 0 : index
    %c0_0 = arith.constant 0 : index
    %0 = vector.load %arg1[%c0, %c0_0] : memref<2x288xf32, #tpu.memory_space<vmem>>, vector<2x288xf32>
    %c0_1 = arith.constant 0 : index
    %c0_2 = arith.constant 0 : index
    %1 = vector.load %arg2[%c0_1, %c0_2] : memref<288x128xf32, #tpu.memory_space<vmem>>, vector<288x128xf32>
    %cst = arith.constant dense<0.000000e+00> : vector<2x128xf32>
    %2 = tpu.matmul %0, %1, %cst {dimension_numbers = #tpu.dot_dimension_numbers<[1], [0], [0], [1], [0, 0, 1, 1], [], []>} : vector<2x288xf32>, vector<288x128xf32>, vector<2x128xf32> -> vector<2x128xf32>
    %c0_3 = arith.constant 0 : index
    %c0_4 = arith.constant 0 : index
    %3 = vector.load %arg3[%c0_3, %c0_4] : memref<1x128xf32, #tpu.memory_space<vmem>>, vector<1x128xf32>
    %4 = vector.broadcast %3 : vector<1x128xf32> to vector<2x128xf32>
    %5 = arith.addf %2, %4 : vector<2x128xf32>
    %cst_5 = arith.constant 0.000000e+00 : f32
    %6 = vector.broadcast %cst_5 : f32 to vector<2x128xf32>
    %7 = arith.maximumf %5, %6 : vector<2x128xf32>
    %c0_6 = arith.constant 0 : index
    %c0_7 = arith.constant 0 : index
    %8 = vector.load %arg4[%c0_6, %c0_7] : memref<2x128xf32, #tpu.memory_space<vmem>>, vector<2x128xf32>
    tpu.vector_store %arg4[%c0_6, %c0_7], %7 {strides = array<i32>} : memref<2x128xf32, #tpu.memory_space<vmem>>, vector<2x128xf32>,
    return
  }
  func.func @transform_0(%arg0: i32) -> (i32, i32) {
    %c0_i32 = arith.constant 0 : i32
    %c0_i32_0 = arith.constant 0 : i32
    return %arg0, %c0_i32 : i32, i32
  }
  func.func @transform_1(%arg0: i32) -> (i32, i32) {
    %c0_i32 = arith.constant 0 : i32
    %c0_i32_0 = arith.constant 0 : i32
    %c0_i32_1 = arith.constant 0 : i32
    return %c0_i32, %c0_i32_0 : i32, i32
  }
  func.func @transform_2(%arg0: i32) -> (i32, i32) {
    %c0_i32 = arith.constant 0 : i32
    %c0_i32_0 = arith.constant 0 : i32
    %c0_i32_1 = arith.constant 0 : i32
    return %c0_i32, %c0_i32_0 : i32, i32
  }
  func.func @transform_3(%arg0: i32) -> (i32, i32) {
    %c0_i32 = arith.constant 0 : i32
    %c0_i32_0 = arith.constant 0 : i32
    return %arg0, %c0_i32 : i32, i32
  }
}

module attributes {stable_mosaic.version = 11 : i64} {
  func.func @_masknet_conv2_kernel(%arg0: i32, %arg1: memref<2x1152xf32, #tpu.memory_space<vmem>>, %arg2: memref<1152x32xf32, #tpu.memory_space<vmem>>, %arg3: memref<1x32xf32, #tpu.memory_space<vmem>>, %arg4: memref<2x32xf32, #tpu.memory_space<vmem>>, %arg5: memref<2x32xf32, #tpu.memory_space<vmem>>, %arg6: memref<2x32xf32, #tpu.memory_space<vmem>>) attributes {dimension_semantics = [#tpu.dimension_semantics<parallel>], iteration_bounds = array<i64: 1>, scalar_prefetch = 0 : i64, scratch_operands = 0 : i64, tpu.core_type = #tpu.core_type<tc>, window_params = [{transform_indices = @transform_0, window_bounds = array<i64: 2, 1152>}, {pipeline_mode = #tpu.pipeline_mode<synchronous>, transform_indices = @transform_1, window_bounds = array<i64: 1152, 32>}, {pipeline_mode = #tpu.pipeline_mode<synchronous>, transform_indices = @transform_2, window_bounds = array<i64: 1, 32>}, {transform_indices = @transform_3, window_bounds = array<i64: 2, 32>}, {transform_indices = @transform_4, window_bounds = array<i64: 2, 32>}, {transform_indices = @transform_5, window_bounds = array<i64: 2, 32>}]} {
    %c0 = arith.constant 0 : index
    %c0_0 = arith.constant 0 : index
    %0 = vector.load %arg1[%c0, %c0_0] : memref<2x1152xf32, #tpu.memory_space<vmem>>, vector<2x1152xf32>
    %c0_1 = arith.constant 0 : index
    %c0_2 = arith.constant 0 : index
    %1 = vector.load %arg2[%c0_1, %c0_2] : memref<1152x32xf32, #tpu.memory_space<vmem>>, vector<1152x32xf32>
    %cst = arith.constant dense<0.000000e+00> : vector<2x32xf32>
    %2 = tpu.matmul %0, %1, %cst {dimension_numbers = #tpu.dot_dimension_numbers<[1], [0], [0], [1], [0, 0, 1, 1], [], []>} : vector<2x1152xf32>, vector<1152x32xf32>, vector<2x32xf32> -> vector<2x32xf32>
    %c0_3 = arith.constant 0 : index
    %c0_4 = arith.constant 0 : index
    %3 = vector.load %arg3[%c0_3, %c0_4] : memref<1x32xf32, #tpu.memory_space<vmem>>, vector<1x32xf32>
    %4 = vector.broadcast %3 : vector<1x32xf32> to vector<2x32xf32>
    %5 = arith.addf %2, %4 : vector<2x32xf32>
    %c0_5 = arith.constant 0 : index
    %c0_6 = arith.constant 0 : index
    %6 = vector.load %arg4[%c0_5, %c0_6] : memref<2x32xf32, #tpu.memory_space<vmem>>, vector<2x32xf32>
    %7 = math.absf %6 : vector<2x32xf32>
    %8 = arith.addf %5, %7 : vector<2x32xf32>
    %cst_7 = arith.constant 0.000000e+00 : f32
    %9 = vector.broadcast %cst_7 : f32 to vector<2x32xf32>
    %10 = arith.cmpf ogt, %8, %9 : vector<2x32xf32>
    %cst_8 = arith.constant 1.000000e+00 : f32
    %cst_9 = arith.constant 0.000000e+00 : f32
    %11 = vector.broadcast %cst_8 : f32 to vector<2x32xf32>
    %12 = vector.broadcast %cst_9 : f32 to vector<2x32xf32>
    %13 = arith.select %10, %11, %12 : vector<2x32xi1>, vector<2x32xf32>
    %14 = arith.mulf %6, %13 : vector<2x32xf32>
    %c0_10 = arith.constant 0 : index
    %c0_11 = arith.constant 0 : index
    %15 = vector.load %arg5[%c0_10, %c0_11] : memref<2x32xf32, #tpu.memory_space<vmem>>, vector<2x32xf32>
    tpu.vector_store %arg5[%c0_10, %c0_11], %14 {strides = array<i32>} : memref<2x32xf32, #tpu.memory_space<vmem>>, vector<2x32xf32>,
    %c0_12 = arith.constant 0 : index
    %c0_13 = arith.constant 0 : index
    %16 = vector.load %arg6[%c0_12, %c0_13] : memref<2x32xf32, #tpu.memory_space<vmem>>, vector<2x32xf32>
    tpu.vector_store %arg6[%c0_12, %c0_13], %13 {strides = array<i32>} : memref<2x32xf32, #tpu.memory_space<vmem>>, vector<2x32xf32>,
    return
  }
  func.func @transform_0(%arg0: i32) -> (i32, i32) {
    %c0_i32 = arith.constant 0 : i32
    %c0_i32_0 = arith.constant 0 : i32
    return %arg0, %c0_i32 : i32, i32
  }
  func.func @transform_1(%arg0: i32) -> (i32, i32) {
    %c0_i32 = arith.constant 0 : i32
    %c0_i32_0 = arith.constant 0 : i32
    %c0_i32_1 = arith.constant 0 : i32
    return %c0_i32, %c0_i32_0 : i32, i32
  }
  func.func @transform_2(%arg0: i32) -> (i32, i32) {
    %c0_i32 = arith.constant 0 : i32
    %c0_i32_0 = arith.constant 0 : i32
    %c0_i32_1 = arith.constant 0 : i32
    return %c0_i32, %c0_i32_0 : i32, i32
  }
  func.func @transform_3(%arg0: i32) -> (i32, i32) {
    %c0_i32 = arith.constant 0 : i32
    %c0_i32_0 = arith.constant 0 : i32
    return %arg0, %c0_i32 : i32, i32
  }
  func.func @transform_4(%arg0: i32) -> (i32, i32) {
    %c0_i32 = arith.constant 0 : i32
    %c0_i32_0 = arith.constant 0 : i32
    return %arg0, %c0_i32 : i32, i32
  }
  func.func @transform_5(%arg0: i32) -> (i32, i32) {
    %c0_i32 = arith.constant 0 : i32
    %c0_i32_0 = arith.constant 0 : i32
    return %arg0, %c0_i32 : i32, i32
  }
}

</mosaic_0001>

<bundles_post_ra>
// kernel: _encode.7
= control target key start
LH: loop header
LB: loop body
LE: loop exit
PB: predicated region body
PF: predicated region fallthrough
CT: control target
= control target key end

     0   :  { %v752_v59 = vmov 0  ;;  %v754_v63 = vmov 0  ;;  %s712_s0 = inlined_call_operand.vmem [shape: bf16[72,128], index: 0, kind: input, shape index: {}]   ;;  %s713_s1 = inlined_call_operand.vmem [shape: bf16[72,128], index: 1, kind: input, shape index: {}]   ;;  %s714_s2 = inlined_call_operand.vmem [shape: bf16[72,128], index: 2, kind: input, shape index: {}]   ;;  %s715_s3 = inlined_call_operand.vmem [shape: bf16[72,128], index: 3, kind: input, shape index: {}]   ;;  %s716_s4 = inlined_call_operand.vmem [shape: bf16[72,128], index: 4, kind: output, shape index: {0}]   ;;  %s717_s5 = inlined_call_operand.vmem [shape: s8[72,128], index: 5, kind: output, shape index: {1}]  }
   0x1   :  { %v272_v0 = vld [vmem:[%s712_s0] sm:$0xff]   ;;  %v347_v8 = vld [vmem:[%s712_s0 + $0x8] sm:$0xff]   ;;  %v348_v36 = vld [vmem:[%s712_s0 + $0x10] sm:$0xff]  }
   0x2   :  { %v288_v1 = vld [vmem:[%s713_s1] sm:$0xff]   ;;  %v273_v3 = vunpack.c.l.bf16 %v272_v0  ;;  %v274_v4 = vunpack.c.h.bf16 %v272_v0  ;;  %v350_v9 = vld [vmem:[%s713_s1 + $0x8] sm:$0xff]   ;;  %v277_v17 = vunpack.c.l.bf16 %v347_v8  ;;  %v278_v18 = vunpack.c.h.bf16 %v347_v8  ;;  %v351_v37 = vld [vmem:[%s713_s1 + $0x10] sm:$0xff]  }
   0x3   :  { %v304_v2 = vld [vmem:[%s714_s2] sm:$0xff]   ;;  %v289_v5 = vunpack.c.l.bf16 %v288_v1  ;;  %v290_v6 = vunpack.c.h.bf16 %v288_v1  ;;  %v353_v14 = vld [vmem:[%s714_s2 + $0x8] sm:$0xff]   ;;  %v293_v21 = vunpack.c.l.bf16 %v350_v9  ;;  %v294_v22 = vunpack.c.h.bf16 %v350_v9  ;;  %v354_v42 = vld [vmem:[%s714_s2 + $0x10] sm:$0xff]  }
   0x4   :  { %v320_v7 = vld [vmem:[%s715_s3] sm:$0xff]   ;;  %v305_v10 = vunpack.c.l.bf16 %v304_v2  ;;  %v306_v11 = vunpack.c.h.bf16 %v304_v2  ;;  %v309_v25 = vunpack.c.l.bf16 %v353_v14  ;;  %v310_v26 = vunpack.c.h.bf16 %v353_v14  ;;  %v356_v31 = vld [vmem:[%s715_s3 + $0x8] sm:$0xff]   ;;  %v357_v47 = vld [vmem:[%s715_s3 + $0x10] sm:$0xff]  }
   0x5   :  { %v321_v12 = vunpack.c.l.bf16 %v320_v7  ;;  %v322_v13 = vunpack.c.h.bf16 %v320_v7  ;;  %vm415_vm0 = vcmp.gt.f32.partialorder %v289_v5, %v273_v3  ;;  %vm419_vm1 = vcmp.gt.f32.partialorder %v290_v6, %v274_v4  ;;  %v349_v56 = vld [vmem:[%s712_s0 + $0x18] sm:$0xff]  }
   0x6   :  { %v64_v19 = vsel %vm415_vm0, %v289_v5, %v273_v3  ;;  %v65_v20 = vsel %vm419_vm1, %v290_v6, %v274_v4  ;;  %vm439_vm4 = vcmp.gt.f32.partialorder %v293_v21, %v277_v17  ;;  %vm443_vm5 = vcmp.gt.f32.partialorder %v294_v22, %v278_v18  ;;  %v352_v61 = vld [vmem:[%s713_s1 + $0x18] sm:$0xff]  }
   0x7   :  { %vm427_vm2 = vcmp.gt.f32.partialorder %v305_v10, %v64_v19  ;;  %vm431_vm3 = vcmp.gt.f32.partialorder %v306_v11, %v65_v20  ;;  %v66_v34 = vsel %vm439_vm4, %v293_v21, %v277_v17  ;;  %v67_v35 = vsel %vm443_vm5, %v294_v22, %v278_v18  ;;  %v355_v2 = vld [vmem:[%s714_s2 + $0x18] sm:$0xff]   ;;  %v27_v22 = vld [vmem:[%s712_s0 + $0x20] sm:$0xf] }
   0x8   :  { %v109_v27 = vsel %vm427_vm2, %v305_v10, %v64_v19  ;;  %v110_v28 = vsel %vm431_vm3, %v306_v11, %v65_v20  ;;  %vm472_vm8 = vcmp.gt.f32.partialorder %v309_v25, %v66_v34  ;;  %vm476_vm9 = vcmp.gt.f32.partialorder %v310_v26, %v67_v35  ;;  %v358_v11 = vld [vmem:[%s715_s3 + $0x18] sm:$0xff]  }
   0x9   :  { %vm450_vm6 = vcmp.gt.f32.partialorder %v321_v12, %v109_v27  ;;  %vm454_vm7 = vcmp.gt.f32.partialorder %v322_v13, %v110_v28  ;;  %v111_v44 = vsel %vm472_vm8, %v309_v25, %v66_v34  ;;  %v112_v45 = vsel %vm476_vm9, %v310_v26, %v67_v35  ;;  %v45_v25 = vld [vmem:[%s713_s1 + $0x20] sm:$0xf] }
   0xa   :  { %v154_v38 = vsel %vm450_vm6, %v321_v12, %v109_v27  ;;  %v155_v39 = vsel %vm454_vm7, %v322_v13, %v110_v28  ;;  %v325_v46 = vunpack.c.l.bf16 %v356_v31  ;;  %v326_v48 = vunpack.c.h.bf16 %v356_v31  ;;  %v90_v34 = vld [vmem:[%s714_s2 + $0x20] sm:$0xf] }
   0xb   :  { %v336_v43 = vpack.c.bf16 %v155_v39, %v154_v38  ;;  %v281_v49 = vunpack.c.l.bf16 %v348_v36  ;;  %v282_v50 = vunpack.c.h.bf16 %v348_v36  ;;  %v297_v51 = vunpack.c.l.bf16 %v351_v37  ;;  %v135_v35 = vld [vmem:[%s715_s3 + $0x20] sm:$0xf] }
   0xc   :  { %vm493_vm10 = vcmp.gt.f32.partialorder %v325_v46, %v111_v44  ;;  %v298_v53 = vunpack.c.h.bf16 %v351_v37  ;;  %v313_v54 = vunpack.c.l.bf16 %v354_v42  ;;  %v314_v55 = vunpack.c.h.bf16 %v354_v42 }
   0xd   :  { %337 = vst [vmem:[%s716_s4] sm:$0xff] %v336_v43   ;;  %vm500_vm11 = vcmp.gt.f32.partialorder %v326_v48, %v112_v45  ;;  %v156_v58 = vsel %vm493_vm10, %v325_v46, %v111_v44  ;;  %vm506_vm12 = vcmp.gt.f32.partialorder %v297_v51, %v281_v49  ;;  %v329_v60 = vunpack.c.l.bf16 %v357_v47 }
   0xe   :  { %v753_v59 = vsel %vm506_vm12, 4294967295, %v752_v59  ;;  %v157_v62 = vsel %vm500_vm11, %v326_v48, %v112_v45  ;;  %vm515_vm13 = vcmp.gt.f32.partialorder %v298_v53, %v282_v50  ;;  %v68_v0 = vsel %vm506_vm12, %v297_v51, %v281_v49 }
   0xf   :  { %v755_v63 = vsel %vm515_vm13, 4294967295, %v754_v63  ;;  %v330_v1 = vunpack.c.h.bf16 %v357_v47  ;;  %v339_v3 = vpack.c.bf16 %v157_v62, %v156_v58  ;;  %v69_v4 = vsel %vm515_vm13, %v298_v53, %v282_v50 }
  0x10   :  { %vm526_vm14 = vcmp.gt.f32.partialorder %v313_v54, %v68_v0  ;;  %v756_v5 = vmov 0  ;;  %v285_v6 = vunpack.c.l.bf16 %v349_v56  ;;  %vm530_vm15 = vcmp.gt.f32.partialorder %v314_v55, %v69_v4 }
  0x11   :  { %v757_v5 = vsel %vm526_vm14, 4294967295, %v756_v5  ;;  %v758_v7 = vmov 0  ;;  %v113_v8 = vsel %vm526_vm14, %v313_v54, %v68_v0  ;;  %v286_v9 = vunpack.c.h.bf16 %v349_v56  ;;  %359 = vst [vmem:[%s716_s4 + $0x8] sm:$0xff] %v339_v3  }
  0x12   :  { %v759_v7 = vsel %vm530_vm15, 4294967295, %v758_v7  ;;  %v301_v10 = vunpack.c.l.bf16 %v352_v61  ;;  %v114_v12 = vsel %vm530_vm15, %v314_v55, %v69_v4  ;;  %vm544_vm13 = vcmp.gt.f32.partialorder %v329_v60, %v113_v8 }
  0x13   :  { %v760_v13 = vmov 0  ;;  %v302_v14 = vunpack.c.h.bf16 %v352_v61  ;;  %v317_v17 = vunpack.c.l.bf16 %v355_v2  ;;  %vm548_vm14 = vcmp.gt.f32.partialorder %v330_v1, %v114_v12 }
  0x14   :  { %v761_v13 = vsel %vm544_vm13, 4294967295, %v760_v13  ;;  %v762_v18 = vmov 0  ;;  %v158_v19 = vsel %vm544_vm13, %v329_v60, %v113_v8  ;;  %vm554_vm12 = vcmp.gt.f32.partialorder %v301_v10, %v285_v6 }
  0x15   :  { %v763_v18 = vsel %vm548_vm14, 4294967295, %v762_v18  ;;  %v764_v20 = vmov 0  ;;  %v318_v21 = vunpack.c.h.bf16 %v355_v2  ;;  %v159_v26 = vsel %vm548_vm14, %v330_v1, %v114_v12 }
  0x16   :  { %v765_v20 = vsel %vm554_vm12, 4294967295, %v764_v20  ;;  %vm566_vm15 = vcmp.gt.f32.partialorder %v302_v14, %v286_v9  ;;  %v766_v27 = vmov 0  ;;  %v70_v28 = vsel %vm554_vm12, %v301_v10, %v285_v6 }
  0x17   :  { %v767_v27 = vsel %vm566_vm15, 4294967295, %v766_v27  ;;  %v333_v31 = vunpack.c.l.bf16 %v358_v11  ;;  %v342_v36 = vpack.c.bf16 %v159_v26, %v158_v19  ;;  %v71_v37 = vsel %vm566_vm15, %v302_v14, %v286_v9 }
  0x18   :  { %vm580_vm14 = vcmp.gt.f32.partialorder %v317_v17, %v70_v28  ;;  %v768_v38 = vmov 0  ;;  %v334_v39 = vunpack.c.h.bf16 %v358_v11  ;;  %vm584_vm13 = vcmp.gt.f32.partialorder %v318_v21, %v71_v37 }
  0x19   :  { %v769_v38 = vsel %vm580_vm14, 4294967295, %v768_v38  ;;  %v770_v42 = vmov 0  ;;  %v115_v43 = vsel %vm580_vm14, %v317_v17, %v70_v28  ;;  %v36_v44 = vunpack.c.l.bf16 %v27_v22  ;;  %360 = vst [vmem:[%s716_s4 + $0x10] sm:$0xff] %v342_v36  }
  0x1a   :  { %v771_v42 = vsel %vm584_vm13, 4294967295, %v770_v42  ;;  %v54_v45 = vunpack.c.l.bf16 %v45_v25  ;;  %v116_v46 = vsel %vm584_vm13, %v318_v21, %v71_v37  ;;  %vm595_vm15 = vcmp.gt.f32.partialorder %v333_v31, %v115_v43 }
  0x1b   :  { %v99_v48 = vunpack.c.l.bf16 %v90_v34  ;;  %v144_v49 = vunpack.c.l.bf16 %v135_v35  ;;  %vm599_vm12 = vcmp.gt.f32.partialorder %v334_v39, %v116_v46  ;;  %v160_v51 = vsel %vm595_vm15, %v333_v31, %v115_v43 }
  0x1c   :  { %vm605_vm14 = vcmp.gt.f32.partialorder %v54_v45, %v36_v44  ;;  %v363_v54 = vmov 0   ;;  %v161_v56 = vsel %vm599_vm12, %v334_v39, %v116_v46 }
  0x1d   :  { %v73_v55 = vsel %vm415_vm0, 1, %v363_v54  ;;  %v72_v58 = vsel %vm605_vm14, %v54_v45, %v36_v44  ;;  %v74_v61 = vsel %vm419_vm1, 1, %v363_v54  ;;  %v345_v62 = vpack.c.bf16 %v161_v56, %v160_v51 }
  0x1e   :  { %v118_v60 = vsel %vm427_vm2, 2, %v73_v55  ;;  %vm619_vm13 = vcmp.gt.f32.partialorder %v99_v48, %v72_v58  ;;  %v119_v1 = vsel %vm431_vm3, 2, %v74_v61  ;;  %v75_v16 = vsel %vm439_vm4, 1, %v363_v54 }
  0x1f   :  { %v163_v15 = vsel %vm450_vm6, 3, %v118_v60  ;;  %v117_v2 = vsel %vm619_vm13, %v99_v48, %v72_v58  ;;  %v164_v23 = vsel %vm454_vm7, 3, %v119_v1  ;;  %361 = vst [vmem:[%s716_s4 + $0x18] sm:$0xff] %v345_v62   ;;  %v120_v4 = vsel %vm472_vm8, 2, %v75_v16 }
  0x20   :  { %v218_v3 = vpack.c.b16 %v163_v15, %v163_v15  ;;  %vm636_vm0 = vcmp.gt.f32.partialorder %v144_v49, %v117_v2  ;;  %v220_v24 = vpack.c.b16 %v164_v23, %v164_v23  ;;  %v76_v6 = vsel %vm443_vm5, 1, %v363_v54 }
  0x21   :  { %v162_v33 = vsel %vm636_vm0, %v144_v49, %v117_v2  ;;  %v165_v8 = vsel %vm493_vm10, 3, %v120_v4  ;;  %v121_v9 = vsel %vm476_vm9, 2, %v76_v6  ;;  %vm782_vm1 = vnez %v753_v59 }
  0x22   :  { %v219_v29 = vpack.c.b8 %v218_v3, %v218_v3  ;;  %v270_v10 = vpack.c.bf16 %v162_v33, %v162_v33  ;;  %v221_v11 = vpack.c.b8 %v220_v24, %v220_v24  ;;  %v222_v12 = vpack.c.b16 %v165_v8, %v165_v8 }
  0x23   :  { %v166_v40 = vsel %vm500_vm11, 3, %v121_v9  ;;  %v77_v14 = vsel %vm782_vm1, 1, %v363_v54  ;;  %vm783_vm2 = vnez %v755_v63  ;;  %vm784_vm3 = vnez %v765_v20 }
  0x24   :  { %236 = vst [vmem:[%s717_s5] sm:$0x3] %v219_v29  ;;  %v224_v30 = vpack.c.b16 %v166_v40, %v166_v40  ;;  %v78_v52 = vsel %vm783_vm2, 1, %v363_v54  ;;  %v79_v41 = vsel %vm784_vm3, 1, %v363_v54  ;;  %217 = vst [vmem:[%s716_s4 + $0x20] sm:$0xf] %v270_v10  ;;  %v223_v57 = vpack.c.b8 %v222_v12, %v222_v12 }
  0x25   :  { %237 = vst [vmem:[%s717_s5 + $0x2] sm:$0x3] %v221_v11  ;;  %vm785_vm4 = vnez %v757_v5  ;;  %vm786_vm5 = vnez %v759_v7  ;;  %vm787_vm6 = vnez %v769_v38  ;;  %vm788_vm7 = vnez %v761_v13 }
  0x26   :  { %v122_v17 = vsel %vm785_vm4, 2, %v77_v14  ;;  %v123_v59 = vsel %vm786_vm5, 2, %v78_v52  ;;  %v124_v63 = vsel %vm787_vm6, 2, %v79_v41  ;;  %v225_v19 = vpack.c.b8 %v224_v30, %v224_v30  ;;  %238 = vst [vmem:[%s717_s5 + $0x4] sm:$0x3] %v223_v57 }
  0x27   :  { %v167_v20 = vsel %vm788_vm7, 3, %v122_v17  ;;  %vm789_vm8 = vnez %v763_v18  ;;  %v169_v22 = vsel %vm595_vm15, 3, %v124_v63  ;;  %vm790_vm9 = vnez %v767_v27 }
  0x28   :  { %v168_v21 = vsel %vm789_vm8, 3, %v123_v59  ;;  %v226_v5 = vpack.c.b16 %v167_v20, %v167_v20  ;;  %v230_v25 = vpack.c.b16 %v169_v22, %v169_v22  ;;  %v80_v26 = vsel %vm790_vm9, 1, %v363_v54  ;;  %239 = vst [vmem:[%s717_s5 + $0x6] sm:$0x3] %v225_v19 }
  0x29   :  { %v228_v7 = vpack.c.b16 %v168_v21, %v168_v21  ;;  %vm791_vm10 = vnez %v771_v42  ;;  %v81_v18 = vsel %vm605_vm14, 1, %v363_v54 }
  0x2a   :  { %v125_v13 = vsel %vm791_vm10, 2, %v80_v26  ;;  %v227_v28 = vpack.c.b8 %v226_v5, %v226_v5  ;;  %v231_v34 = vpack.c.b8 %v230_v25, %v230_v25  ;;  %v126_v27 = vsel %vm619_vm13, 2, %v81_v18 }
  0x2b   :  { %v229_v31 = vpack.c.b8 %v228_v7, %v228_v7  ;;  %v170_v35 = vsel %vm599_vm12, 3, %v125_v13  ;;  %v171_v37 = vsel %vm636_vm0, 3, %v126_v27 }
  0x2c   :  { %v232_v36 = vpack.c.b16 %v170_v35, %v170_v35  ;;  %240 = vst [vmem:[%s717_s5 + $0x8] sm:$0x3] %v227_v28  ;;  %242 = vst [vmem:[%s717_s5 + $0xc] sm:$0x3] %v231_v34  ;;  %v234_v39 = vpack.c.b16 %v171_v37, %v171_v37 }
  0x2d   :  { %241 = vst [vmem:[%s717_s5 + $0xa] sm:$0x3] %v229_v31 }
  0x2e   :  { %v233_v38 = vpack.c.b8 %v232_v36, %v232_v36  ;;  %v235_v42 = vpack.c.b8 %v234_v39, %v234_v39 }
  0x30   :  { %243 = vst [vmem:[%s717_s5 + $0xe] sm:$0x3] %v233_v38  ;;  %244 = vst [vmem:[%s717_s5 + $0x10] sm:$0x3] %v235_v42 }

// kernel: _encode.6
= control target key start
LH: loop header
LB: loop body
LE: loop exit
PB: predicated region body
PF: predicated region fallthrough
CT: control target
= control target key end

     0   :  { %s1218_s1 = inlined_call_operand.vmem [shape: bf16[128,128], index: 1, kind: input, shape index: {}]   ;;  %s1219_s0 = inlined_call_operand.vmem [shape: bf16[288,128], index: 0, kind: input, shape index: {}]   ;;  %s1220_s2 = inlined_call_operand.vmem [shape: f32[1,128], index: 2, kind: input, shape index: {}]   ;;  %s1221_s3 = inlined_call_operand.vmem [shape: bf16[288,128], index: 3, kind: output, shape index: {}]  }
   0x1   :  { %v999_v0 = vld [vmem:[%s1218_s1] sm:$0xff]   ;;  %v1000_v1 = vld [vmem:[%s1218_s1 + $0x8] sm:$0xff]   ;;  %v1001_v2 = vld [vmem:[%s1218_s1 + $0x10] sm:$0xff]  }
   0x2   :  { %931 = vmatprep.subr.bf16.mxu0 %v999_v0  ;;  %983 = vmatprep.subr.bf16.mxu1 %v999_v0  ;;  %v1002_v3 = vld [vmem:[%s1218_s1 + $0x18] sm:$0xff]   ;;  %v1007_v4 = vld [vmem:[%s1219_s0] sm:$0xff]   ;;  %v1009_v5 = vld [vmem:[%s1219_s0 + $0x50] sm:$0xff]  }
   0x3   :  { %932 = vmatpush3.bf16.msra.mxu0 %v999_v0  ;;  %991 = vmatpush3.bf16.msra.mxu1 %v999_v0  ;;  %v1003_v6 = vld [vmem:[%s1218_s1 + $0x20] sm:$0xff]   ;;  %v1004_v7 = vld [vmem:[%s1218_s1 + $0x28] sm:$0xff]   ;;  %v1005_v8 = vld [vmem:[%s1218_s1 + $0x30] sm:$0xff]  }
   0x4   :  { %933 = vmatprep.subr.bf16.mxu0 %v1000_v1  ;;  %984 = vmatprep.subr.bf16.mxu1 %v1000_v1  ;;  %v1006_v9 = vld [vmem:[%s1218_s1 + $0x38] sm:$0xff]   ;;  %v1008_v10 = vld [vmem:[%s1219_s0 + $0x8] sm:$0xff]   ;;  %v1011_v12 = vld [vmem:[%s1219_s0 + $0x10] sm:$0xff]  }
   0x5   :  { %947 = vmatprep.mubr.bf16.mxu0 %v1007_v4  ;;  %967 = vmatprep.mubr.bf16.mxu1 %v1009_v5  ;;  %v1010_v11 = vld [vmem:[%s1219_s0 + $0x58] sm:$0xff]   ;;  %v1013_v13 = vld [vmem:[%s1219_s0 + $0x60] sm:$0xff]   ;;  %v1014_v15 = vld [vmem:[%s1219_s0 + $0x68] sm:$0xff]  }
   0x6   :  { %v1012_v14 = vld [vmem:[%s1219_s0 + $0x18] sm:$0xff]   ;;  %v1015_v16 = vld [vmem:[%s1219_s0 + $0x20] sm:$0xff]   ;;  %v1017_v17 = vld [vmem:[%s1219_s0 + $0x70] sm:$0xff]  }
   0x7   :  { %934 = vmatpush3.bf16.msra.mxu0 %v1000_v1  ;;  %992 = vmatpush3.bf16.msra.mxu1 %v1000_v1  ;;  %v1016_v18 = vld [vmem:[%s1219_s0 + $0x28] sm:$0xff]   ;;  %v1018_v19 = vld [vmem:[%s1219_s0 + $0x78] sm:$0xff]   ;;  %v1019_v20 = vld [vmem:[%s1219_s0 + $0x30] sm:$0xff]  }
   0x8   :  { %935 = vmatprep.subr.bf16.mxu0 %v1001_v2  ;;  %985 = vmatprep.subr.bf16.mxu1 %v1001_v2  ;;  %v1021_v21 = vld [vmem:[%s1219_s0 + $0x80] sm:$0xff]   ;;  %v1020_v22 = vld [vmem:[%s1219_s0 + $0x38] sm:$0xff]   ;;  %v1022_v23 = vld [vmem:[%s1219_s0 + $0x88] sm:$0xff]  }
   0x9   :  { %v1023_v24 = vld [vmem:[%s1219_s0 + $0x40] sm:$0xff]   ;;  %v1024_v25 = vld [vmem:[%s1219_s0 + $0x48] sm:$0xff]  }
   0xa   :  { %v1126_v26 = vld [vmem:[%s1220_s2] ss:$0 sm:$0xff] }
   0xb   :  { %936 = vmatpush3.bf16.msra.mxu0 %v1001_v2  ;;  %993 = vmatpush3.bf16.msra.mxu1 %v1001_v2 }
   0xc   :  { %937 = vmatprep.subr.bf16.mxu0 %v1002_v3  ;;  %986 = vmatprep.subr.bf16.mxu1 %v1002_v3 }
   0xf   :  { %938 = vmatpush3.bf16.msra.mxu0 %v1002_v3  ;;  %994 = vmatpush3.bf16.msra.mxu1 %v1002_v3 }
  0x10   :  { %939 = vmatprep.subr.bf16.mxu0 %v1003_v6  ;;  %987 = vmatprep.subr.bf16.mxu1 %v1003_v6 }
  0x13   :  { %940 = vmatpush3.bf16.msra.mxu0 %v1003_v6  ;;  %995 = vmatpush3.bf16.msra.mxu1 %v1003_v6 }
  0x14   :  { %941 = vmatprep.subr.bf16.mxu0 %v1004_v7  ;;  %988 = vmatprep.subr.bf16.mxu1 %v1004_v7 }
  0x17   :  { %942 = vmatpush3.bf16.msra.mxu0 %v1004_v7  ;;  %996 = vmatpush3.bf16.msra.mxu1 %v1004_v7 }
  0x18   :  { %943 = vmatprep.subr.bf16.mxu0 %v1005_v8  ;;  %989 = vmatprep.subr.bf16.mxu1 %v1005_v8 }
  0x1b   :  { %944 = vmatpush3.bf16.msra.mxu0 %v1005_v8  ;;  %997 = vmatpush3.bf16.msra.mxu1 %v1005_v8 }
  0x1c   :  { %945 = vmatprep.subr.bf16.mxu0 %v1006_v9  ;;  %990 = vmatprep.subr.bf16.mxu1 %v1006_v9 }
  0x1f   :  { %946 = vmatpush3.bf16.msra.mxu0 %v1006_v9  ;;  %998 = vmatpush3.bf16.msra.mxu1 %v1006_v9 }
  0x22   :  { %948 = vmatmul.mubr.bf16.vlgmr.msra.gmra.mrb[0].mxu0 %v1008_v10  ;;  %968 = vmatmul.mubr.bf16.vlgmr.msra.gmra.mrb[0].mxu1 %v1010_v11 }
  0x23   :  { %951 = vmatprep.mubr.bf16.mxu0 %v1011_v12  ;;  %971 = vmatprep.mubr.bf16.mxu1 %v1013_v13 }
  0x2a   :  { %952 = vmatmul.mubr.bf16.gmra.mrb[4].mxu0 %v1012_v14  ;;  %972 = vmatmul.mubr.bf16.gmra.mrb[4].mxu1 %v1014_v15 }
  0x2b   :  { %955 = vmatprep.mubr.bf16.mxu0 %v1015_v16  ;;  %975 = vmatprep.mubr.bf16.mxu1 %v1017_v17 }
  0x32   :  { %956 = vmatmul.mubr.bf16.gmra.mrb[8].mxu0 %v1016_v18  ;;  %976 = vmatmul.mubr.bf16.gmra.mrb[8].mxu1 %v1018_v19 }
  0x33   :  { %959 = vmatprep.mubr.bf16.mxu0 %v1019_v20  ;;  %979 = vmatprep.mubr.bf16.mxu1 %v1021_v21 }
  0x3a   :  { %960 = vmatmul.mubr.bf16.gmra.mrb[12].mxu0 %v1020_v22  ;;  %980 = vmatmul.mubr.bf16.gmra.mrb[12].mxu1 %v1022_v23 }
  0x3b   :  { %963 = vmatprep.mubr.bf16.mxu0 %v1023_v24 }
  0x42   :  { %964 = vmatmul.mubr.bf16.gmra.mrb[16].mxu0 %v1024_v25 }
  0xf5   :  { %v949_v27 = vpop.f32.mrb[0].mxu0  ;;  %v969_v28 = vpop.f32.mrb[0].mxu1 }
  0xf6   :  { %v273_v29 = vadd.f32 %v949_v27, %v1126_v26  ;;  %v264_v30 = vpop.f32.mrb[1].mxu0  ;;  %v353_v31 = vadd.f32 %v969_v28, %v1126_v26  ;;  %v344_v32 = vpop.f32.mrb[1].mxu1 }
  0xf7   :  { %v265_v33 = vadd.f32 %v1126_v26, %v264_v30  ;;  %v950_v34 = vpop.f32.mrb[2].mxu0  ;;  %v345_v35 = vadd.f32 %v1126_v26, %v344_v32  ;;  %v970_v36 = vpop.f32.mrb[2].mxu1 }
  0xf8   :  { %vm409_vm0 = vcmp.ge.f32.partialorder %v273_v29, 0.0  ;;  %v445_v37 = vmul.f32 0.01, %v273_v29  ;;  %v276_v38 = vadd.f32 %v950_v34, %v1126_v26  ;;  %v267_v39 = vpop.f32.mrb[3].mxu0  ;;  %v347_v40 = vpop.f32.mrb[3].mxu1  ;;  %vm429_vm3 = vcmp.ge.f32.partialorder %v353_v31, 0.0 }
  0xf9   :  { %v443_v41 = vmul.f32 0.01, %v265_v33  ;;  %v268_v42 = vadd.f32 %v1126_v26, %v267_v39  ;;  %v465_v43 = vmul.f32 0.01, %v353_v31  ;;  %vm407_vm1 = vcmp.ge.f32.partialorder %v265_v33, 0.0 }
  0xfa   :  { %vm410_vm2 = vcmp.ge.f32.partialorder %v276_v38, 0.0  ;;  %v446_v44 = vmul.f32 0.01, %v276_v38  ;;  %v481_v45 = vsel %vm409_vm0, %v273_v29, %v445_v37  ;;  %vm427_vm5 = vcmp.ge.f32.partialorder %v345_v35, 0.0 }
  0xfb   :  { %vm408_vm4 = vcmp.ge.f32.partialorder %v268_v42, 0.0  ;;  %v444_v46 = vmul.f32 0.01, %v268_v42  ;;  %v463_v48 = vmul.f32 0.01, %v345_v35  ;;  %v356_v49 = vadd.f32 %v970_v36, %v1126_v26 }
  0xfc   :  { %v482_v47 = vsel %vm410_vm2, %v276_v38, %v446_v44  ;;  %v348_v50 = vadd.f32 %v1126_v26, %v347_v40  ;;  %v479_v51 = vsel %vm407_vm1, %v265_v33, %v443_v41  ;;  %v501_v54 = vsel %vm429_vm3, %v353_v31, %v465_v43 }
  0xfd   :  { %v806_v52 = vpack.c.bf16 %v482_v47, %v481_v45  ;;  %v480_v53 = vsel %vm408_vm4, %v268_v42, %v444_v46  ;;  %v953_v55 = vpop.f32.mrb[4].mxu0  ;;  %v973_v56 = vpop.f32.mrb[4].mxu1  ;;  %v499_v58 = vsel %vm427_vm5, %v345_v35, %v463_v48  ;;  %vm430_vm6 = vcmp.ge.f32.partialorder %v356_v49, 0.0 }
  0xfe   :  { %v801_v57 = vpack.c.bf16 %v480_v53, %v479_v51  ;;  %v466_v59 = vmul.f32 0.01, %v356_v49  ;;  %v280_v60 = vpop.f32.mrb[5].mxu0  ;;  %v360_v61 = vpop.f32.mrb[5].mxu1  ;;  %vm428_vm7 = vcmp.ge.f32.partialorder %v348_v50, 0.0  ;;  %v289_v63 = vadd.f32 %v953_v55, %v1126_v26 }
  0xff   :  { %888 = vst [vmem:[%s1221_s3 + $0x8] sm:$0xff] %v806_v52   ;;  %v464_v62 = vmul.f32 0.01, %v348_v50  ;;  %v281_v0 = vadd.f32 %v1126_v26, %v280_v60  ;;  %v954_v1 = vpop.f32.mrb[6].mxu0  ;;  %v974_v2 = vpop.f32.mrb[6].mxu1  ;;  %v369_v6 = vadd.f32 %v973_v56, %v1126_v26  ;;  %v361_v7 = vadd.f32 %v1126_v26, %v360_v61 }
 0x100   :  { %802 = vst [vmem:[%s1221_s3] sm:$0xff] %v801_v57   ;;  %v502_v3 = vsel %vm430_vm6, %v356_v49, %v466_v59  ;;  %v292_v4 = vadd.f32 %v954_v1, %v1126_v26  ;;  %v283_v5 = vpop.f32.mrb[7].mxu0  ;;  %v363_v8 = vpop.f32.mrb[7].mxu1  ;;  %vm413_vm8 = vcmp.ge.f32.partialorder %v289_v63, 0.0  ;;  %v449_v11 = vmul.f32 0.01, %v289_v63 }
 0x101   :  { %v856_v9 = vpack.c.bf16 %v502_v3, %v501_v54  ;;  %v500_v10 = vsel %vm428_vm7, %v348_v50, %v464_v62  ;;  %vm411_vm9 = vcmp.ge.f32.partialorder %v281_v0, 0.0  ;;  %v447_v13 = vmul.f32 0.01, %v281_v0 }
 0x102   :  { %v851_v12 = vpack.c.bf16 %v500_v10, %v499_v58  ;;  %vm414_vm10 = vcmp.ge.f32.partialorder %v292_v4, 0.0  ;;  %v485_v14 = vsel %vm413_vm8, %v289_v63, %v449_v11  ;;  %v450_v15 = vmul.f32 0.01, %v292_v4 }
 0x103   :  { %898 = vst [vmem:[%s1221_s3 + $0x58] sm:$0xff] %v856_v9   ;;  %v284_v16 = vadd.f32 %v1126_v26, %v283_v5  ;;  %vm433_vm11 = vcmp.ge.f32.partialorder %v369_v6, 0.0  ;;  %v483_v17 = vsel %vm411_vm9, %v281_v0, %v447_v13  ;;  %v469_v18 = vmul.f32 0.01, %v369_v6 }
 0x104   :  { %897 = vst [vmem:[%s1221_s3 + $0x50] sm:$0xff] %v851_v12   ;;  %vm431_vm12 = vcmp.ge.f32.partialorder %v361_v7, 0.0  ;;  %v467_v19 = vmul.f32 0.01, %v361_v7  ;;  %v486_v20 = vsel %vm414_vm10, %v292_v4, %v450_v15  ;;  %v372_v22 = vadd.f32 %v974_v2, %v1126_v26 }
 0x105   :  { %vm412_vm13 = vcmp.ge.f32.partialorder %v284_v16, 0.0  ;;  %v448_v21 = vmul.f32 0.01, %v284_v16  ;;  %v957_v23 = vpop.f32.mrb[8].mxu0  ;;  %v977_v24 = vpop.f32.mrb[8].mxu1  ;;  %v816_v25 = vpack.c.bf16 %v486_v20, %v485_v14  ;;  %v505_v27 = vsel %vm433_vm11, %v369_v6, %v469_v18 }
 0x106   :  { %v503_v28 = vsel %vm431_vm12, %v361_v7, %v467_v19  ;;  %v364_v29 = vadd.f32 %v1126_v26, %v363_v8  ;;  %v296_v30 = vpop.f32.mrb[9].mxu0  ;;  %v376_v31 = vpop.f32.mrb[9].mxu1  ;;  %vm434_vm14 = vcmp.ge.f32.partialorder %v372_v22, 0.0  ;;  %v470_v33 = vmul.f32 0.01, %v372_v22 }
 0x107   :  { %v484_v32 = vsel %vm412_vm13, %v284_v16, %v448_v21  ;;  %v305_v34 = vadd.f32 %v957_v23, %v1126_v26  ;;  %v958_v35 = vpop.f32.mrb[10].mxu0  ;;  %v978_v36 = vpop.f32.mrb[10].mxu1  ;;  %890 = vst [vmem:[%s1221_s3 + $0x18] sm:$0xff] %v816_v25   ;;  %v297_v39 = vadd.f32 %v1126_v26, %v296_v30  ;;  %v385_v52 = vadd.f32 %v977_v24, %v1126_v26 }
 0x108   :  { %v811_v37 = vpack.c.bf16 %v484_v32, %v483_v17  ;;  %vm432_vm15 = vcmp.ge.f32.partialorder %v364_v29, 0.0  ;;  %v468_v38 = vmul.f32 0.01, %v364_v29  ;;  %v299_v40 = vpop.f32.mrb[11].mxu0  ;;  %v379_v41 = vpop.f32.mrb[11].mxu1  ;;  %v506_v42 = vsel %vm434_vm14, %v372_v22, %v470_v33 }
 0x109   :  { %vm417_vm0 = vcmp.ge.f32.partialorder %v305_v34, 0.0  ;;  %v453_v43 = vmul.f32 0.01, %v305_v34  ;;  %v308_v44 = vadd.f32 %v958_v35, %v1126_v26  ;;  %v866_v45 = vpack.c.bf16 %v506_v42, %v505_v27 }
 0x10a   :  { %889 = vst [vmem:[%s1221_s3 + $0x10] sm:$0xff] %v811_v37   ;;  %v504_v46 = vsel %vm432_vm15, %v364_v29, %v468_v38  ;;  %vm415_vm1 = vcmp.ge.f32.partialorder %v297_v39, 0.0  ;;  %v451_v47 = vmul.f32 0.01, %v297_v39  ;;  %v300_v51 = vadd.f32 %v1126_v26, %v299_v40 }
 0x10b   :  { %v861_v48 = vpack.c.bf16 %v504_v46, %v503_v28  ;;  %vm418_vm2 = vcmp.ge.f32.partialorder %v308_v44, 0.0  ;;  %v454_v49 = vmul.f32 0.01, %v308_v44  ;;  %900 = vst [vmem:[%s1221_s3 + $0x68] sm:$0xff] %v866_v45   ;;  %v489_v50 = vsel %vm417_vm0, %v305_v34, %v453_v43 }
 0x10c   :  { %v377_v53 = vadd.f32 %v1126_v26, %v376_v31  ;;  %v487_v54 = vsel %vm415_vm1, %v297_v39, %v451_v47  ;;  %v388_v56 = vadd.f32 %v978_v36, %v1126_v26  ;;  %v380_v57 = vadd.f32 %v1126_v26, %v379_v41 }
 0x10d   :  { %899 = vst [vmem:[%s1221_s3 + $0x60] sm:$0xff] %v861_v48   ;;  %v490_v55 = vsel %vm418_vm2, %v308_v44, %v454_v49  ;;  %v961_v58 = vpop.f32.mrb[12].mxu0  ;;  %v981_v59 = vpop.f32.mrb[12].mxu1  ;;  %vm416_vm3 = vcmp.ge.f32.partialorder %v300_v51, 0.0  ;;  %v452_v61 = vmul.f32 0.01, %v300_v51 }
 0x10e   :  { %v826_v60 = vpack.c.bf16 %v490_v55, %v489_v50  ;;  %vm437_vm4 = vcmp.ge.f32.partialorder %v385_v52, 0.0  ;;  %v312_v62 = vpop.f32.mrb[13].mxu0  ;;  %v392_v63 = vpop.f32.mrb[13].mxu1  ;;  %v473_v0 = vmul.f32 0.01, %v385_v52  ;;  %vm435_vm5 = vcmp.ge.f32.partialorder %v377_v53, 0.0 }
 0x10f   :  { %v471_v1 = vmul.f32 0.01, %v377_v53  ;;  %vm438_vm6 = vcmp.ge.f32.partialorder %v388_v56, 0.0  ;;  %v488_v2 = vsel %vm416_vm3, %v300_v51, %v452_v61  ;;  %v474_v3 = vmul.f32 0.01, %v388_v56  ;;  %v962_v5 = vpop.f32.mrb[14].mxu0 }
 0x110   :  { %892 = vst [vmem:[%s1221_s3 + $0x28] sm:$0xff] %v826_v60   ;;  %vm436_vm7 = vcmp.ge.f32.partialorder %v380_v57, 0.0  ;;  %v472_v4 = vmul.f32 0.01, %v380_v57  ;;  %v821_v6 = vpack.c.bf16 %v488_v2, %v487_v54  ;;  %v509_v7 = vsel %vm437_vm4, %v385_v52, %v473_v0  ;;  %v315_v10 = vpop.f32.mrb[15].mxu0  ;;  %v982_v11 = vpop.f32.mrb[14].mxu1 }
 0x111   :  { %v507_v8 = vsel %vm435_vm5, %v377_v53, %v471_v1  ;;  %v321_v9 = vadd.f32 %v961_v58, %v1126_v26  ;;  %v510_v12 = vsel %vm438_vm6, %v388_v56, %v474_v3  ;;  %v313_v14 = vadd.f32 %v1126_v26, %v312_v62  ;;  %v395_v16 = vpop.f32.mrb[15].mxu1 }
 0x112   :  { %v508_v13 = vsel %vm436_vm7, %v380_v57, %v472_v4  ;;  %v324_v15 = vadd.f32 %v962_v5, %v1126_v26  ;;  %891 = vst [vmem:[%s1221_s3 + $0x20] sm:$0xff] %v821_v6   ;;  %v876_v17 = vpack.c.bf16 %v510_v12, %v509_v7  ;;  %v316_v23 = vadd.f32 %v1126_v26, %v315_v10 }
 0x113   :  { %v871_v18 = vpack.c.bf16 %v508_v13, %v507_v8  ;;  %vm421_vm8 = vcmp.ge.f32.partialorder %v321_v9, 0.0  ;;  %v457_v19 = vmul.f32 0.01, %v321_v9  ;;  %vm419_vm9 = vcmp.ge.f32.partialorder %v313_v14, 0.0 }
 0x114   :  { %v455_v20 = vmul.f32 0.01, %v313_v14  ;;  %vm422_vm10 = vcmp.ge.f32.partialorder %v324_v15, 0.0  ;;  %v458_v21 = vmul.f32 0.01, %v324_v15  ;;  %902 = vst [vmem:[%s1221_s3 + $0x78] sm:$0xff] %v876_v17   ;;  %v401_v24 = vadd.f32 %v981_v59, %v1126_v26 }
 0x115   :  { %901 = vst [vmem:[%s1221_s3 + $0x70] sm:$0xff] %v871_v18   ;;  %v493_v22 = vsel %vm421_vm8, %v321_v9, %v457_v19  ;;  %v393_v25 = vadd.f32 %v1126_v26, %v392_v63  ;;  %v965_v27 = vpop.f32.mrb[16].mxu0  ;;  %v404_v30 = vadd.f32 %v982_v11, %v1126_v26  ;;  %v396_v31 = vadd.f32 %v1126_v26, %v395_v16 }
 0x116   :  { %v491_v28 = vsel %vm419_vm9, %v313_v14, %v455_v20  ;;  %v494_v29 = vsel %vm422_vm10, %v324_v15, %v458_v21  ;;  %v328_v32 = vpop.f32.mrb[17].mxu0  ;;  %vm420_vm11 = vcmp.ge.f32.partialorder %v316_v23, 0.0  ;;  %v456_v34 = vmul.f32 0.01, %v316_v23 }
 0x117   :  { %v836_v33 = vpack.c.bf16 %v494_v29, %v493_v22  ;;  %vm441_vm12 = vcmp.ge.f32.partialorder %v401_v24, 0.0  ;;  %v966_v35 = vpop.f32.mrb[18].mxu0  ;;  %v477_v36 = vmul.f32 0.01, %v401_v24  ;;  %vm439_vm13 = vcmp.ge.f32.partialorder %v393_v25, 0.0 }
 0x118   :  { %v475_v37 = vmul.f32 0.01, %v393_v25  ;;  %vm442_vm14 = vcmp.ge.f32.partialorder %v404_v30, 0.0  ;;  %v492_v38 = vsel %vm420_vm11, %v316_v23, %v456_v34  ;;  %v478_v39 = vmul.f32 0.01, %v404_v30  ;;  %v331_v41 = vpop.f32.mrb[19].mxu0 }
 0x119   :  { %894 = vst [vmem:[%s1221_s3 + $0x38] sm:$0xff] %v836_v33   ;;  %vm440_vm15 = vcmp.ge.f32.partialorder %v396_v31, 0.0  ;;  %v476_v40 = vmul.f32 0.01, %v396_v31  ;;  %v831_v42 = vpack.c.bf16 %v492_v38, %v491_v28  ;;  %v513_v43 = vsel %vm441_vm12, %v401_v24, %v477_v36 }
 0x11a   :  { %v511_v44 = vsel %vm439_vm13, %v393_v25, %v475_v37  ;;  %v337_v45 = vadd.f32 %v965_v27, %v1126_v26  ;;  %v514_v46 = vsel %vm442_vm14, %v404_v30, %v478_v39  ;;  %v329_v48 = vadd.f32 %v1126_v26, %v328_v32 }
 0x11b   :  { %v512_v47 = vsel %vm440_vm15, %v396_v31, %v476_v40  ;;  %v340_v49 = vadd.f32 %v966_v35, %v1126_v26  ;;  %893 = vst [vmem:[%s1221_s3 + $0x30] sm:$0xff] %v831_v42   ;;  %v886_v50 = vpack.c.bf16 %v514_v46, %v513_v43  ;;  %v332_v55 = vadd.f32 %v1126_v26, %v331_v41 }
 0x11c   :  { %v881_v51 = vpack.c.bf16 %v512_v47, %v511_v44  ;;  %vm425_vm0 = vcmp.ge.f32.partialorder %v337_v45, 0.0  ;;  %v461_v52 = vmul.f32 0.01, %v337_v45  ;;  %v459_v54 = vmul.f32 0.01, %v329_v48 }
 0x11d   :  { %vm426_vm1 = vcmp.ge.f32.partialorder %v340_v49, 0.0  ;;  %v462_v53 = vmul.f32 0.01, %v340_v49  ;;  %904 = vst [vmem:[%s1221_s3 + $0x88] sm:$0xff] %v886_v50   ;;  %vm423_vm2 = vcmp.ge.f32.partialorder %v329_v48, 0.0  ;;  %vm424_vm3 = vcmp.ge.f32.partialorder %v332_v55, 0.0 }
 0x11e   :  { %903 = vst [vmem:[%s1221_s3 + $0x80] sm:$0xff] %v881_v51   ;;  %v497_v56 = vsel %vm425_vm0, %v337_v45, %v461_v52  ;;  %v460_v59 = vmul.f32 0.01, %v332_v55  ;;  %v495_v60 = vsel %vm423_vm2, %v329_v48, %v459_v54 }
 0x11f   :  { %v498_v57 = vsel %vm426_vm1, %v340_v49, %v462_v53 }
 0x120   :  { %v846_v58 = vpack.c.bf16 %v498_v57, %v497_v56  ;;  %v496_v61 = vsel %vm424_vm3, %v332_v55, %v460_v59 }
 0x121   :  { %v841_v62 = vpack.c.bf16 %v496_v61, %v495_v60 }
 0x122   :  { %896 = vst [vmem:[%s1221_s3 + $0x48] sm:$0xff] %v846_v58  }
 0x123   :  { %895 = vst [vmem:[%s1221_s3 + $0x40] sm:$0xff] %v841_v62  }

// kernel: _encode.9
= control target key start
LH: loop header
LB: loop body
LE: loop exit
PB: predicated region body
PF: predicated region fallthrough
CT: control target
= control target key end

     0   :  { %s151_s0 = inlined_call_operand.vmem [shape: bf16[2,32], index: 0, kind: input, shape index: {}]   ;;  %s152_s1 = inlined_call_operand.vmem [shape: bf16[2,32], index: 1, kind: input, shape index: {}]   ;;  %s153_s2 = inlined_call_operand.vmem [shape: bf16[2,32], index: 2, kind: input, shape index: {}]   ;;  %s154_s3 = inlined_call_operand.vmem [shape: bf16[2,32], index: 3, kind: input, shape index: {}]   ;;  %s155_s4 = inlined_call_operand.vmem [shape: bf16[2,32], index: 4, kind: output, shape index: {0}]   ;;  %s156_s5 = inlined_call_operand.hbm [shape: s8[2,32], index: 5, kind: output, shape index: {1}]  }
   0x1   :  { %v20_v0 = vld [vmem:[%s151_s0] sm:$0x1] }
   0x2   :  { %v22_v1 = vld [vmem:[%s152_s1] sm:$0x1]  ;;  %v21_v2 = vunpack.c.l.bf16 %v20_v0 }
   0x3   :  { %v23_v3 = vunpack.c.l.bf16 %v22_v1  ;;  %v27_v4 = vld [vmem:[%s153_s2] sm:$0x1] }
   0x4   :  { %v32_v5 = vld [vmem:[%s154_s3] sm:$0x1]  ;;  %v28_v6 = vunpack.c.l.bf16 %v27_v4 }
   0x5   :  { %vm24_vm0 = vcmp.gt.f32.partialorder %v23_v3, %v21_v2  ;;  %v33_v7 = vunpack.c.l.bf16 %v32_v5 }
   0x6   :  { %11 = vsyncpa [#allocation3], 0  ;;  %v25_v8 = vsel %vm24_vm0, %v23_v3, %v21_v2  ;;  %v92_v9 = vmov 0   ;;  %vm38_vm3 = vcmask 253952   ;;  %vm43_vm4 = vsmask.f32 256 }
   0x7   :  { %v26_v10 = vsel %vm24_vm0, 1, %v92_v9  ;;  %vm29_vm1 = vcmp.gt.f32.partialorder %v28_v6, %v25_v8  ;;  %s93_s0 = smov [#allocation2]   ;;  %vm44_vm5 = vmand %vm38_vm3, %vm43_vm4  ;;  %v45_v17 = vld [vmem:[#allocation2] sm:$0x1] }
   0x8   :  { %v30_v11 = vsel %vm29_vm1, %v28_v6, %v25_v8  ;;  %v31_v12 = vsel %vm29_vm1, 2, %v26_v10  ;;  %s56_s1 = sshll.u32 %s93_s0, 4  ;;  %s57_s1 = int_to_ptr.vmem [resolvable:$true] %s56_s1 }
   0x9   :  { %vm34_vm2 = vcmp.gt.f32.partialorder %v33_v7, %v30_v11  ;;  %s68_s26 = scalar_lea.vmem %s57_s1, 16  ;;  %s72_s27 = scalar_lea.vmem %s57_s1, 32 }
   0xa   :  { %v36_v13 = vsel %vm34_vm2, 3, %v31_v12  ;;  %v35_v14 = vsel %vm34_vm2, %v33_v7, %v30_v11  ;;  %p69_p0 = scmp.ne.s32.totalorder %s57_s1, %s68_s26  ;;  %p73_p1 = scmp.lt.s32.totalorder %s57_s1, %s57_s1 }
   0xb   :  { %v40_v15 = vpack.c.b16 %v36_v13, %v36_v13  ;;  %v37_v16 = vpack.c.bf16 %v35_v14, %v35_v14  ;;  %p74_p2 = scmp.lt.s32.totalorder %s72_s27, %s68_s26 }
   0xd   :  { %v41_v18 = vpack.c.b8 %v40_v15, %v40_v15  ;;  %39 = vst.msk [vmem:[%s155_s4] sm:$0x1] %vm38_vm3, %v37_v16  ;;  %p75_p3 = por %p74_p2, %p73_p1 }
   0xf   :  { %v46_v19 = vsel %vm44_vm5, %v41_v18, %v45_v17  ;;  %p76_p4 = pnand %p75_p3, %p69_p0 }
  0x10   :  { %47 = vst [vmem:[#allocation2] sm:$0x1] %v46_v19 }
  0x11   :  { %79 = shalt.err (!%p76_p4)
}
  0x12   :  { %s80_s30 = scalar_lea.hbm %s156_s5, 16 }
  0x13   :  { %p81_p5 = scmp.ne.s32.totalorder %s156_s5, %s80_s30  ;;  %p84_p6 = scmp.lt.u32.totalorder %s80_s30, %s156_s5 }
  0x15   :  { %p86_p7 = pnand %p84_p6, %p81_p5 }
  0x17   :  { %89 = shalt.err (!%p86_p7)
}
  0x18   :  { %59 = dma.vmem_to_hbm [thread:$0]  %s57_s1, 16, %s156_s5, [#allocation3]  }
  0x19   :  { %90 = dma.done.wait [#allocation3], 16  }
  0x1a   :  { %91 = vsyncadd [#allocation3], 4294967280 }
  0x1b   :  { %65 = vsyncpa [#allocation3], 1 }

// kernel: _encode.10
= control target key start
LH: loop header
LB: loop body
LE: loop exit
PB: predicated region body
PF: predicated region fallthrough
CT: control target
= control target key end

     0   :  { %v322_v3 = vmov 0.0|0.0   ;;  %v323_v4 = vmov 1983009808   ;;  %v63_v6 = vlaneseq  ;;  %vm324_vm0 = vmmov 0   ;;  %s463_s1 = inlined_call_operand.vmem [shape: f32[288,128], index: 1, kind: input, shape index: {}]   ;;  %s464_s0 = inlined_call_operand.vmem [shape: f32[2,288], index: 0, kind: input, shape index: {}]   ;;  %s465_s2 = inlined_call_operand.vmem [shape: f32[1,128], index: 2, kind: input, shape index: {}]   ;;  %s466_s3 = inlined_call_operand.vmem [shape: f32[2,128], index: 3, kind: output, shape index: {}]  }
   0x1   :  { %v31_v0 = vld [vmem:[%s463_s1 + $0x80] sm:$0xff]  ;;  %v32_v1 = vld [vmem:[%s463_s1 + $0x88] sm:$0xff]  ;;  %311 = vmatprep.subr.bf16.mxu1 %v322_v3  ;;  %v61_v5 = vunpack.c.l.s4 %v323_v4  ;;  %v33_v9 = vld [vmem:[%s463_s1 + $0x90] sm:$0xff]  ;;  %v325_v11 = vmov 0.0   ;;  %vm77_vm1 = vcmask 261120  }
   0x2   :  { %v15_v2 = vld [vmem:[%s463_s1] sm:$0xff]  ;;  %v279_v7 = vpack.c.bf16 %v32_v1, %v31_v0  ;;  %v16_v8 = vld [vmem:[%s463_s1 + $0x8] sm:$0xff]  ;;  %v34_v10 = vld [vmem:[%s463_s1 + $0x98] sm:$0xff]  ;;  %276 = vmatprep.mubr.msk.f32.mxu1 %vm324_vm0, %v325_v11  ;;  %v64_v20 = vshrl.u32 %v63_v6, 7 }
   0x3   :  { %v281_v12 = vpack.c.bf16 %v16_v8, %v15_v2  ;;  %v283_v13 = vpack.c.bf16 %v34_v10, %v33_v9  ;;  %v17_v14 = vld [vmem:[%s463_s1 + $0x10] sm:$0xff]  ;;  %v18_v15 = vld [vmem:[%s463_s1 + $0x18] sm:$0xff]  ;;  %v35_v16 = vld [vmem:[%s463_s1 + $0xa0] sm:$0xff]  ;;  %v62_v19 = vunpack.c.0.s8 %v61_v5 }
   0x4   :  { %280 = vmatprep.subr.bf16.mxu0 %v279_v7  ;;  %v36_v17 = vld [vmem:[%s463_s1 + $0xa8] sm:$0xff]  ;;  %v285_v18 = vpack.c.bf16 %v18_v15, %v17_v14  ;;  %v19_v22 = vld [vmem:[%s463_s1 + $0x20] sm:$0xff]  ;;  %v37_v24 = vld [vmem:[%s463_s1 + $0xb0] sm:$0xff] }
   0x5   :  { %282 = vmatpush3.bf16.msra.mxu0 %v281_v12  ;;  %v287_v21 = vpack.c.bf16 %v36_v17, %v35_v16  ;;  %v20_v23 = vld [vmem:[%s463_s1 + $0x28] sm:$0xff]  ;;  %v38_v25 = vld [vmem:[%s463_s1 + $0xb8] sm:$0xff]  ;;  %v65_v27 = vsub.s32 %v62_v19, %v64_v20  ;;  %v21_v29 = vld [vmem:[%s463_s1 + $0x30] sm:$0xff] }
   0x6   :  { %284 = vmatprep.subr.bf16.mxu0 %v283_v13  ;;  %v289_v26 = vpack.c.bf16 %v20_v23, %v19_v22  ;;  %v291_v28 = vpack.c.bf16 %v38_v25, %v37_v24  ;;  %v22_v30 = vld [vmem:[%s463_s1 + $0x38] sm:$0xff]  ;;  %v39_v31 = vld [vmem:[%s463_s1 + $0xc0] sm:$0xff]  ;;  %v40_v32 = vld [vmem:[%s463_s1 + $0xc8] sm:$0xff] }
   0x7   :  { %v47_v33 = vld [vmem:[%s463_s1 + $0x100] sm:$0xff]  ;;  %v48_v34 = vld [vmem:[%s463_s1 + $0x108] sm:$0xff]  ;;  %v49_v36 = vld [vmem:[%s463_s1 + $0x110] sm:$0xff]  ;;  %v293_v37 = vpack.c.bf16 %v22_v30, %v21_v29  ;;  %v295_v41 = vpack.c.bf16 %v40_v32, %v39_v31 }
   0x8   :  { %v14_v35 = vld [vmem:[%s464_s0] sm:$0x3f]  ;;  %v312_v38 = vpack.c.bf16 %v48_v34, %v47_v33  ;;  %v50_v40 = vld [vmem:[%s463_s1 + $0x118] sm:$0xff]  ;;  %v24_v43 = vld [vmem:[%s463_s1 + $0x48] sm:$0xff] }
   0x9   :  { %286 = vmatpush3.bf16.msra.mxu0 %v285_v18  ;;  %v66_v39 = vrot.slane %v14_v35, %v65_v27  ;;  %v23_v42 = vld [vmem:[%s463_s1 + $0x40] sm:$0xff]  ;;  %v59_v44 = vcombine.high %v14_v35, %v14_v35  ;;  %v41_v45 = vld [vmem:[%s463_s1 + $0xd0] sm:$0xff]  ;;  %v42_v46 = vld [vmem:[%s463_s1 + $0xd8] sm:$0xff]  ;;  %v315_v48 = vpack.c.bf16 %v50_v40, %v49_v36 }
   0xa   :  { %288 = vmatprep.subr.bf16.mxu0 %v287_v21  ;;  %313 = vmatpush3.bf16.msra.mxu1 %v312_v38  ;;  %v297_v49 = vpack.c.bf16 %v24_v43, %v23_v42  ;;  %v299_v50 = vpack.c.bf16 %v42_v46, %v41_v45  ;;  %v25_v51 = vld [vmem:[%s463_s1 + $0x50] sm:$0xff]  ;;  %v26_v52 = vld [vmem:[%s463_s1 + $0x58] sm:$0xff]  ;;  %v43_v54 = vld [vmem:[%s463_s1 + $0xe0] sm:$0xff] }
   0xb   :  { %v74_v47 = vcombine.high %v66_v39, %v66_v39  ;;  %314 = vmatprep.subr.bf16.mxu1 %v322_v3  ;;  %v73_v53 = vrot.slane %v59_v44, %v65_v27  ;;  %v44_v55 = vld [vmem:[%s463_s1 + $0xe8] sm:$0xff]  ;;  %v301_v56 = vpack.c.bf16 %v26_v52, %v25_v51  ;;  %v27_v58 = vld [vmem:[%s463_s1 + $0x60] sm:$0xff]  ;;  %v45_v60 = vld [vmem:[%s463_s1 + $0xf0] sm:$0xff] }
   0xc   :  { %v303_v57 = vpack.c.bf16 %v44_v55, %v43_v54  ;;  %v28_v59 = vld [vmem:[%s463_s1 + $0x68] sm:$0xff]  ;;  %v46_v61 = vld [vmem:[%s463_s1 + $0xf8] sm:$0xff]  ;;  %v29_v0 = vld [vmem:[%s463_s1 + $0x70] sm:$0xff] }
   0xd   :  { %290 = vmatpush3.bf16.msra.mxu0 %v289_v26  ;;  %144 = vmatprep.mubr.f32.mxu0 %v74_v47  ;;  %v305_v62 = vpack.c.bf16 %v28_v59, %v27_v58  ;;  %v307_v63 = vpack.c.bf16 %v46_v61, %v45_v60  ;;  %v30_v1 = vld [vmem:[%s463_s1 + $0x78] sm:$0xff]  ;;  %v226_v7 = vld [vmem:[%s465_s2] ss:$0 sm:$0xff] }
   0xe   :  { %292 = vmatprep.subr.bf16.mxu0 %v291_v28  ;;  %316 = vmatpush3.bf16.msra.mxu1 %v315_v48  ;;  %v309_v2 = vpack.c.bf16 %v30_v1, %v29_v0 }
  0x11   :  { %294 = vmatpush3.bf16.msra.mxu0 %v293_v37  ;;  %277 = vmatmul.mubr.msk.f32.vlgmr.msra.gmra.mrb[0].mxu1 %vm77_vm1, %v73_v53 }
  0x12   :  { %296 = vmatprep.subr.bf16.mxu0 %v295_v41 }
  0x15   :  { %298 = vmatpush3.bf16.msra.mxu0 %v297_v49 }
  0x16   :  { %300 = vmatprep.subr.bf16.mxu0 %v299_v50 }
  0x19   :  { %302 = vmatpush3.bf16.msra.mxu0 %v301_v56 }
  0x1a   :  { %304 = vmatprep.subr.bf16.mxu0 %v303_v57 }
  0x1d   :  { %306 = vmatpush3.bf16.msra.mxu0 %v305_v62 }
  0x1e   :  { %308 = vmatprep.subr.bf16.mxu0 %v307_v63 }
  0x21   :  { %310 = vmatpush3.bf16.msra.mxu0 %v309_v2 }
  0x24   :  { %145 = vmatmul.mubr.f32.vlgmr.msra.gmra.mrb[0].mxu0 %v66_v39 }
  0xe4   :  { %v216_v3 = vpop.f32.mrb[0].mxu1 }
  0xe5   :  { %v278_v4 = vpop.f32.mrb[1].mxu1 }
  0xf7   :  { %v260_v5 = vpop.f32.mrb[0].mxu0 }
  0xf8   :  { %v261_v6 = vpop.f32.mrb[1].mxu0 }
  0xf9   :  { %v262_v8 = vadd.f32 %v261_v6, %v260_v5 }
  0xfb   :  { %v147_v9 = vadd.f32 %v262_v8, %v226_v7 }
  0xfd   :  { %v217_v10 = vadd.f32 %v216_v3, %v147_v9 }
  0xff   :  { %v220_v11 = vmax.f32 %v217_v10, 0.0 }
 0x101   :  { %221 = vst [vmem:[%s466_s3] sm:$0x3] %v220_v11 }

// kernel: _encode.8
= control target key start
LH: loop header
LB: loop body
LE: loop exit
PB: predicated region body
PF: predicated region fallthrough
CT: control target
= control target key end

     0   :  { %vm3000_vm0 = vmmov 0   ;;  %vm2247_vm2 = vcmask 257024   ;;  %s3666_s1 = inlined_call_operand.vmem [shape: bf16[3200,32], index: 1, kind: input, shape index: {}]   ;;  %s3667_s0 = inlined_call_operand.vmem [shape: bf16[8,3200], index: 0, kind: input, shape index: {}]   ;;  %s3668_s2 = inlined_call_operand.vmem [shape: f32[1,32], index: 2, kind: input, shape index: {}]   ;;  %s3669_s3 = inlined_call_operand.vmem [shape: bf16[8,32], index: 3, kind: output, shape index: {}]  }
   0x1   :  { %v2774_v0 = vld [vmem:[%s3666_s1 + $0x40] sm:$0xff]   ;;  %v2778_v4 = vld [vmem:[%s3666_s1 + $0x48] sm:$0xff]   ;;  %v2782_v8 = vld [vmem:[%s3666_s1 + $0x50] sm:$0xff]  }
   0x2   :  { %v2775_v1 = vld [vmem:[%s3666_s1] sm:$0xff]   ;;  %2479 = vmatprep.subr.bf16.mxu0 %v2774_v0  ;;  %v2779_v5 = vld [vmem:[%s3666_s1 + $0x8] sm:$0xff]   ;;  %v2783_v9 = vld [vmem:[%s3666_s1 + $0x10] sm:$0xff]  }
   0x3   :  { %v2776_v2 = vld [vmem:[%s3666_s1 + $0xc0] sm:$0xff]   ;;  %2480 = vmatpush3.bf16.msra.mxu0 %v2775_v1  ;;  %v2780_v6 = vld [vmem:[%s3666_s1 + $0xc8] sm:$0xff]   ;;  %v2784_v10 = vld [vmem:[%s3666_s1 + $0xd0] sm:$0xff]  }
   0x4   :  { %v2777_v3 = vld [vmem:[%s3666_s1 + $0x80] sm:$0xff]   ;;  %2501 = vmatprep.subr.bf16.mxu1 %v2776_v2  ;;  %2481 = vmatprep.subr.bf16.mxu0 %v2778_v4  ;;  %v2781_v7 = vld [vmem:[%s3666_s1 + $0x88] sm:$0xff]   ;;  %v2785_v11 = vld [vmem:[%s3666_s1 + $0x90] sm:$0xff]  }
   0x5   :  { %2502 = vmatpush3.bf16.msra.mxu1 %v2777_v3  ;;  %v2786_v12 = vld [vmem:[%s3666_s1 + $0x58] sm:$0xff]   ;;  %v2790_v16 = vld [vmem:[%s3666_s1 + $0x60] sm:$0xff]   ;;  %v2794_v20 = vld [vmem:[%s3666_s1 + $0x68] sm:$0xff]  }
   0x6   :  { %2503 = vmatprep.subr.bf16.mxu1 %v2780_v6  ;;  %v2787_v13 = vld [vmem:[%s3666_s1 + $0x18] sm:$0xff]   ;;  %v2791_v17 = vld [vmem:[%s3666_s1 + $0x20] sm:$0xff]   ;;  %v2795_v21 = vld [vmem:[%s3666_s1 + $0x28] sm:$0xff]  }
   0x7   :  { %2482 = vmatpush3.bf16.msra.mxu0 %v2779_v5  ;;  %v2788_v14 = vld [vmem:[%s3666_s1 + $0xd8] sm:$0xff]   ;;  %v2792_v18 = vld [vmem:[%s3666_s1 + $0xe0] sm:$0xff]   ;;  %v2796_v22 = vld [vmem:[%s3666_s1 + $0xe8] sm:$0xff]  }
   0x8   :  { %2483 = vmatprep.subr.bf16.mxu0 %v2782_v8  ;;  %v2789_v15 = vld [vmem:[%s3666_s1 + $0x98] sm:$0xff]   ;;  %v2793_v19 = vld [vmem:[%s3666_s1 + $0xa0] sm:$0xff]   ;;  %v2797_v23 = vld [vmem:[%s3666_s1 + $0xa8] sm:$0xff]  }
   0x9   :  { %2504 = vmatpush3.bf16.msra.mxu1 %v2781_v7  ;;  %v2798_v24 = vld [vmem:[%s3666_s1 + $0x70] sm:$0xff]   ;;  %v2802_v28 = vld [vmem:[%s3666_s1 + $0x78] sm:$0xff]   ;;  %v15_v31 = vld [vmem:[%s3667_s0] sm:$0xff] }
   0xa   :  { %2505 = vmatprep.subr.bf16.mxu1 %v2784_v10  ;;  %v2799_v25 = vld [vmem:[%s3666_s1 + $0x30] sm:$0xff]   ;;  %v2803_v29 = vld [vmem:[%s3666_s1 + $0x38] sm:$0xff]   ;;  %v2254_v32 = vcombine.low %v15_v31, %v15_v31  ;;  %v2255_v33 = vcombine.high %v15_v31, %v15_v31  ;;  %v2808_v35 = vld [vmem:[%s3666_s1 + $0x140] sm:$0xff]  }
   0xb   :  { %2484 = vmatpush3.bf16.msra.mxu0 %v2783_v9  ;;  %v2800_v26 = vld [vmem:[%s3666_s1 + $0xf0] sm:$0xff]   ;;  %v2804_v30 = vld [vmem:[%s3666_s1 + $0xf8] sm:$0xff]   ;;  %v16_v36 = vld [vmem:[%s3667_s0 + $0x8] sm:$0xff] }
   0xc   :  { %2485 = vmatprep.subr.bf16.mxu0 %v2786_v12  ;;  %v2801_v27 = vld [vmem:[%s3666_s1 + $0xb0] sm:$0xff]   ;;  %v2807_v34 = vld [vmem:[%s3666_s1 + $0xb8] sm:$0xff]   ;;  %1755 = vmatprep.mubr.bf16.mxu0 %v2255_v33  ;;  %v2256_v37 = vcombine.low %v16_v36, %v16_v36  ;;  %v2257_v38 = vcombine.high %v16_v36, %v16_v36  ;;  %v2811_v39 = vld [vmem:[%s3666_s1 + $0x100] sm:$0xff]  }
   0xd   :  { %2506 = vmatpush3.bf16.msra.mxu1 %v2785_v11  ;;  %v2812_v40 = vld [vmem:[%s3666_s1 + $0x1c0] sm:$0xff]   ;;  %v2814_v42 = vld [vmem:[%s3666_s1 + $0x148] sm:$0xff]   ;;  %v2818_v46 = vld [vmem:[%s3666_s1 + $0x150] sm:$0xff]  }
   0xe   :  { %2507 = vmatprep.subr.bf16.mxu1 %v2788_v14  ;;  %1795 = vmatprep.mubr.bf16.mxu1 %v2257_v38  ;;  %v2813_v41 = vld [vmem:[%s3666_s1 + $0x180] sm:$0xff]   ;;  %v2815_v43 = vld [vmem:[%s3666_s1 + $0x108] sm:$0xff]   ;;  %v2819_v47 = vld [vmem:[%s3666_s1 + $0x110] sm:$0xff]  }
   0xf   :  { %2486 = vmatpush3.bf16.msra.mxu0 %v2787_v13  ;;  %v2816_v44 = vld [vmem:[%s3666_s1 + $0x1c8] sm:$0xff]   ;;  %v2820_v48 = vld [vmem:[%s3666_s1 + $0x1d0] sm:$0xff]   ;;  %v2822_v50 = vld [vmem:[%s3666_s1 + $0x158] sm:$0xff]  }
  0x10   :  { %2487 = vmatprep.subr.bf16.mxu0 %v2790_v16  ;;  %v2817_v45 = vld [vmem:[%s3666_s1 + $0x188] sm:$0xff]   ;;  %v2821_v49 = vld [vmem:[%s3666_s1 + $0x190] sm:$0xff]   ;;  %v2823_v51 = vld [vmem:[%s3666_s1 + $0x118] sm:$0xff]  }
  0x11   :  { %2508 = vmatpush3.bf16.msra.mxu1 %v2789_v15  ;;  %v2824_v52 = vld [vmem:[%s3666_s1 + $0x1d8] sm:$0xff]   ;;  %v2826_v54 = vld [vmem:[%s3666_s1 + $0x160] sm:$0xff]   ;;  %v2830_v58 = vld [vmem:[%s3666_s1 + $0x168] sm:$0xff]  }
  0x12   :  { %2509 = vmatprep.subr.bf16.mxu1 %v2792_v18  ;;  %v2825_v53 = vld [vmem:[%s3666_s1 + $0x198] sm:$0xff]   ;;  %v2827_v55 = vld [vmem:[%s3666_s1 + $0x120] sm:$0xff]   ;;  %v2831_v59 = vld [vmem:[%s3666_s1 + $0x128] sm:$0xff]  }
  0x13   :  { %2488 = vmatpush3.bf16.msra.mxu0 %v2791_v17  ;;  %v2828_v56 = vld [vmem:[%s3666_s1 + $0x1e0] sm:$0xff]   ;;  %v2832_v60 = vld [vmem:[%s3666_s1 + $0x1e8] sm:$0xff]   ;;  %v2834_v62 = vld [vmem:[%s3666_s1 + $0x170] sm:$0xff]  }
  0x14   :  { %2489 = vmatprep.subr.bf16.mxu0 %v2794_v20  ;;  %v2829_v57 = vld [vmem:[%s3666_s1 + $0x1a0] sm:$0xff]   ;;  %v2833_v61 = vld [vmem:[%s3666_s1 + $0x1a8] sm:$0xff]   ;;  %v2835_v63 = vld [vmem:[%s3666_s1 + $0x130] sm:$0xff]  }
  0x15   :  { %2510 = vmatpush3.bf16.msra.mxu1 %v2793_v19  ;;  %v2836_v0 = vld [vmem:[%s3666_s1 + $0x1f0] sm:$0xff]   ;;  %v2838_v2 = vld [vmem:[%s3666_s1 + $0x178] sm:$0xff]   ;;  %v2844_v9 = vld [vmem:[%s3666_s1 + $0x240] sm:$0xff]  }
  0x16   :  { %2511 = vmatprep.subr.bf16.mxu1 %v2796_v22  ;;  %v2837_v1 = vld [vmem:[%s3666_s1 + $0x1b0] sm:$0xff]   ;;  %v2839_v3 = vld [vmem:[%s3666_s1 + $0x138] sm:$0xff]   ;;  %v2847_v13 = vld [vmem:[%s3666_s1 + $0x200] sm:$0xff]  }
  0x17   :  { %2490 = vmatpush3.bf16.msra.mxu0 %v2795_v21  ;;  %v2840_v4 = vld [vmem:[%s3666_s1 + $0x1f8] sm:$0xff]   ;;  %v17_v5 = vld [vmem:[%s3667_s0 + $0x10] sm:$0xff]  ;;  %v2848_v14 = vld [vmem:[%s3666_s1 + $0x2c0] sm:$0xff]  }
  0x18   :  { %2491 = vmatprep.subr.bf16.mxu0 %v2798_v24  ;;  %v2258_v6 = vcombine.low %v17_v5, %v17_v5  ;;  %v2259_v7 = vcombine.high %v17_v5, %v17_v5  ;;  %v2843_v8 = vld [vmem:[%s3666_s1 + $0x1b8] sm:$0xff]   ;;  %v2849_v15 = vld [vmem:[%s3666_s1 + $0x280] sm:$0xff]   ;;  %v2850_v16 = vld [vmem:[%s3666_s1 + $0x248] sm:$0xff]  }
  0x19   :  { %2512 = vmatpush3.bf16.msra.mxu1 %v2797_v23  ;;  %v18_v10 = vld [vmem:[%s3667_s0 + $0x18] sm:$0xff]  ;;  %v2851_v17 = vld [vmem:[%s3666_s1 + $0x208] sm:$0xff]   ;;  %v2854_v20 = vld [vmem:[%s3666_s1 + $0x250] sm:$0xff]  }
  0x1a   :  { %2513 = vmatprep.subr.bf16.mxu1 %v2800_v26  ;;  %v2260_v11 = vcombine.low %v18_v10, %v18_v10  ;;  %v2261_v12 = vcombine.high %v18_v10, %v18_v10  ;;  %v2852_v18 = vld [vmem:[%s3666_s1 + $0x2c8] sm:$0xff]   ;;  %v2855_v21 = vld [vmem:[%s3666_s1 + $0x210] sm:$0xff]   ;;  %v2858_v24 = vld [vmem:[%s3666_s1 + $0x258] sm:$0xff]  }
  0x1b   :  { %2492 = vmatpush3.bf16.msra.mxu0 %v2799_v25  ;;  %v2853_v19 = vld [vmem:[%s3666_s1 + $0x288] sm:$0xff]   ;;  %v2856_v22 = vld [vmem:[%s3666_s1 + $0x2d0] sm:$0xff]   ;;  %v2859_v25 = vld [vmem:[%s3666_s1 + $0x218] sm:$0xff]  }
  0x1c   :  { %2493 = vmatprep.subr.bf16.mxu0 %v2802_v28  ;;  %v2857_v23 = vld [vmem:[%s3666_s1 + $0x290] sm:$0xff]   ;;  %v2860_v26 = vld [vmem:[%s3666_s1 + $0x2d8] sm:$0xff]   ;;  %v2862_v28 = vld [vmem:[%s3666_s1 + $0x260] sm:$0xff]  }
  0x1d   :  { %2514 = vmatpush3.bf16.msra.mxu1 %v2801_v27  ;;  %v2861_v27 = vld [vmem:[%s3666_s1 + $0x298] sm:$0xff]   ;;  %v2865_v31 = vld [vmem:[%s3666_s1 + $0x2a0] sm:$0xff]   ;;  %v2867_v33 = vld [vmem:[%s3666_s1 + $0x228] sm:$0xff]  }
  0x1e   :  { %2515 = vmatprep.subr.bf16.mxu1 %v2804_v30  ;;  %v2864_v30 = vld [vmem:[%s3666_s1 + $0x2e0] sm:$0xff]   ;;  %v2870_v36 = vld [vmem:[%s3666_s1 + $0x270] sm:$0xff]  }
  0x1f   :  { %2494 = vmatpush3.bf16.msra.mxu0 %v2803_v29  ;;  %v2863_v29 = vld [vmem:[%s3666_s1 + $0x220] sm:$0xff]   ;;  %v2872_v38 = vld [vmem:[%s3666_s1 + $0x2f0] sm:$0xff]  }
  0x20   :  { %2523 = vmatprep.subr.bf16.mxu0 %v2808_v35  ;;  %v2869_v35 = vld [vmem:[%s3666_s1 + $0x2a8] sm:$0xff]   ;;  %v2901_v5 = vld [vmem:[%s3666_s1 + $0x3a0] sm:$0xff]   ;;  %v2906_v10 = vld [vmem:[%s3666_s1 + $0x370] sm:$0xff]  }
  0x21   :  { %2516 = vmatpush3.bf16.msra.mxu1 %v2807_v34  ;;  %v2868_v34 = vld [vmem:[%s3666_s1 + $0x2e8] sm:$0xff]  }
  0x22   :  { %1756 = vmatmul.mubr.bf16.vlgmr.msra.gmra.mrb[0].mxu0 %v2254_v32  ;;  %2545 = vmatprep.subr.bf16.mxu1 %v2812_v40  ;;  %v2866_v32 = vld [vmem:[%s3666_s1 + $0x268] sm:$0xff]   ;;  %v2874_v40 = vld [vmem:[%s3666_s1 + $0x278] sm:$0xff]  }
  0x23   :  { %2524 = vmatpush3.bf16.msra.mxu0 %v2811_v39  ;;  %1835 = vmatprep.mubr.bf16.mxu0 %v2259_v7  ;;  %v2873_v39 = vld [vmem:[%s3666_s1 + $0x2b0] sm:$0xff]   ;;  %v2903_v7 = vld [vmem:[%s3666_s1 + $0x328] sm:$0xff]  }
  0x24   :  { %1796 = vmatmul.mubr.bf16.vlgmr.msra.gmra.mrb[0].mxu1 %v2256_v37  ;;  %2525 = vmatprep.subr.bf16.mxu0 %v2814_v42  ;;  %v2871_v37 = vld [vmem:[%s3666_s1 + $0x230] sm:$0xff]   ;;  %v2876_v42 = vld [vmem:[%s3666_s1 + $0x2f8] sm:$0xff]  }
  0x25   :  { %2546 = vmatpush3.bf16.msra.mxu1 %v2813_v41  ;;  %1875 = vmatprep.mubr.bf16.mxu1 %v2261_v12  ;;  %v2875_v41 = vld [vmem:[%s3666_s1 + $0x238] sm:$0xff]   ;;  %v2908_v12 = vld [vmem:[%s3666_s1 + $0x3f0] sm:$0xff]  }
  0x26   :  { %2547 = vmatprep.subr.bf16.mxu1 %v2816_v44 }
  0x27   :  { %2526 = vmatpush3.bf16.msra.mxu0 %v2815_v43  ;;  %v19_v43 = vld [vmem:[%s3667_s0 + $0x20] sm:$0xff] }
  0x28   :  { %2527 = vmatprep.subr.bf16.mxu0 %v2818_v46  ;;  %v2262_v44 = vcombine.low %v19_v43, %v19_v43  ;;  %v2879_v46 = vld [vmem:[%s3666_s1 + $0x2b8] sm:$0xff]  }
  0x29   :  { %2548 = vmatpush3.bf16.msra.mxu1 %v2817_v45  ;;  %v2263_v45 = vcombine.high %v19_v43, %v19_v43  ;;  %v2937_v43 = vld [vmem:[%s3666_s1 + $0x4a0] sm:$0xff]  }
  0x2a   :  { %2549 = vmatprep.subr.bf16.mxu1 %v2820_v48  ;;  %v20_v48 = vld [vmem:[%s3667_s0 + $0x28] sm:$0xff] }
  0x2b   :  { %2528 = vmatpush3.bf16.msra.mxu0 %v2819_v47  ;;  %v2880_v47 = vld [vmem:[%s3666_s1 + $0x340] sm:$0xff]  }
  0x2c   :  { %2529 = vmatprep.subr.bf16.mxu0 %v2822_v50  ;;  %v2265_v50 = vcombine.high %v20_v48, %v20_v48 }
  0x2d   :  { %2550 = vmatpush3.bf16.msra.mxu1 %v2821_v49  ;;  %v2264_v49 = vcombine.low %v20_v48, %v20_v48  ;;  %v2942_v48 = vld [vmem:[%s3666_s1 + $0x470] sm:$0xff]  }
  0x2e   :  { %2551 = vmatprep.subr.bf16.mxu1 %v2824_v52  ;;  %v2884_v52 = vld [vmem:[%s3666_s1 + $0x3c0] sm:$0xff]  }
  0x2f   :  { %2530 = vmatpush3.bf16.msra.mxu0 %v2823_v51  ;;  %v2883_v51 = vld [vmem:[%s3666_s1 + $0x300] sm:$0xff]  }
  0x30   :  { %2531 = vmatprep.subr.bf16.mxu0 %v2826_v54  ;;  %v2886_v54 = vld [vmem:[%s3666_s1 + $0x348] sm:$0xff]  }
  0x31   :  { %2552 = vmatpush3.bf16.msra.mxu1 %v2825_v53  ;;  %v2885_v53 = vld [vmem:[%s3666_s1 + $0x380] sm:$0xff]  }
  0x32   :  { %2553 = vmatprep.subr.bf16.mxu1 %v2828_v56  ;;  %v2888_v56 = vld [vmem:[%s3666_s1 + $0x3c8] sm:$0xff]  }
  0x33   :  { %2532 = vmatpush3.bf16.msra.mxu0 %v2827_v55  ;;  %v2887_v55 = vld [vmem:[%s3666_s1 + $0x308] sm:$0xff]  }
  0x34   :  { %2533 = vmatprep.subr.bf16.mxu0 %v2830_v58  ;;  %v2890_v58 = vld [vmem:[%s3666_s1 + $0x350] sm:$0xff]  }
  0x35   :  { %2554 = vmatpush3.bf16.msra.mxu1 %v2829_v57  ;;  %v2889_v57 = vld [vmem:[%s3666_s1 + $0x388] sm:$0xff]  }
  0x36   :  { %2555 = vmatprep.subr.bf16.mxu1 %v2832_v60  ;;  %v2892_v60 = vld [vmem:[%s3666_s1 + $0x3d0] sm:$0xff]  }
  0x37   :  { %2534 = vmatpush3.bf16.msra.mxu0 %v2831_v59  ;;  %v2891_v59 = vld [vmem:[%s3666_s1 + $0x310] sm:$0xff]  }
  0x38   :  { %2535 = vmatprep.subr.bf16.mxu0 %v2834_v62  ;;  %v2894_v62 = vld [vmem:[%s3666_s1 + $0x358] sm:$0xff]  }
  0x39   :  { %2556 = vmatpush3.bf16.msra.mxu1 %v2833_v61  ;;  %v2893_v61 = vld [vmem:[%s3666_s1 + $0x390] sm:$0xff]  }
  0x3a   :  { %2557 = vmatprep.subr.bf16.mxu1 %v2836_v0  ;;  %v2896_v0 = vld [vmem:[%s3666_s1 + $0x3d8] sm:$0xff]  }
  0x3b   :  { %2536 = vmatpush3.bf16.msra.mxu0 %v2835_v63  ;;  %v2895_v63 = vld [vmem:[%s3666_s1 + $0x318] sm:$0xff]  }
  0x3c   :  { %2537 = vmatprep.subr.bf16.mxu0 %v2838_v2  ;;  %v2898_v2 = vld [vmem:[%s3666_s1 + $0x360] sm:$0xff]  }
  0x3d   :  { %2558 = vmatpush3.bf16.msra.mxu1 %v2837_v1  ;;  %v2897_v1 = vld [vmem:[%s3666_s1 + $0x398] sm:$0xff]  }
  0x3e   :  { %2559 = vmatprep.subr.bf16.mxu1 %v2840_v4  ;;  %v2900_v4 = vld [vmem:[%s3666_s1 + $0x3e0] sm:$0xff]  }
  0x3f   :  { %2538 = vmatpush3.bf16.msra.mxu0 %v2839_v3  ;;  %v2899_v3 = vld [vmem:[%s3666_s1 + $0x320] sm:$0xff]  }
  0x40   :  { %2567 = vmatprep.subr.bf16.mxu0 %v2844_v9  ;;  %v2905_v9 = vld [vmem:[%s3666_s1 + $0x3a8] sm:$0xff]  }
  0x41   :  { %2560 = vmatpush3.bf16.msra.mxu1 %v2843_v8  ;;  %v2904_v8 = vld [vmem:[%s3666_s1 + $0x3e8] sm:$0xff]  }
  0x42   :  { %1836 = vmatmul.mubr.bf16.vlgmr.msra.gmra.mrb[4].mxu0 %v2258_v6  ;;  %2589 = vmatprep.subr.bf16.mxu1 %v2848_v14  ;;  %v2902_v6 = vld [vmem:[%s3666_s1 + $0x368] sm:$0xff]   ;;  %v2910_v14 = vld [vmem:[%s3666_s1 + $0x378] sm:$0xff]  }
  0x43   :  { %2568 = vmatpush3.bf16.msra.mxu0 %v2847_v13  ;;  %1915 = vmatprep.mubr.bf16.mxu0 %v2263_v45  ;;  %v2909_v13 = vld [vmem:[%s3666_s1 + $0x3b0] sm:$0xff]   ;;  %v2939_v45 = vld [vmem:[%s3666_s1 + $0x428] sm:$0xff]  }
  0x44   :  { %1876 = vmatmul.mubr.bf16.vlgmr.msra.gmra.mrb[4].mxu1 %v2260_v11  ;;  %2569 = vmatprep.subr.bf16.mxu0 %v2850_v16  ;;  %v2907_v11 = vld [vmem:[%s3666_s1 + $0x330] sm:$0xff]   ;;  %v2912_v16 = vld [vmem:[%s3666_s1 + $0x3f8] sm:$0xff]  }
  0x45   :  { %2590 = vmatpush3.bf16.msra.mxu1 %v2849_v15  ;;  %1955 = vmatprep.mubr.bf16.mxu1 %v2265_v50  ;;  %v2911_v15 = vld [vmem:[%s3666_s1 + $0x338] sm:$0xff]   ;;  %v2944_v50 = vld [vmem:[%s3666_s1 + $0x4f0] sm:$0xff]  }
  0x46   :  { %2591 = vmatprep.subr.bf16.mxu1 %v2852_v18 }
  0x47   :  { %2570 = vmatpush3.bf16.msra.mxu0 %v2851_v17  ;;  %v21_v17 = vld [vmem:[%s3667_s0 + $0x30] sm:$0xff] }
  0x48   :  { %2571 = vmatprep.subr.bf16.mxu0 %v2854_v20  ;;  %v2266_v18 = vcombine.low %v21_v17, %v21_v17  ;;  %v2915_v20 = vld [vmem:[%s3666_s1 + $0x3b8] sm:$0xff]  }
  0x49   :  { %2592 = vmatpush3.bf16.msra.mxu1 %v2853_v19  ;;  %v2267_v19 = vcombine.high %v21_v17, %v21_v17  ;;  %v2973_v17 = vld [vmem:[%s3666_s1 + $0x5a0] sm:$0xff]  }
  0x4a   :  { %2593 = vmatprep.subr.bf16.mxu1 %v2856_v22  ;;  %v22_v22 = vld [vmem:[%s3667_s0 + $0x38] sm:$0xff] }
  0x4b   :  { %2572 = vmatpush3.bf16.msra.mxu0 %v2855_v21  ;;  %v2916_v21 = vld [vmem:[%s3666_s1 + $0x440] sm:$0xff]  }
  0x4c   :  { %2573 = vmatprep.subr.bf16.mxu0 %v2858_v24  ;;  %v2269_v24 = vcombine.high %v22_v22, %v22_v22 }
  0x4d   :  { %2594 = vmatpush3.bf16.msra.mxu1 %v2857_v23  ;;  %v2268_v23 = vcombine.low %v22_v22, %v22_v22  ;;  %v2978_v22 = vld [vmem:[%s3666_s1 + $0x570] sm:$0xff]  }
  0x4e   :  { %2595 = vmatprep.subr.bf16.mxu1 %v2860_v26  ;;  %v2920_v26 = vld [vmem:[%s3666_s1 + $0x4c0] sm:$0xff]  }
  0x4f   :  { %2574 = vmatpush3.bf16.msra.mxu0 %v2859_v25  ;;  %v2919_v25 = vld [vmem:[%s3666_s1 + $0x400] sm:$0xff]  }
  0x50   :  { %2575 = vmatprep.subr.bf16.mxu0 %v2862_v28  ;;  %v2922_v28 = vld [vmem:[%s3666_s1 + $0x448] sm:$0xff]  }
  0x51   :  { %2596 = vmatpush3.bf16.msra.mxu1 %v2861_v27  ;;  %v2921_v27 = vld [vmem:[%s3666_s1 + $0x480] sm:$0xff]  }
  0x52   :  { %2597 = vmatprep.subr.bf16.mxu1 %v2864_v30  ;;  %v2924_v30 = vld [vmem:[%s3666_s1 + $0x4c8] sm:$0xff]  }
  0x53   :  { %2576 = vmatpush3.bf16.msra.mxu0 %v2863_v29  ;;  %v2923_v29 = vld [vmem:[%s3666_s1 + $0x408] sm:$0xff]  }
  0x54   :  { %2577 = vmatprep.subr.bf16.mxu0 %v2866_v32  ;;  %v2926_v32 = vld [vmem:[%s3666_s1 + $0x450] sm:$0xff]  }
  0x55   :  { %2598 = vmatpush3.bf16.msra.mxu1 %v2865_v31  ;;  %v2925_v31 = vld [vmem:[%s3666_s1 + $0x488] sm:$0xff]  }
  0x56   :  { %2599 = vmatprep.subr.bf16.mxu1 %v2868_v34  ;;  %v2928_v34 = vld [vmem:[%s3666_s1 + $0x4d0] sm:$0xff]  }
  0x57   :  { %2578 = vmatpush3.bf16.msra.mxu0 %v2867_v33  ;;  %v2927_v33 = vld [vmem:[%s3666_s1 + $0x410] sm:$0xff]  }
  0x58   :  { %2579 = vmatprep.subr.bf16.mxu0 %v2870_v36  ;;  %v2930_v36 = vld [vmem:[%s3666_s1 + $0x458] sm:$0xff]  }
  0x59   :  { %2600 = vmatpush3.bf16.msra.mxu1 %v2869_v35  ;;  %v2929_v35 = vld [vmem:[%s3666_s1 + $0x490] sm:$0xff]  }
  0x5a   :  { %2601 = vmatprep.subr.bf16.mxu1 %v2872_v38  ;;  %v2932_v38 = vld [vmem:[%s3666_s1 + $0x4d8] sm:$0xff]  }
  0x5b   :  { %2580 = vmatpush3.bf16.msra.mxu0 %v2871_v37  ;;  %v2931_v37 = vld [vmem:[%s3666_s1 + $0x418] sm:$0xff]  }
  0x5c   :  { %2581 = vmatprep.subr.bf16.mxu0 %v2874_v40  ;;  %v2934_v40 = vld [vmem:[%s3666_s1 + $0x460] sm:$0xff]  }
  0x5d   :  { %2602 = vmatpush3.bf16.msra.mxu1 %v2873_v39  ;;  %v2933_v39 = vld [vmem:[%s3666_s1 + $0x498] sm:$0xff]  }
  0x5e   :  { %2603 = vmatprep.subr.bf16.mxu1 %v2876_v42  ;;  %v2936_v42 = vld [vmem:[%s3666_s1 + $0x4e0] sm:$0xff]  }
  0x5f   :  { %2582 = vmatpush3.bf16.msra.mxu0 %v2875_v41  ;;  %v2935_v41 = vld [vmem:[%s3666_s1 + $0x420] sm:$0xff]  }
  0x60   :  { %2611 = vmatprep.subr.bf16.mxu0 %v2880_v47  ;;  %v2941_v47 = vld [vmem:[%s3666_s1 + $0x4a8] sm:$0xff]  }
  0x61   :  { %2604 = vmatpush3.bf16.msra.mxu1 %v2879_v46  ;;  %v2940_v46 = vld [vmem:[%s3666_s1 + $0x4e8] sm:$0xff]  }
  0x62   :  { %1916 = vmatmul.mubr.bf16.vlgmr.msra.gmra.mrb[8].mxu0 %v2262_v44  ;;  %2633 = vmatprep.subr.bf16.mxu1 %v2884_v52  ;;  %v2938_v44 = vld [vmem:[%s3666_s1 + $0x468] sm:$0xff]   ;;  %v2946_v52 = vld [vmem:[%s3666_s1 + $0x478] sm:$0xff]  }
  0x63   :  { %2612 = vmatpush3.bf16.msra.mxu0 %v2883_v51  ;;  %1995 = vmatprep.mubr.bf16.mxu0 %v2267_v19  ;;  %v2945_v51 = vld [vmem:[%s3666_s1 + $0x4b0] sm:$0xff]   ;;  %v2975_v19 = vld [vmem:[%s3666_s1 + $0x528] sm:$0xff]  }
  0x64   :  { %1956 = vmatmul.mubr.bf16.vlgmr.msra.gmra.mrb[8].mxu1 %v2264_v49  ;;  %2613 = vmatprep.subr.bf16.mxu0 %v2886_v54  ;;  %v2943_v49 = vld [vmem:[%s3666_s1 + $0x430] sm:$0xff]   ;;  %v2948_v54 = vld [vmem:[%s3666_s1 + $0x4f8] sm:$0xff]  }
  0x65   :  { %2634 = vmatpush3.bf16.msra.mxu1 %v2885_v53  ;;  %2035 = vmatprep.mubr.bf16.mxu1 %v2269_v24  ;;  %v2947_v53 = vld [vmem:[%s3666_s1 + $0x438] sm:$0xff]   ;;  %v2980_v24 = vld [vmem:[%s3666_s1 + $0x5f0] sm:$0xff]  }
  0x66   :  { %2635 = vmatprep.subr.bf16.mxu1 %v2888_v56 }
  0x67   :  { %2614 = vmatpush3.bf16.msra.mxu0 %v2887_v55  ;;  %v23_v55 = vld [vmem:[%s3667_s0 + $0x40] sm:$0xff] }
  0x68   :  { %2615 = vmatprep.subr.bf16.mxu0 %v2890_v58  ;;  %v2270_v56 = vcombine.low %v23_v55, %v23_v55  ;;  %v2951_v58 = vld [vmem:[%s3666_s1 + $0x4b8] sm:$0xff]  }
  0x69   :  { %2636 = vmatpush3.bf16.msra.mxu1 %v2889_v57  ;;  %v2271_v57 = vcombine.high %v23_v55, %v23_v55 }
  0x6a   :  { %2637 = vmatprep.subr.bf16.mxu1 %v2892_v60  ;;  %v24_v60 = vld [vmem:[%s3667_s0 + $0x48] sm:$0xff] }
  0x6b   :  { %2616 = vmatpush3.bf16.msra.mxu0 %v2891_v59  ;;  %v2952_v59 = vld [vmem:[%s3666_s1 + $0x540] sm:$0xff]  }
  0x6c   :  { %2617 = vmatprep.subr.bf16.mxu0 %v2894_v62  ;;  %v2273_v62 = vcombine.high %v24_v60, %v24_v60 }
  0x6d   :  { %2638 = vmatpush3.bf16.msra.mxu1 %v2893_v61  ;;  %v2272_v61 = vcombine.low %v24_v60, %v24_v60 }
  0x6e   :  { %2639 = vmatprep.subr.bf16.mxu1 %v2896_v0  ;;  %v2956_v0 = vld [vmem:[%s3666_s1 + $0x5c0] sm:$0xff]  }
  0x6f   :  { %2618 = vmatpush3.bf16.msra.mxu0 %v2895_v63  ;;  %v2955_v63 = vld [vmem:[%s3666_s1 + $0x500] sm:$0xff]  }
  0x70   :  { %2619 = vmatprep.subr.bf16.mxu0 %v2898_v2  ;;  %v2958_v2 = vld [vmem:[%s3666_s1 + $0x548] sm:$0xff]  }
  0x71   :  { %2640 = vmatpush3.bf16.msra.mxu1 %v2897_v1  ;;  %v2957_v1 = vld [vmem:[%s3666_s1 + $0x580] sm:$0xff]  }
  0x72   :  { %2641 = vmatprep.subr.bf16.mxu1 %v2900_v4  ;;  %v2960_v4 = vld [vmem:[%s3666_s1 + $0x5c8] sm:$0xff]  }
  0x73   :  { %2620 = vmatpush3.bf16.msra.mxu0 %v2899_v3  ;;  %v2959_v3 = vld [vmem:[%s3666_s1 + $0x508] sm:$0xff]  }
  0x74   :  { %2621 = vmatprep.subr.bf16.mxu0 %v2902_v6  ;;  %v2962_v6 = vld [vmem:[%s3666_s1 + $0x550] sm:$0xff]  }
  0x75   :  { %2642 = vmatpush3.bf16.msra.mxu1 %v2901_v5  ;;  %v2961_v5 = vld [vmem:[%s3666_s1 + $0x588] sm:$0xff]  }
  0x76   :  { %2643 = vmatprep.subr.bf16.mxu1 %v2904_v8  ;;  %v2964_v8 = vld [vmem:[%s3666_s1 + $0x5d0] sm:$0xff]  }
  0x77   :  { %2622 = vmatpush3.bf16.msra.mxu0 %v2903_v7  ;;  %v2963_v7 = vld [vmem:[%s3666_s1 + $0x510] sm:$0xff]  }
  0x78   :  { %2623 = vmatprep.subr.bf16.mxu0 %v2906_v10  ;;  %v2966_v10 = vld [vmem:[%s3666_s1 + $0x558] sm:$0xff]  }
  0x79   :  { %2644 = vmatpush3.bf16.msra.mxu1 %v2905_v9  ;;  %v2965_v9 = vld [vmem:[%s3666_s1 + $0x590] sm:$0xff]  }
  0x7a   :  { %2645 = vmatprep.subr.bf16.mxu1 %v2908_v12  ;;  %v2968_v12 = vld [vmem:[%s3666_s1 + $0x5d8] sm:$0xff]  }
  0x7b   :  { %2624 = vmatpush3.bf16.msra.mxu0 %v2907_v11  ;;  %v2967_v11 = vld [vmem:[%s3666_s1 + $0x518] sm:$0xff]  }
  0x7c   :  { %2625 = vmatprep.subr.bf16.mxu0 %v2910_v14  ;;  %v2970_v14 = vld [vmem:[%s3666_s1 + $0x560] sm:$0xff]  }
  0x7d   :  { %2646 = vmatpush3.bf16.msra.mxu1 %v2909_v13  ;;  %v2969_v13 = vld [vmem:[%s3666_s1 + $0x598] sm:$0xff]  }
  0x7e   :  { %2647 = vmatprep.subr.bf16.mxu1 %v2912_v16  ;;  %v2972_v16 = vld [vmem:[%s3666_s1 + $0x5e0] sm:$0xff]  }
  0x7f   :  { %2626 = vmatpush3.bf16.msra.mxu0 %v2911_v15  ;;  %v2971_v15 = vld [vmem:[%s3666_s1 + $0x520] sm:$0xff]  }
  0x80   :  { %2655 = vmatprep.subr.bf16.mxu0 %v2916_v21  ;;  %v2977_v21 = vld [vmem:[%s3666_s1 + $0x5a8] sm:$0xff]  }
  0x81   :  { %2648 = vmatpush3.bf16.msra.mxu1 %v2915_v20  ;;  %v2976_v20 = vld [vmem:[%s3666_s1 + $0x5e8] sm:$0xff]  }
  0x82   :  { %1996 = vmatmul.mubr.bf16.vlgmr.msra.gmra.mrb[12].mxu0 %v2266_v18  ;;  %2677 = vmatprep.subr.bf16.mxu1 %v2920_v26  ;;  %v2974_v18 = vld [vmem:[%s3666_s1 + $0x568] sm:$0xff]   ;;  %v2982_v26 = vld [vmem:[%s3666_s1 + $0x578] sm:$0xff]  }
  0x83   :  { %2656 = vmatpush3.bf16.msra.mxu0 %v2919_v25  ;;  %2075 = vmatprep.mubr.bf16.mxu0 %v2271_v57  ;;  %v2981_v25 = vld [vmem:[%s3666_s1 + $0x5b0] sm:$0xff]  }
  0x84   :  { %2036 = vmatmul.mubr.bf16.vlgmr.msra.gmra.mrb[12].mxu1 %v2268_v23  ;;  %2657 = vmatprep.subr.bf16.mxu0 %v2922_v28  ;;  %v2979_v23 = vld [vmem:[%s3666_s1 + $0x530] sm:$0xff]   ;;  %v2984_v28 = vld [vmem:[%s3666_s1 + $0x5f8] sm:$0xff]  }
  0x85   :  { %2678 = vmatpush3.bf16.msra.mxu1 %v2921_v27  ;;  %2115 = vmatprep.mubr.bf16.mxu1 %v2273_v62  ;;  %v2983_v27 = vld [vmem:[%s3666_s1 + $0x538] sm:$0xff]  }
  0x86   :  { %2679 = vmatprep.subr.bf16.mxu1 %v2924_v30 }
  0x87   :  { %2658 = vmatpush3.bf16.msra.mxu0 %v2923_v29  ;;  %v25_v29 = vld [vmem:[%s3667_s0 + $0x50] sm:$0xff] }
  0x88   :  { %2659 = vmatprep.subr.bf16.mxu0 %v2926_v32  ;;  %v2274_v30 = vcombine.low %v25_v29, %v25_v29  ;;  %v2987_v32 = vld [vmem:[%s3666_s1 + $0x5b8] sm:$0xff]  }
  0x89   :  { %2680 = vmatpush3.bf16.msra.mxu1 %v2925_v31  ;;  %v2275_v31 = vcombine.high %v25_v29, %v25_v29 }
  0x8a   :  { %2681 = vmatprep.subr.bf16.mxu1 %v2928_v34  ;;  %v2999_v34 = vmov 0.0  }
  0x8b   :  { %2660 = vmatpush3.bf16.msra.mxu0 %v2927_v33  ;;  %v26_v33 = vld [vmem:[%s3667_s0 + $0x58] sm:$0xff] }
  0x8c   :  { %2661 = vmatprep.subr.bf16.mxu0 %v2930_v36  ;;  %v2277_v36 = vcombine.high %v26_v33, %v26_v33 }
  0x8d   :  { %2682 = vmatpush3.bf16.msra.mxu1 %v2929_v35  ;;  %v2276_v35 = vcombine.low %v26_v33, %v26_v33 }
  0x8e   :  { %2683 = vmatprep.subr.bf16.mxu1 %v2932_v38  ;;  %v2991_v38 = vld [vmem:[%s3666_s1 + $0x608] sm:$0xff]  }
  0x8f   :  { %2662 = vmatpush3.bf16.msra.mxu0 %v2931_v37  ;;  %v2990_v37 = vld [vmem:[%s3666_s1 + $0x600] sm:$0xff]  }
  0x90   :  { %2663 = vmatprep.subr.bf16.mxu0 %v2934_v40  ;;  %v2993_v40 = vld [vmem:[%s3666_s1 + $0x618] sm:$0xff]  }
  0x91   :  { %2684 = vmatpush3.bf16.msra.mxu1 %v2933_v39  ;;  %v2992_v39 = vld [vmem:[%s3666_s1 + $0x610] sm:$0xff]  }
  0x92   :  { %2685 = vmatprep.subr.bf16.mxu1 %v2936_v42  ;;  %v2995_v42 = vld [vmem:[%s3666_s1 + $0x628] sm:$0xff]  }
  0x93   :  { %2664 = vmatpush3.bf16.msra.mxu0 %v2935_v41  ;;  %v2994_v41 = vld [vmem:[%s3666_s1 + $0x620] sm:$0xff]  }
  0x94   :  { %2665 = vmatprep.subr.bf16.mxu0 %v2938_v44  ;;  %v2997_v44 = vld [vmem:[%s3666_s1 + $0x638] sm:$0xff]  }
  0x95   :  { %2686 = vmatpush3.bf16.msra.mxu1 %v2937_v43  ;;  %v2996_v43 = vld [vmem:[%s3666_s1 + $0x630] sm:$0xff]  }
  0x96   :  { %2687 = vmatprep.subr.bf16.mxu1 %v2940_v46 }
  0x97   :  { %2666 = vmatpush3.bf16.msra.mxu0 %v2939_v45  ;;  %v2998_v45 = vld [vmem:[%s3667_s0 + $0x60] ss:$0 sps:$4 sm:$0xff]  }
  0x98   :  { %2667 = vmatprep.subr.bf16.mxu0 %v2942_v48 }
  0x99   :  { %2688 = vmatpush3.bf16.msra.mxu1 %v2941_v47  ;;  %v2253_v47 = vld [vmem:[%s3668_s2] ss:$0 sm:$0xff] }
  0x9a   :  { %2689 = vmatprep.subr.bf16.mxu1 %v2944_v50 }
  0x9b   :  { %2668 = vmatpush3.bf16.msra.mxu0 %v2943_v49 }
  0x9c   :  { %2669 = vmatprep.subr.bf16.mxu0 %v2946_v52 }
  0x9d   :  { %2690 = vmatpush3.bf16.msra.mxu1 %v2945_v51 }
  0x9e   :  { %2691 = vmatprep.subr.bf16.mxu1 %v2948_v54 }
  0x9f   :  { %2670 = vmatpush3.bf16.msra.mxu0 %v2947_v53 }
  0xa0   :  { %2699 = vmatprep.subr.bf16.mxu0 %v2952_v59 }
  0xa1   :  { %2692 = vmatpush3.bf16.msra.mxu1 %v2951_v58 }
  0xa2   :  { %2076 = vmatmul.mubr.bf16.vlgmr.msra.gmra.mrb[16].mxu0 %v2270_v56  ;;  %2721 = vmatprep.subr.bf16.mxu1 %v2956_v0 }
  0xa3   :  { %2700 = vmatpush3.bf16.msra.mxu0 %v2955_v63  ;;  %2155 = vmatprep.mubr.bf16.mxu0 %v2275_v31 }
  0xa4   :  { %2116 = vmatmul.mubr.bf16.vlgmr.msra.gmra.mrb[16].mxu1 %v2272_v61  ;;  %2701 = vmatprep.subr.bf16.mxu0 %v2958_v2 }
  0xa5   :  { %2722 = vmatpush3.bf16.msra.mxu1 %v2957_v1  ;;  %2195 = vmatprep.mubr.bf16.mxu1 %v2277_v36 }
  0xa6   :  { %2723 = vmatprep.subr.bf16.mxu1 %v2960_v4 }
  0xa7   :  { %2702 = vmatpush3.bf16.msra.mxu0 %v2959_v3 }
  0xa8   :  { %2703 = vmatprep.subr.bf16.mxu0 %v2962_v6 }
  0xa9   :  { %2724 = vmatpush3.bf16.msra.mxu1 %v2961_v5 }
  0xaa   :  { %2725 = vmatprep.subr.bf16.mxu1 %v2964_v8 }
  0xab   :  { %2704 = vmatpush3.bf16.msra.mxu0 %v2963_v7 }
  0xac   :  { %2705 = vmatprep.subr.bf16.mxu0 %v2966_v10 }
  0xad   :  { %2726 = vmatpush3.bf16.msra.mxu1 %v2965_v9 }
  0xae   :  { %2727 = vmatprep.subr.bf16.mxu1 %v2968_v12 }
  0xaf   :  { %2706 = vmatpush3.bf16.msra.mxu0 %v2967_v11 }
  0xb0   :  { %2707 = vmatprep.subr.bf16.mxu0 %v2970_v14 }
  0xb1   :  { %2728 = vmatpush3.bf16.msra.mxu1 %v2969_v13 }
  0xb2   :  { %2729 = vmatprep.subr.bf16.mxu1 %v2972_v16 }
  0xb3   :  { %2708 = vmatpush3.bf16.msra.mxu0 %v2971_v15 }
  0xb4   :  { %2709 = vmatprep.subr.bf16.mxu0 %v2974_v18 }
  0xb5   :  { %2730 = vmatpush3.bf16.msra.mxu1 %v2973_v17 }
  0xb6   :  { %2731 = vmatprep.subr.bf16.mxu1 %v2976_v20 }
  0xb7   :  { %2710 = vmatpush3.bf16.msra.mxu0 %v2975_v19 }
  0xb8   :  { %2711 = vmatprep.subr.bf16.mxu0 %v2978_v22 }
  0xb9   :  { %2732 = vmatpush3.bf16.msra.mxu1 %v2977_v21 }
  0xba   :  { %2733 = vmatprep.subr.bf16.mxu1 %v2980_v24 }
  0xbb   :  { %2712 = vmatpush3.bf16.msra.mxu0 %v2979_v23 }
  0xbc   :  { %2713 = vmatprep.subr.bf16.mxu0 %v2982_v26 }
  0xbd   :  { %2734 = vmatpush3.bf16.msra.mxu1 %v2981_v25 }
  0xbe   :  { %2735 = vmatprep.subr.bf16.mxu1 %v2984_v28 }
  0xbf   :  { %2714 = vmatpush3.bf16.msra.mxu0 %v2983_v27 }
  0xc0   :  { %2752 = vmatprep.subr.bf16.mxu0 %v2999_v34 }
  0xc1   :  { %2736 = vmatpush3.bf16.msra.mxu1 %v2987_v32 }
  0xc2   :  { %2156 = vmatmul.mubr.bf16.vlgmr.msra.gmra.mrb[20].mxu0 %v2274_v30 }
  0xc3   :  { %2753 = vmatpush3.bf16.msra.mxu0 %v2990_v37  ;;  %2768 = vmatprep.mubr.msk.bf16.mxu0 %vm3000_vm0, %v2999_v34 }
  0xc4   :  { %2196 = vmatmul.mubr.bf16.vlgmr.msra.gmra.mrb[20].mxu1 %v2276_v35  ;;  %2754 = vmatprep.subr.bf16.mxu0 %v2999_v34 }
  0xc7   :  { %2755 = vmatpush3.bf16.msra.mxu0 %v2991_v38 }
  0xc8   :  { %2756 = vmatprep.subr.bf16.mxu0 %v2999_v34 }
  0xcb   :  { %2757 = vmatpush3.bf16.msra.mxu0 %v2992_v39 }
  0xcc   :  { %2758 = vmatprep.subr.bf16.mxu0 %v2999_v34 }
  0xcf   :  { %2759 = vmatpush3.bf16.msra.mxu0 %v2993_v40 }
  0xd0   :  { %2760 = vmatprep.subr.bf16.mxu0 %v2999_v34 }
  0xd3   :  { %2761 = vmatpush3.bf16.msra.mxu0 %v2994_v41 }
  0xd4   :  { %2762 = vmatprep.subr.bf16.mxu0 %v2999_v34 }
  0xd7   :  { %2763 = vmatpush3.bf16.msra.mxu0 %v2995_v42 }
  0xd8   :  { %2764 = vmatprep.subr.bf16.mxu0 %v2999_v34 }
  0xdb   :  { %2765 = vmatpush3.bf16.msra.mxu0 %v2996_v43 }
  0xdc   :  { %2766 = vmatprep.subr.bf16.mxu0 %v2999_v34 }
  0xdf   :  { %2767 = vmatpush3.bf16.msra.mxu0 %v2997_v44 }
  0xe2   :  { %2769 = vmatmul.mubr.bf16.vlgmr.msra.gmra.mrb[24].mxu0 %v2998_v45 }
  0xf5   :  { %v2495_v46 = vpop.f32.mrb[0].mxu0 }
  0xf6   :  { %v2496_v48 = vpop.f32.mrb[1].mxu0 }
  0xf7   :  { %v2497_v49 = vadd.f32 %v2496_v48, %v2495_v46  ;;  %v2498_v50 = vpop.f32.mrb[2].mxu0  ;;  %v2517_v51 = vpop.f32.mrb[0].mxu1 }
  0xf8   :  { %v2499_v52 = vpop.f32.mrb[3].mxu0  ;;  %v2518_v53 = vpop.f32.mrb[1].mxu1 }
  0xf9   :  { %v1758_v54 = vadd.f32 %v2497_v49, %v2253_v47  ;;  %v2519_v55 = vadd.f32 %v2518_v53, %v2517_v51  ;;  %v2520_v56 = vpop.f32.mrb[2].mxu1 }
  0xfa   :  { %v2521_v57 = vpop.f32.mrb[3].mxu1 }
  0xfb   :  { %v1798_v58 = vadd.f32 %v2519_v55, %v1758_v54 }
 0x115   :  { %v2539_v59 = vpop.f32.mrb[4].mxu0 }
 0x116   :  { %v2540_v60 = vpop.f32.mrb[5].mxu0 }
 0x117   :  { %v2541_v61 = vadd.f32 %v2540_v60, %v2539_v59  ;;  %v2542_v62 = vpop.f32.mrb[6].mxu0  ;;  %v2561_v63 = vpop.f32.mrb[4].mxu1 }
 0x118   :  { %v2543_v0 = vpop.f32.mrb[7].mxu0  ;;  %v2562_v2 = vpop.f32.mrb[5].mxu1 }
 0x119   :  { %v1838_v1 = vadd.f32 %v2541_v61, %v1798_v58  ;;  %v2563_v3 = vadd.f32 %v2562_v2, %v2561_v63  ;;  %v2564_v4 = vpop.f32.mrb[6].mxu1 }
 0x11a   :  { %v2565_v5 = vpop.f32.mrb[7].mxu1 }
 0x11b   :  { %v1878_v6 = vadd.f32 %v2563_v3, %v1838_v1 }
 0x135   :  { %v2583_v7 = vpop.f32.mrb[8].mxu0 }
 0x136   :  { %v2584_v8 = vpop.f32.mrb[9].mxu0 }
 0x137   :  { %v2585_v9 = vadd.f32 %v2584_v8, %v2583_v7  ;;  %v2586_v10 = vpop.f32.mrb[10].mxu0  ;;  %v2605_v11 = vpop.f32.mrb[8].mxu1 }
 0x138   :  { %v2587_v12 = vpop.f32.mrb[11].mxu0  ;;  %v2606_v13 = vpop.f32.mrb[9].mxu1 }
 0x139   :  { %v1918_v14 = vadd.f32 %v2585_v9, %v1878_v6  ;;  %v2607_v15 = vadd.f32 %v2606_v13, %v2605_v11  ;;  %v2608_v16 = vpop.f32.mrb[10].mxu1 }
 0x13a   :  { %v2609_v17 = vpop.f32.mrb[11].mxu1 }
 0x13b   :  { %v1958_v18 = vadd.f32 %v2607_v15, %v1918_v14 }
 0x155   :  { %v2627_v19 = vpop.f32.mrb[12].mxu0 }
 0x156   :  { %v2628_v20 = vpop.f32.mrb[13].mxu0 }
 0x157   :  { %v2629_v21 = vadd.f32 %v2628_v20, %v2627_v19  ;;  %v2630_v22 = vpop.f32.mrb[14].mxu0  ;;  %v2649_v23 = vpop.f32.mrb[12].mxu1 }
 0x158   :  { %v2631_v24 = vpop.f32.mrb[15].mxu0  ;;  %v2650_v25 = vpop.f32.mrb[13].mxu1 }
 0x159   :  { %v1998_v26 = vadd.f32 %v2629_v21, %v1958_v18  ;;  %v2651_v27 = vadd.f32 %v2650_v25, %v2649_v23  ;;  %v2652_v28 = vpop.f32.mrb[14].mxu1 }
 0x15a   :  { %v2653_v29 = vpop.f32.mrb[15].mxu1 }
 0x15b   :  { %v2038_v30 = vadd.f32 %v2651_v27, %v1998_v26 }
 0x175   :  { %v2671_v31 = vpop.f32.mrb[16].mxu0 }
 0x176   :  { %v2672_v32 = vpop.f32.mrb[17].mxu0 }
 0x177   :  { %v2673_v33 = vadd.f32 %v2672_v32, %v2671_v31  ;;  %v2674_v34 = vpop.f32.mrb[18].mxu0  ;;  %v2693_v35 = vpop.f32.mrb[16].mxu1 }
 0x178   :  { %v2675_v36 = vpop.f32.mrb[19].mxu0  ;;  %v2694_v38 = vpop.f32.mrb[17].mxu1 }
 0x179   :  { %v2078_v37 = vadd.f32 %v2673_v33, %v2038_v30  ;;  %v2695_v39 = vadd.f32 %v2694_v38, %v2693_v35  ;;  %v2696_v40 = vpop.f32.mrb[18].mxu1 }
 0x17a   :  { %v2697_v41 = vpop.f32.mrb[19].mxu1 }
 0x17b   :  { %v2118_v42 = vadd.f32 %v2695_v39, %v2078_v37 }
 0x195   :  { %v2715_v43 = vpop.f32.mrb[20].mxu0 }
 0x196   :  { %v2716_v44 = vpop.f32.mrb[21].mxu0 }
 0x197   :  { %v2717_v45 = vadd.f32 %v2716_v44, %v2715_v43  ;;  %v2718_v46 = vpop.f32.mrb[22].mxu0  ;;  %v2737_v47 = vpop.f32.mrb[20].mxu1 }
 0x198   :  { %v2719_v48 = vpop.f32.mrb[23].mxu0  ;;  %v2738_v49 = vpop.f32.mrb[21].mxu1 }
 0x199   :  { %v2158_v50 = vadd.f32 %v2717_v45, %v2118_v42  ;;  %v2739_v51 = vadd.f32 %v2738_v49, %v2737_v47  ;;  %v2740_v52 = vpop.f32.mrb[22].mxu1 }
 0x19a   :  { %v2741_v53 = vpop.f32.mrb[23].mxu1 }
 0x19b   :  { %v2198_v54 = vadd.f32 %v2739_v51, %v2158_v50 }
 0x1b5   :  { %v2237_v55 = vpop.f32.mrb[24].mxu0 }
 0x1b6   :  { %v2238_v56 = vadd.f32 %v2237_v55, %v2198_v54  ;;  %v2770_v57 = vpop.f32.mrb[25].mxu0 }
 0x1b7   :  { %v2240_v58 = vpop.f32.mrb[26].mxu0 }
 0x1b8   :  { %vm2243_vm1 = vcmp.ge.f32.partialorder %v2238_v56, 0.0  ;;  %v2244_v59 = vmul.f32 0.01, %v2238_v56  ;;  %v2771_v60 = vpop.f32.mrb[27].mxu0 }
 0x1ba   :  { %v2245_v61 = vsel %vm2243_vm1, %v2238_v56, %v2244_v59 }
 0x1bb   :  { %v2246_v62 = vpack.c.bf16 %v2245_v61, %v2245_v61 }
 0x1bd   :  { %2248 = vst.msk [vmem:[%s3669_s3] sm:$0xf] %vm2247_vm2, %v2246_v62 }

// kernel: _encode.11
= control target key start
LH: loop header
LB: loop body
LE: loop exit
PB: predicated region body
PF: predicated region fallthrough
CT: control target
= control target key end

     0   :  { %v981_v43 = vmov 1983009808   ;;  %v181_v45 = vlaneseq  ;;  %s1494_s0 = inlined_call_operand.vmem [shape: f32[2,1152], index: 0, kind: input, shape index: {}]   ;;  %s1495_s1 = inlined_call_operand.vmem [shape: f32[1152,32], index: 1, kind: input, shape index: {}]   ;;  %s1496_s2 = inlined_call_operand.vmem [shape: f32[1,32], index: 2, kind: input, shape index: {}]   ;;  %s1497_s3 = inlined_call_operand.vmem [shape: f32[2,32], index: 3, kind: input, shape index: {}]   ;;  %s1498_s4 = inlined_call_operand.hbm [shape: f32[2,32], index: 4, kind: output, shape index: {0}]   ;;  %s1499_s5 = inlined_call_operand.vmem [shape: f32[2,32], index: 5, kind: output, shape index: {1}]  }
   0x1   :  { %v39_v0 = vld [vmem:[%s1495_s1 + $0x80] sm:$0xff]  ;;  %v40_v1 = vld [vmem:[%s1495_s1 + $0x88] sm:$0xff]  ;;  %v41_v11 = vld [vmem:[%s1495_s1 + $0x90] sm:$0xff]  ;;  %v179_v44 = vunpack.c.l.s4 %v981_v43 }
   0x2   :  { %v23_v2 = vld [vmem:[%s1495_s1] sm:$0xff]  ;;  %v798_v3 = vpack.c.bf16 %v40_v1, %v39_v0  ;;  %v24_v4 = vld [vmem:[%s1495_s1 + $0x8] sm:$0xff]  ;;  %v42_v13 = vld [vmem:[%s1495_s1 + $0x98] sm:$0xff]  ;;  %v182_v60 = vshrl.u32 %v181_v45, 7 }
   0x3   :  { %v71_v5 = vld [vmem:[%s1495_s1 + $0x180] sm:$0xff]  ;;  %v72_v6 = vld [vmem:[%s1495_s1 + $0x188] sm:$0xff]  ;;  %v800_v7 = vpack.c.bf16 %v24_v4, %v23_v2  ;;  %v25_v14 = vld [vmem:[%s1495_s1 + $0x10] sm:$0xff]  ;;  %v802_v16 = vpack.c.bf16 %v42_v13, %v41_v11  ;;  %v180_v59 = vunpack.c.0.s8 %v179_v44 }
   0x4   :  { %v830_v8 = vpack.c.bf16 %v72_v6, %v71_v5  ;;  %v55_v9 = vld [vmem:[%s1495_s1 + $0x100] sm:$0xff]  ;;  %v56_v10 = vld [vmem:[%s1495_s1 + $0x108] sm:$0xff]  ;;  %799 = vmatprep.subr.bf16.mxu0 %v798_v3  ;;  %v26_v15 = vld [vmem:[%s1495_s1 + $0x18] sm:$0xff] }
   0x5   :  { %v832_v12 = vpack.c.bf16 %v56_v10, %v55_v9  ;;  %801 = vmatpush3.bf16.msra.mxu0 %v800_v7  ;;  %v804_v17 = vpack.c.bf16 %v26_v15, %v25_v14  ;;  %v73_v18 = vld [vmem:[%s1495_s1 + $0x190] sm:$0xff]  ;;  %v74_v19 = vld [vmem:[%s1495_s1 + $0x198] sm:$0xff]  ;;  %v43_v23 = vld [vmem:[%s1495_s1 + $0xa0] sm:$0xff]  ;;  %v1160_v10 = vsub.s32 %v180_v59, %v182_v60 }
   0x6   :  { %831 = vmatprep.subr.bf16.mxu1 %v830_v8  ;;  %v57_v20 = vld [vmem:[%s1495_s1 + $0x110] sm:$0xff]  ;;  %v834_v21 = vpack.c.bf16 %v74_v19, %v73_v18  ;;  %v58_v22 = vld [vmem:[%s1495_s1 + $0x118] sm:$0xff]  ;;  %v44_v24 = vld [vmem:[%s1495_s1 + $0xa8] sm:$0xff]  ;;  %803 = vmatprep.subr.bf16.mxu0 %v802_v16 }
   0x7   :  { %833 = vmatpush3.bf16.msra.mxu1 %v832_v12  ;;  %v836_v25 = vpack.c.bf16 %v58_v22, %v57_v20  ;;  %v806_v26 = vpack.c.bf16 %v44_v24, %v43_v23  ;;  %v27_v27 = vld [vmem:[%s1495_s1 + $0x20] sm:$0xff]  ;;  %v28_v28 = vld [vmem:[%s1495_s1 + $0x28] sm:$0xff]  ;;  %v45_v35 = vld [vmem:[%s1495_s1 + $0xb0] sm:$0xff] }
   0x8   :  { %v75_v29 = vld [vmem:[%s1495_s1 + $0x1a0] sm:$0xff]  ;;  %835 = vmatprep.subr.bf16.mxu1 %v834_v21  ;;  %v76_v30 = vld [vmem:[%s1495_s1 + $0x1a8] sm:$0xff]  ;;  %v808_v33 = vpack.c.bf16 %v28_v28, %v27_v27  ;;  %v46_v36 = vld [vmem:[%s1495_s1 + $0xb8] sm:$0xff] }
   0x9   :  { %v59_v31 = vld [vmem:[%s1495_s1 + $0x120] sm:$0xff]  ;;  %v60_v32 = vld [vmem:[%s1495_s1 + $0x128] sm:$0xff]  ;;  %805 = vmatpush3.bf16.msra.mxu0 %v804_v17  ;;  %v838_v34 = vpack.c.bf16 %v76_v30, %v75_v29  ;;  %v29_v37 = vld [vmem:[%s1495_s1 + $0x30] sm:$0xff]  ;;  %v810_v39 = vpack.c.bf16 %v46_v36, %v45_v35 }
   0xa   :  { %807 = vmatprep.subr.bf16.mxu0 %v806_v26  ;;  %v840_v38 = vpack.c.bf16 %v60_v32, %v59_v31  ;;  %v30_v40 = vld [vmem:[%s1495_s1 + $0x38] sm:$0xff]  ;;  %v77_v41 = vld [vmem:[%s1495_s1 + $0x1b0] sm:$0xff]  ;;  %v47_v49 = vld [vmem:[%s1495_s1 + $0xc0] sm:$0xff] }
   0xb   :  { %837 = vmatpush3.bf16.msra.mxu1 %v836_v25  ;;  %v78_v42 = vld [vmem:[%s1495_s1 + $0x1b8] sm:$0xff]  ;;  %v61_v47 = vld [vmem:[%s1495_s1 + $0x130] sm:$0xff]  ;;  %v48_v50 = vld [vmem:[%s1495_s1 + $0xc8] sm:$0xff]  ;;  %v812_v51 = vpack.c.bf16 %v30_v40, %v29_v37 }
   0xc   :  { %839 = vmatprep.subr.bf16.mxu1 %v838_v34  ;;  %v842_v46 = vpack.c.bf16 %v78_v42, %v77_v41  ;;  %v62_v48 = vld [vmem:[%s1495_s1 + $0x138] sm:$0xff]  ;;  %v79_v52 = vld [vmem:[%s1495_s1 + $0x1c0] sm:$0xff]  ;;  %v80_v53 = vld [vmem:[%s1495_s1 + $0x1c8] sm:$0xff]  ;;  %v814_v55 = vpack.c.bf16 %v48_v50, %v47_v49 }
   0xd   :  { %809 = vmatpush3.bf16.msra.mxu0 %v808_v33  ;;  %v844_v54 = vpack.c.bf16 %v62_v48, %v61_v47  ;;  %v31_v56 = vld [vmem:[%s1495_s1 + $0x40] sm:$0xff]  ;;  %v32_v57 = vld [vmem:[%s1495_s1 + $0x48] sm:$0xff]  ;;  %v846_v61 = vpack.c.bf16 %v80_v53, %v79_v52  ;;  %v49_v63 = vld [vmem:[%s1495_s1 + $0xd0] sm:$0xff] }
   0xe   :  { %811 = vmatprep.subr.bf16.mxu0 %v810_v39  ;;  %v63_v58 = vld [vmem:[%s1495_s1 + $0x140] sm:$0xff]  ;;  %v64_v62 = vld [vmem:[%s1495_s1 + $0x148] sm:$0xff]  ;;  %v50_v0 = vld [vmem:[%s1495_s1 + $0xd8] sm:$0xff]  ;;  %v816_v3 = vpack.c.bf16 %v32_v57, %v31_v56 }
   0xf   :  { %841 = vmatpush3.bf16.msra.mxu1 %v840_v38  ;;  %v81_v1 = vld [vmem:[%s1495_s1 + $0x1d0] sm:$0xff]  ;;  %v82_v2 = vld [vmem:[%s1495_s1 + $0x1d8] sm:$0xff]  ;;  %v848_v5 = vpack.c.bf16 %v64_v62, %v63_v58  ;;  %v818_v6 = vpack.c.bf16 %v50_v0, %v49_v63  ;;  %v51_v12 = vld [vmem:[%s1495_s1 + $0xe0] sm:$0xff] }
  0x10   :  { %843 = vmatprep.subr.bf16.mxu1 %v842_v46  ;;  %v33_v4 = vld [vmem:[%s1495_s1 + $0x50] sm:$0xff]  ;;  %v34_v7 = vld [vmem:[%s1495_s1 + $0x58] sm:$0xff]  ;;  %v850_v11 = vpack.c.bf16 %v82_v2, %v81_v1  ;;  %v52_v13 = vld [vmem:[%s1495_s1 + $0xe8] sm:$0xff] }
  0x11   :  { %813 = vmatpush3.bf16.msra.mxu0 %v812_v51  ;;  %v65_v8 = vld [vmem:[%s1495_s1 + $0x150] sm:$0xff]  ;;  %v66_v9 = vld [vmem:[%s1495_s1 + $0x158] sm:$0xff]  ;;  %v83_v14 = vld [vmem:[%s1495_s1 + $0x1e0] sm:$0xff]  ;;  %v820_v16 = vpack.c.bf16 %v34_v7, %v33_v4  ;;  %v822_v19 = vpack.c.bf16 %v52_v13, %v51_v12 }
  0x12   :  { %815 = vmatprep.subr.bf16.mxu0 %v814_v55  ;;  %v84_v15 = vld [vmem:[%s1495_s1 + $0x1e8] sm:$0xff]  ;;  %v852_v17 = vpack.c.bf16 %v66_v9, %v65_v8  ;;  %v20_v18 = vld [vmem:[%s1494_s0] sm:$0xff]  ;;  %v53_v27 = vld [vmem:[%s1495_s1 + $0xf0] sm:$0xff] }
  0x13   :  { %845 = vmatpush3.bf16.msra.mxu1 %v844_v54  ;;  %v35_v20 = vld [vmem:[%s1495_s1 + $0x60] sm:$0xff]  ;;  %v36_v21 = vld [vmem:[%s1495_s1 + $0x68] sm:$0xff]  ;;  %v184_v23 = vrot.slane %v20_v18, %v1160_v10  ;;  %v177_v24 = vcombine.high %v20_v18, %v20_v18  ;;  %v854_v25 = vpack.c.bf16 %v84_v15, %v83_v14  ;;  %v54_v28 = vld [vmem:[%s1495_s1 + $0xf8] sm:$0xff] }
  0x14   :  { %847 = vmatprep.subr.bf16.mxu1 %v846_v61  ;;  %v67_v22 = vld [vmem:[%s1495_s1 + $0x160] sm:$0xff]  ;;  %v68_v26 = vld [vmem:[%s1495_s1 + $0x168] sm:$0xff]  ;;  %v85_v29 = vld [vmem:[%s1495_s1 + $0x1f0] sm:$0xff]  ;;  %v824_v33 = vpack.c.bf16 %v36_v21, %v35_v20  ;;  %v826_v35 = vpack.c.bf16 %v54_v28, %v53_v27 }
  0x15   :  { %817 = vmatpush3.bf16.msra.mxu0 %v816_v3  ;;  %v86_v30 = vld [vmem:[%s1495_s1 + $0x1f8] sm:$0xff]  ;;  %v192_v31 = vcombine.high %v184_v23, %v184_v23  ;;  %v191_v32 = vrot.slane %v177_v24, %v1160_v10  ;;  %v856_v34 = vpack.c.bf16 %v68_v26, %v67_v22  ;;  %v37_v36 = vld [vmem:[%s1495_s1 + $0x70] sm:$0xff]  ;;  %v103_v42 = vld [vmem:[%s1495_s1 + $0x280] sm:$0xff] }
  0x16   :  { %819 = vmatprep.subr.bf16.mxu0 %v818_v6  ;;  %v38_v37 = vld [vmem:[%s1495_s1 + $0x78] sm:$0xff]  ;;  %v69_v38 = vld [vmem:[%s1495_s1 + $0x170] sm:$0xff]  ;;  %v858_v40 = vpack.c.bf16 %v86_v30, %v85_v29  ;;  %v104_v43 = vld [vmem:[%s1495_s1 + $0x288] sm:$0xff] }
  0x17   :  { %849 = vmatpush3.bf16.msra.mxu1 %v848_v5  ;;  %v193_v39 = vcombine.high %v191_v32, %v191_v32  ;;  %291 = vmatprep.mubr.f32.mxu0 %v192_v31  ;;  %v70_v41 = vld [vmem:[%s1495_s1 + $0x178] sm:$0xff]  ;;  %v135_v44 = vld [vmem:[%s1495_s1 + $0x380] sm:$0xff]  ;;  %v136_v45 = vld [vmem:[%s1495_s1 + $0x388] sm:$0xff]  ;;  %v828_v46 = vpack.c.bf16 %v38_v37, %v37_v36  ;;  %v862_v48 = vpack.c.bf16 %v104_v43, %v103_v42 }
  0x18   :  { %851 = vmatprep.subr.bf16.mxu1 %v850_v11  ;;  %v860_v47 = vpack.c.bf16 %v70_v41, %v69_v38  ;;  %v87_v49 = vld [vmem:[%s1495_s1 + $0x200] sm:$0xff]  ;;  %v88_v50 = vld [vmem:[%s1495_s1 + $0x208] sm:$0xff]  ;;  %v894_v52 = vpack.c.bf16 %v136_v45, %v135_v44  ;;  %v105_v54 = vld [vmem:[%s1495_s1 + $0x290] sm:$0xff] }
  0x19   :  { %821 = vmatpush3.bf16.msra.mxu0 %v820_v16  ;;  %361 = vmatprep.mubr.f32.mxu1 %v193_v39  ;;  %v119_v51 = vld [vmem:[%s1495_s1 + $0x300] sm:$0xff]  ;;  %v120_v53 = vld [vmem:[%s1495_s1 + $0x308] sm:$0xff]  ;;  %v106_v55 = vld [vmem:[%s1495_s1 + $0x298] sm:$0xff]  ;;  %v864_v58 = vpack.c.bf16 %v88_v50, %v87_v49 }
  0x1a   :  { %823 = vmatprep.subr.bf16.mxu0 %v822_v19  ;;  %v137_v56 = vld [vmem:[%s1495_s1 + $0x390] sm:$0xff]  ;;  %v138_v57 = vld [vmem:[%s1495_s1 + $0x398] sm:$0xff]  ;;  %v896_v59 = vpack.c.bf16 %v120_v53, %v119_v51  ;;  %v866_v60 = vpack.c.bf16 %v106_v55, %v105_v54  ;;  %v107_v2 = vld [vmem:[%s1495_s1 + $0x2a0] sm:$0xff] }
  0x1b   :  { %853 = vmatpush3.bf16.msra.mxu1 %v852_v17  ;;  %v89_v61 = vld [vmem:[%s1495_s1 + $0x210] sm:$0xff]  ;;  %v90_v62 = vld [vmem:[%s1495_s1 + $0x218] sm:$0xff]  ;;  %v898_v0 = vpack.c.bf16 %v138_v57, %v137_v56  ;;  %v108_v3 = vld [vmem:[%s1495_s1 + $0x2a8] sm:$0xff] }
  0x1c   :  { %855 = vmatprep.subr.bf16.mxu1 %v854_v25  ;;  %v121_v63 = vld [vmem:[%s1495_s1 + $0x310] sm:$0xff]  ;;  %v122_v1 = vld [vmem:[%s1495_s1 + $0x318] sm:$0xff]  ;;  %v139_v4 = vld [vmem:[%s1495_s1 + $0x3a0] sm:$0xff]  ;;  %v868_v6 = vpack.c.bf16 %v90_v62, %v89_v61  ;;  %v870_v8 = vpack.c.bf16 %v108_v3, %v107_v2 }
  0x1d   :  { %825 = vmatpush3.bf16.msra.mxu0 %v824_v33  ;;  %v140_v5 = vld [vmem:[%s1495_s1 + $0x3a8] sm:$0xff]  ;;  %v900_v7 = vpack.c.bf16 %v122_v1, %v121_v63  ;;  %v91_v9 = vld [vmem:[%s1495_s1 + $0x220] sm:$0xff]  ;;  %v109_v15 = vld [vmem:[%s1495_s1 + $0x2b0] sm:$0xff] }
  0x1e   :  { %827 = vmatprep.subr.bf16.mxu0 %v826_v35  ;;  %v92_v11 = vld [vmem:[%s1495_s1 + $0x228] sm:$0xff]  ;;  %v123_v12 = vld [vmem:[%s1495_s1 + $0x320] sm:$0xff]  ;;  %v902_v13 = vpack.c.bf16 %v140_v5, %v139_v4  ;;  %v110_v16 = vld [vmem:[%s1495_s1 + $0x2b8] sm:$0xff] }
  0x1f   :  { %857 = vmatpush3.bf16.msra.mxu1 %v856_v34  ;;  %v124_v14 = vld [vmem:[%s1495_s1 + $0x328] sm:$0xff]  ;;  %v141_v17 = vld [vmem:[%s1495_s1 + $0x3b0] sm:$0xff]  ;;  %v142_v18 = vld [vmem:[%s1495_s1 + $0x3b8] sm:$0xff]  ;;  %v872_v19 = vpack.c.bf16 %v92_v11, %v91_v9  ;;  %v874_v22 = vpack.c.bf16 %v110_v16, %v109_v15 }
  0x20   :  { %859 = vmatprep.subr.bf16.mxu1 %v858_v40  ;;  %v93_v20 = vld [vmem:[%s1495_s1 + $0x230] sm:$0xff]  ;;  %v904_v21 = vpack.c.bf16 %v124_v14, %v123_v12  ;;  %v126_v25 = vld [vmem:[%s1495_s1 + $0x338] sm:$0xff]  ;;  %v906_v26 = vpack.c.bf16 %v142_v18, %v141_v17  ;;  %v111_v27 = vld [vmem:[%s1495_s1 + $0x2c0] sm:$0xff] }
  0x21   :  { %829 = vmatpush3.bf16.msra.mxu0 %v828_v46  ;;  %v125_v24 = vld [vmem:[%s1495_s1 + $0x330] sm:$0xff]  ;;  %v112_v28 = vld [vmem:[%s1495_s1 + $0x2c8] sm:$0xff]  ;;  %v143_v30 = vld [vmem:[%s1495_s1 + $0x3c0] sm:$0xff] }
  0x22   :  { %863 = vmatprep.subr.bf16.mxu0 %v862_v48  ;;  %v21_v29 = vld [vmem:[%s1494_s0 + $0x8] sm:$0xff]  ;;  %v908_v35 = vpack.c.bf16 %v126_v25, %v125_v24  ;;  %v878_v36 = vpack.c.bf16 %v112_v28, %v111_v27  ;;  %v95_v37 = vld [vmem:[%s1495_s1 + $0x240] sm:$0xff]  ;;  %v113_v44 = vld [vmem:[%s1495_s1 + $0x2d0] sm:$0xff] }
  0x23   :  { %861 = vmatpush3.bf16.msra.mxu1 %v860_v47  ;;  %v144_v31 = vld [vmem:[%s1495_s1 + $0x3c8] sm:$0xff]  ;;  %v194_v33 = vcombine.high %v21_v29, %v21_v29  ;;  %v127_v39 = vld [vmem:[%s1495_s1 + $0x340] sm:$0xff]  ;;  %v114_v45 = vld [vmem:[%s1495_s1 + $0x2d8] sm:$0xff] }
  0x24   :  { %895 = vmatprep.subr.bf16.mxu1 %v894_v52  ;;  %292 = vmatmul.mubr.f32.vlgmr.msra.gmra.mrb[0].mxu0 %v184_v23  ;;  %v94_v23 = vld [vmem:[%s1495_s1 + $0x238] sm:$0xff]  ;;  %v96_v38 = vld [vmem:[%s1495_s1 + $0x248] sm:$0xff]  ;;  %v910_v42 = vpack.c.bf16 %v144_v31, %v143_v30  ;;  %v145_v46 = vld [vmem:[%s1495_s1 + $0x3d0] sm:$0xff]  ;;  %v882_v51 = vpack.c.bf16 %v114_v45, %v113_v44 }
  0x25   :  { %865 = vmatpush3.bf16.msra.mxu0 %v864_v58  ;;  %v876_v34 = vpack.c.bf16 %v94_v23, %v93_v20  ;;  %v1341_v41 = vrot.slane %v194_v33, %v1160_v10  ;;  %v128_v43 = vld [vmem:[%s1495_s1 + $0x348] sm:$0xff]  ;;  %v880_v48 = vpack.c.bf16 %v96_v38, %v95_v37  ;;  %v97_v49 = vld [vmem:[%s1495_s1 + $0x250] sm:$0xff]  ;;  %v98_v52 = vld [vmem:[%s1495_s1 + $0x258] sm:$0xff] }
  0x26   :  { %362 = vmatmul.mubr.f32.vlgmr.msra.gmra.mrb[0].mxu1 %v191_v32  ;;  %867 = vmatprep.subr.bf16.mxu0 %v866_v60  ;;  %v1327_v32 = vrot.slane %v21_v29, %v1160_v10  ;;  %v146_v10 = vld [vmem:[%s1495_s1 + $0x3d8] sm:$0xff]  ;;  %v912_v50 = vpack.c.bf16 %v128_v43, %v127_v39  ;;  %v129_v53 = vld [vmem:[%s1495_s1 + $0x350] sm:$0xff] }
  0x27   :  { %897 = vmatpush3.bf16.msra.mxu1 %v896_v59  ;;  %v210_v47 = vcombine.high %v1341_v41, %v1341_v41 }
  0x28   :  { %899 = vmatprep.subr.bf16.mxu1 %v898_v0  ;;  %v209_v40 = vcombine.high %v1327_v32, %v1327_v32 }
  0x29   :  { %869 = vmatpush3.bf16.msra.mxu0 %v868_v6 }
  0x2a   :  { %871 = vmatprep.subr.bf16.mxu0 %v870_v8  ;;  %431 = vmatprep.mubr.f32.mxu0 %v209_v40 }
  0x2b   :  { %901 = vmatpush3.bf16.msra.mxu1 %v900_v7 }
  0x2c   :  { %903 = vmatprep.subr.bf16.mxu1 %v902_v13 }
  0x2d   :  { %873 = vmatpush3.bf16.msra.mxu0 %v872_v19 }
  0x2e   :  { %875 = vmatprep.subr.bf16.mxu0 %v874_v22 }
  0x2f   :  { %905 = vmatpush3.bf16.msra.mxu1 %v904_v21 }
  0x30   :  { %907 = vmatprep.subr.bf16.mxu1 %v906_v26 }
  0x31   :  { %877 = vmatpush3.bf16.msra.mxu0 %v876_v34 }
  0x32   :  { %879 = vmatprep.subr.bf16.mxu0 %v878_v36 }
  0x33   :  { %909 = vmatpush3.bf16.msra.mxu1 %v908_v35 }
  0x34   :  { %11 = vsyncpa [#allocation3], 0  ;;  %911 = vmatprep.subr.bf16.mxu1 %v910_v42  ;;  %v914_v54 = vpack.c.bf16 %v146_v10, %v145_v46  ;;  %v130_v55 = vld [vmem:[%s1495_s1 + $0x358] sm:$0xff]  ;;  %v115_v56 = vld [vmem:[%s1495_s1 + $0x2e0] sm:$0xff]  ;;  %501 = vmatprep.mubr.f32.mxu1 %v210_v47  ;;  %v884_v60 = vpack.c.bf16 %v98_v52, %v97_v49  ;;  %v982_v22 = vmov 0.0|0.0   ;;  %vm983_vm0 = vmmov 0  }
  0x35   :  { %v116_v57 = vld [vmem:[%s1495_s1 + $0x2e8] sm:$0xff]  ;;  %v147_v58 = vld [vmem:[%s1495_s1 + $0x3e0] sm:$0xff]  ;;  %881 = vmatpush3.bf16.msra.mxu0 %v880_v48  ;;  %v916_v61 = vpack.c.bf16 %v130_v55, %v129_v53  ;;  %v117_v4 = vld [vmem:[%s1495_s1 + $0x2f0] sm:$0xff]  ;;  %v984_v28 = vmov 0.0   ;;  %vm583_vm1 = vcmask 254976  }
  0x36   :  { %v148_v59 = vld [vmem:[%s1495_s1 + $0x3e8] sm:$0xff]  ;;  %883 = vmatprep.subr.bf16.mxu0 %v882_v51  ;;  %v886_v62 = vpack.c.bf16 %v116_v57, %v115_v56  ;;  %v99_v63 = vld [vmem:[%s1495_s1 + $0x260] sm:$0xff]  ;;  %v118_v5 = vld [vmem:[%s1495_s1 + $0x2f8] sm:$0xff] }
  0x37   :  { %913 = vmatpush3.bf16.msra.mxu1 %v912_v50  ;;  %v100_v0 = vld [vmem:[%s1495_s1 + $0x268] sm:$0xff]  ;;  %v131_v1 = vld [vmem:[%s1495_s1 + $0x360] sm:$0xff]  ;;  %v918_v2 = vpack.c.bf16 %v148_v59, %v147_v58  ;;  %v149_v6 = vld [vmem:[%s1495_s1 + $0x3f0] sm:$0xff]  ;;  %v890_v11 = vpack.c.bf16 %v118_v5, %v117_v4 }
  0x38   :  { %915 = vmatprep.subr.bf16.mxu1 %v914_v54  ;;  %v132_v3 = vld [vmem:[%s1495_s1 + $0x368] sm:$0xff]  ;;  %v150_v7 = vld [vmem:[%s1495_s1 + $0x3f8] sm:$0xff]  ;;  %v888_v8 = vpack.c.bf16 %v100_v0, %v99_v63  ;;  %v101_v12 = vld [vmem:[%s1495_s1 + $0x270] sm:$0xff] }
  0x39   :  { %885 = vmatpush3.bf16.msra.mxu0 %v884_v60  ;;  %v920_v9 = vpack.c.bf16 %v132_v3, %v131_v1  ;;  %v102_v13 = vld [vmem:[%s1495_s1 + $0x278] sm:$0xff]  ;;  %v922_v14 = vpack.c.bf16 %v150_v7, %v149_v6  ;;  %v133_v15 = vld [vmem:[%s1495_s1 + $0x370] sm:$0xff]  ;;  %v151_v19 = vld [vmem:[%s1495_s1 + $0x400] sm:$0xff] }
  0x3a   :  { %887 = vmatprep.subr.bf16.mxu0 %v886_v62  ;;  %v134_v16 = vld [vmem:[%s1495_s1 + $0x378] sm:$0xff]  ;;  %v892_v17 = vpack.c.bf16 %v102_v13, %v101_v12  ;;  %v152_v20 = vld [vmem:[%s1495_s1 + $0x408] sm:$0xff]  ;;  %v153_v23 = vld [vmem:[%s1495_s1 + $0x410] sm:$0xff] }
  0x3b   :  { %917 = vmatpush3.bf16.msra.mxu1 %v916_v61  ;;  %v924_v18 = vpack.c.bf16 %v134_v16, %v133_v15  ;;  %v927_v21 = vpack.c.bf16 %v152_v20, %v151_v19  ;;  %v154_v24 = vld [vmem:[%s1495_s1 + $0x418] sm:$0xff]  ;;  %v155_v26 = vld [vmem:[%s1495_s1 + $0x420] sm:$0xff]  ;;  %v156_v27 = vld [vmem:[%s1495_s1 + $0x428] sm:$0xff] }
  0x3c   :  { %919 = vmatprep.subr.bf16.mxu1 %v918_v2  ;;  %v930_v25 = vpack.c.bf16 %v154_v24, %v153_v23  ;;  %v933_v29 = vpack.c.bf16 %v156_v27, %v155_v26  ;;  %v157_v30 = vld [vmem:[%s1495_s1 + $0x430] sm:$0xff]  ;;  %v158_v31 = vld [vmem:[%s1495_s1 + $0x438] sm:$0xff]  ;;  %v159_v33 = vld [vmem:[%s1495_s1 + $0x440] sm:$0xff] }
  0x3d   :  { %889 = vmatpush3.bf16.msra.mxu0 %v888_v8  ;;  %v160_v34 = vld [vmem:[%s1495_s1 + $0x448] sm:$0xff]  ;;  %v161_v36 = vld [vmem:[%s1495_s1 + $0x450] sm:$0xff]  ;;  %v162_v37 = vld [vmem:[%s1495_s1 + $0x458] sm:$0xff] }
  0x3e   :  { %891 = vmatprep.subr.bf16.mxu0 %v890_v11  ;;  %v939_v35 = vpack.c.bf16 %v160_v34, %v159_v33  ;;  %v942_v38 = vpack.c.bf16 %v162_v37, %v161_v36  ;;  %v163_v39 = vld [vmem:[%s1495_s1 + $0x460] sm:$0xff]  ;;  %v164_v40 = vld [vmem:[%s1495_s1 + $0x468] sm:$0xff]  ;;  %v165_v42 = vld [vmem:[%s1495_s1 + $0x470] sm:$0xff] }
  0x3f   :  { %921 = vmatpush3.bf16.msra.mxu1 %v920_v9  ;;  %v166_v43 = vld [vmem:[%s1495_s1 + $0x478] sm:$0xff]  ;;  %v605_v45 = vld.sshfl [vmem:[%s1494_s0 + $0x10] sm:$0x3 pattern:$0x76325410] }
  0x40   :  { %923 = vmatprep.subr.bf16.mxu1 %v922_v14  ;;  %v948_v44 = vpack.c.bf16 %v166_v43, %v165_v42  ;;  %v604_v10 = vld [vmem:[%s1496_s2] ss:$0 sm:$0xff]  ;;  %s985_s2 = smov [#allocation2]  }
  0x41   :  { %893 = vmatpush3.bf16.msra.mxu0 %v892_v17  ;;  %v577_v62 = vld [vmem:[%s1497_s3] sm:$0x3]  ;;  %s592_s14 = sshll.u32 %s985_s2, 4  ;;  %s593_s14 = int_to_ptr.vmem [resolvable:$true] %s592_s14 }
  0x42   :  { %926 = vmatprep.subr.bf16.mxu0 %v982_v22  ;;  %v578_v63 = vand.u32 2147483647, %v577_v62  ;;  %s957_s17 = scalar_lea.vmem %s593_s14, 32  ;;  %p962_p1 = scmp.lt.s32.totalorder %s593_s14, %s593_s14 }
  0x43   :  { %925 = vmatpush3.bf16.msra.mxu1 %v924_v18  ;;  %p958_p0 = scmp.ne.s32.totalorder %s593_s14, %s957_s17  ;;  %p963_p2 = scmp.lt.s32.totalorder %s957_s17, %s957_s17 }
  0x44   :  { %432 = vmatmul.mubr.f32.vlgmr.msra.gmra.mrb[2].mxu0 %v1327_v32  ;;  %v936_v32 = vpack.c.bf16 %v158_v31, %v157_v30 }
  0x45   :  { %928 = vmatpush3.bf16.msra.mxu0 %v927_v21  ;;  %795 = vmatprep.mubr.msk.f32.mxu0 %vm983_vm0, %v984_v28  ;;  %p964_p3 = por %p963_p2, %p962_p1 }
  0x46   :  { %502 = vmatmul.mubr.f32.vlgmr.msra.gmra.mrb[2].mxu1 %v1341_v41  ;;  %929 = vmatprep.subr.bf16.mxu0 %v982_v22  ;;  %v945_v41 = vpack.c.bf16 %v164_v40, %v163_v39 }
  0x47   :  { %p965_p4 = pnand %p964_p3, %p958_p0 }
  0x49   :  { %931 = vmatpush3.bf16.msra.mxu0 %v930_v25 }
  0x4a   :  { %932 = vmatprep.subr.bf16.mxu0 %v982_v22 }
  0x4d   :  { %934 = vmatpush3.bf16.msra.mxu0 %v933_v29 }
  0x4e   :  { %935 = vmatprep.subr.bf16.mxu0 %v982_v22 }
  0x51   :  { %937 = vmatpush3.bf16.msra.mxu0 %v936_v32 }
  0x52   :  { %938 = vmatprep.subr.bf16.mxu0 %v982_v22 }
  0x55   :  { %940 = vmatpush3.bf16.msra.mxu0 %v939_v35 }
  0x56   :  { %941 = vmatprep.subr.bf16.mxu0 %v982_v22 }
  0x59   :  { %943 = vmatpush3.bf16.msra.mxu0 %v942_v38 }
  0x5a   :  { %944 = vmatprep.subr.bf16.mxu0 %v982_v22 }
  0x5d   :  { %946 = vmatpush3.bf16.msra.mxu0 %v945_v41 }
  0x5e   :  { %947 = vmatprep.subr.bf16.mxu0 %v982_v22 }
  0x61   :  { %949 = vmatpush3.bf16.msra.mxu0 %v948_v44 }
  0x64   :  { %796 = vmatmul.mubr.f32.vlgmr.msra.gmra.mrb[4].mxu0 %v605_v45 }
  0xf7   :  { %v638_v46 = vpop.f32.mrb[0].mxu0 }
  0xf8   :  { %v639_v47 = vpop.f32.mrb[1].mxu0 }
  0xf9   :  { %v673_v48 = vpop.f32.mrb[0].mxu1  ;;  %v640_v49 = vadd.f32 %v639_v47, %v638_v46 }
  0xfa   :  { %v674_v50 = vpop.f32.mrb[1].mxu1 }
  0xfb   :  { %v675_v51 = vadd.f32 %v674_v50, %v673_v48  ;;  %v294_v52 = vadd.f32 %v640_v49, %v604_v10 }
  0xfd   :  { %v364_v53 = vadd.f32 %v675_v51, %v294_v52 }
 0x117   :  { %v708_v54 = vpop.f32.mrb[2].mxu0 }
 0x118   :  { %v709_v55 = vpop.f32.mrb[3].mxu0 }
 0x119   :  { %v743_v56 = vpop.f32.mrb[2].mxu1  ;;  %v710_v57 = vadd.f32 %v709_v55, %v708_v54 }
 0x11a   :  { %v744_v58 = vpop.f32.mrb[3].mxu1 }
 0x11b   :  { %v745_v59 = vadd.f32 %v744_v58, %v743_v56  ;;  %v434_v60 = vadd.f32 %v710_v57, %v364_v53 }
 0x11d   :  { %v504_v61 = vadd.f32 %v745_v59, %v434_v60 }
 0x137   :  { %v573_v0 = vpop.f32.mrb[4].mxu0 }
 0x138   :  { %v574_v1 = vadd.f32 %v573_v0, %v504_v61  ;;  %v797_v2 = vpop.f32.mrb[5].mxu0 }
 0x13a   :  { %v579_v3 = vadd.f32 %v578_v63, %v574_v1 }
 0x13c   :  { %vm580_vm2 = vcmp.gt.f32.partialorder %v579_v3, 0.0 }
 0x13d   :  { %v581_v4 = vsel %vm580_vm2, 1.0, %v984_v28 }
 0x13e   :  { %v582_v5 = vmul.f32 %v581_v4, %v577_v62  ;;  %585 = vst.msk [vmem:[%s1499_s5] sm:$0x3] %vm583_vm1, %v581_v4 }
 0x140   :  { %584 = vst.msk [vmem:[#allocation2] sm:$0x3] %vm583_vm1, %v582_v5 }
 0x141   :  { %968 = shalt.err (!%p965_p4)
}
 0x142   :  { %s969_s19 = scalar_lea.hbm %s1498_s4, 32 }
 0x143   :  { %p970_p5 = scmp.ne.s32.totalorder %s1498_s4, %s969_s19  ;;  %p973_p6 = scmp.lt.u32.totalorder %s969_s19, %s1498_s4 }
 0x145   :  { %p975_p7 = pnand %p973_p6, %p970_p5 }
 0x147   :  { %978 = shalt.err (!%p975_p7)
}
 0x148   :  { %595 = dma.vmem_to_hbm [thread:$0]  %s593_s14, 32, %s1498_s4, [#allocation3]  }
 0x149   :  { %979 = dma.done.wait [#allocation3], 32  }
 0x14a   :  { %980 = vsyncadd [#allocation3], 4294967264 }
 0x14b   :  { %603 = vsyncpa [#allocation3], 1 }

</bundles_post_ra>
